<compile_context>
chip_gen: v7x
topology: tpu7x:2x2x1
jax: 0.10.0
libtpu: 0.0.40
codegen_flags: <defaults>
</compile_context>

<pallas_src>
import numpy as np
import jax
import jax.numpy as jnp
from jax.experimental import pallas as pl
from jax.experimental.pallas import tpu as pltpu


# ----------------------------------------------------------------------------
# Helpers
# ----------------------------------------------------------------------------
def _round_up(v, m):
    return ((v + m - 1) // m) * m


def _softmax_rows(e):
    # numerically-stable row softmax in f32; reciprocal on the EUP
    m = jnp.max(e, axis=-1, keepdims=True)
    p = jnp.exp(e - m)
    s = jnp.sum(p, axis=-1, keepdims=True)
    return p * pl.reciprocal(s, approx=True)


# ----------------------------------------------------------------------------
# Pallas kernel: whole G_PAM forward for one batch element
# ----------------------------------------------------------------------------
def _gpam_kernel(x_ref, g_ref, wqkv_ref, wqkg_ref, bqkv_ref, bqkg_ref,
                 gamma_ref, o_ref):
    f32 = jnp.float32
    bf16 = jnp.bfloat16
    Cp = x_ref.shape[-1]               # padded channel width of x
    Cgp = g_ref.shape[-1]              # padded channel width of g

    x = x_ref[0]                       # (N, Cp)  f32, zero-padded channels
    g = g_ref[0]                       # (N, Cgp) f32, zero-padded channels
    xb = x.astype(bf16)
    gb = g.astype(bf16)

    # Fused 1x1-conv projections: one wide MXU matmul per input, f32 bias add.
    qkv = jnp.dot(xb, wqkv_ref[...], preferred_element_type=f32) + bqkv_ref[...]
    q = qkv[:, :Cp]                    # slices land on 128-lane boundaries
    k = qkv[:, Cp:2 * Cp]
    v = qkv[:, 2 * Cp:]

    qkg = jnp.dot(gb, wqkg_ref[...], preferred_element_type=f32) + bqkg_ref[...]
    qg = qkg[:, :Cgp]
    kg = qkg[:, Cgp:]

    # energy[i, j] = <q_i, k_j>  (contract channel dim; no transpose copy)
    dn = (((1,), (1,)), ((), ()))
    energy = jax.lax.dot_general(q.astype(bf16), k.astype(bf16), dn,
                                 preferred_element_type=f32)
    attention = _softmax_rows(energy)                      # (N, N) f32

    energy_g = jax.lax.dot_general(qg.astype(bf16), kg.astype(bf16), dn,
                                   preferred_element_type=f32)
    attention_g = _softmax_rows(energy_g)                  # (N, N) f32

    guide_energy = jnp.dot(attention.astype(bf16), attention_g.astype(bf16),
                           preferred_element_type=f32)
    guide_attention = _softmax_rows(guide_energy)          # (N, N) f32

    # out[i, c] = sum_j GA[i, j] * v[j, c]  (== bmm(value, GA^T) in NCHW-speak)
    out = jnp.dot(guide_attention.astype(bf16), v.astype(bf16),
                  preferred_element_type=f32)

    o_ref[0] = gamma_ref[0, 0] * out + x                   # residual blend


# ----------------------------------------------------------------------------
# Wrapper
# ----------------------------------------------------------------------------
def g_pam_forward(x_nchw, g_nchw, packed, gamma=None):
    """x: (B, C, H, W), g: (B, Cg, H, W)  ->  (B, C, H, W)."""
    B, C, H, W = x_nchw.shape
    Bg, Cg, Hg, Wg = g_nchw.shape
    assert Bg == B and (Hg, Wg) == (H, W), "guide must match x spatially"
    N = H * W
    Cp = packed["wqkv"].shape[0]
    Cgp = packed["wqkg"].shape[0]
    if gamma is None:
        gamma = packed["gamma"]
    gamma = jnp.asarray(gamma, jnp.float32).reshape(1, 1)

    # NCHW -> (B, N, C) pixel-major (matches torch .view(B, C, H*W) ordering),
    # zero-pad channels once to a lane-dense width.
    x = jnp.transpose(x_nchw, (0, 2, 3, 1)).reshape(B, N, C).astype(jnp.float32)
    g = jnp.transpose(g_nchw, (0, 2, 3, 1)).reshape(B, N, Cg).astype(jnp.float32)
    xp = jnp.pad(x, ((0, 0), (0, 0), (0, Cp - C)))
    gp = jnp.pad(g, ((0, 0), (0, 0), (0, Cgp - Cg)))

    # VMEM-aware compiler limit (never below the 32 MiB default).
    est_vmem = (7 * N * N * 4                    # attention/energy f32 + bf16 copies
                + N * (3 * Cp + 2 * Cgp) * 4     # fused projection outputs
                + 6 * N * max(Cp, Cgp) * 4       # x/g/out blocks (double-buffered)
                + (3 * Cp * Cp + 2 * Cgp * Cgp) * 2)
    vmem_limit = int(min(112 * 2**20, max(32 * 2**20, 2 * est_vmem)))

    # Advisory cost estimate for XLA's scheduler.
    flops_b = (2 * N * Cp * 3 * Cp + 2 * N * Cgp * 2 * Cgp
               + 2 * N * N * (Cp + Cgp) + 2 * N * N * N + 2 * N * N * Cp)
    bytes_b = (2 * N * Cp * 4 + N * Cgp * 4
               + 3 * Cp * Cp * 2 + 2 * Cgp * Cgp * 2)
    cost = pl.CostEstimate(flops=B * flops_b,
                           transcendentals=B * 3 * N * N,
                           bytes_accessed=B * bytes_b)

    out_p = pl.pallas_call(
        _gpam_kernel,
        out_shape=jax.ShapeDtypeStruct((B, N, Cp), jnp.float32),
        grid=(B,),
        in_specs=[
            pl.BlockSpec((1, N, Cp), lambda b: (b, 0, 0)),        # x
            pl.BlockSpec((1, N, Cgp), lambda b: (b, 0, 0)),       # g
            pl.BlockSpec((Cp, 3 * Cp), lambda b: (0, 0)),         # wqkv (bf16)
            pl.BlockSpec((Cgp, 2 * Cgp), lambda b: (0, 0)),       # wqkg (bf16)
            pl.BlockSpec((1, 3 * Cp), lambda b: (0, 0)),          # bqkv (f32)
            pl.BlockSpec((1, 2 * Cgp), lambda b: (0, 0)),         # bqkg (f32)
            pl.BlockSpec(memory_space=pltpu.MemorySpace.SMEM),    # gamma scalar
        ],
        out_specs=pl.BlockSpec((1, N, Cp), lambda b: (b, 0, 0)),
        compiler_params=pltpu.CompilerParams(
            dimension_semantics=("parallel",),
            vmem_limit_bytes=vmem_limit,
        ),
        cost_estimate=cost,
    )(xp, gp, packed["wqkv"], packed["wqkg"], packed["bqkv"], packed["bqkg"],
      gamma)

    out = out_p[:, :, :C].reshape(B, H, W, C)
    return jnp.transpose(out, (0, 3, 1, 2))


# ----------------------------------------------------------------------------
# Deterministic synthetic parameters (pre-padded / pre-fused / pre-cast ONCE)
# ----------------------------------------------------------------------------
def make_gpam_params(in_dim, in_dim_guide, seed=0):
    C, Cg = in_dim, in_dim_guide
    keys = jax.random.split(jax.random.PRNGKey(seed), 10)

    def mk_w(key, cin, cout):
        return jax.random.normal(key, (cin, cout), jnp.float32) / np.sqrt(cin)

    def mk_b(key, cout):
        return 0.1 * jax.random.normal(key, (cout,), jnp.float32)

    raw = dict(
        wq=mk_w(keys[0], C, C),    bq=mk_b(keys[1], C),
        wk=mk_w(keys[2], C, C),    bk=mk_b(keys[3], C),
        wv=mk_w(keys[4], C, C),    bv=mk_b(keys[5], C),
        wqg=mk_w(keys[6], Cg, Cg), bqg=mk_b(keys[7], Cg),
        wkg=mk_w(keys[8], Cg, Cg), bkg=mk_b(keys[9], Cg),
        gamma=jnp.zeros((1,), jnp.float32),   # nn.Parameter(torch.zeros(1))
    )

    Cp, Cgp = _round_up(C, 128), _round_up(Cg, 128)

    def pad_w(w, cp):
        cin, cout = w.shape
        return jnp.zeros((cp, cp), jnp.float32).at[:cin, :cout].set(w)

    def pad_b(b, cp):
        return jnp.zeros((1, cp), jnp.float32).at[0, :b.shape[0]].set(b)

    # Fuse q/k/v (and q_g/k_g) projections into single lane-dense weight slabs.
    wqkv = jnp.concatenate(
        [pad_w(raw["wq"], Cp), pad_w(raw["wk"], Cp), pad_w(raw["wv"], Cp)],
        axis=1).astype(jnp.bfloat16)
    wqkg = jnp.concatenate(
        [pad_w(raw["wqg"], Cgp), pad_w(raw["wkg"], Cgp)],
        axis=1).astype(jnp.bfloat16)
    bqkv = jnp.concatenate(
        [pad_b(raw["bq"], Cp), pad_b(raw["bk"], Cp), pad_b(raw["bv"], Cp)],
        axis=1)
    bqkg = jnp.concatenate(
        [pad_b(raw["bqg"], Cgp), pad_b(raw["bkg"], Cgp)], axis=1)

    raw["packed"] = dict(
        wqkv=wqkv, wqkg=wqkg, bqkv=bqkv, bqkg=bqkg,
        gamma=raw["gamma"].reshape(1, 1),
    )
    return raw


# ----------------------------------------------------------------------------
# Pure-JAX f32 reference (mirror of the PyTorch forward)
# ----------------------------------------------------------------------------
def g_pam_reference(x, g, p, gamma=None):
    B, C, H, W = x.shape
    N = H * W
    if gamma is None:
        gamma = p["gamma"]
    gamma = jnp.asarray(gamma, jnp.float32).reshape(())

    def proj(t, w, b):
        B_, C_, H_, W_ = t.shape
        tt = jnp.transpose(t, (0, 2, 3, 1)).reshape(B_, H_ * W_, C_)
        return tt @ w + b                                   # (B, N, Cout)

    q = proj(x, p["wq"], p["bq"])
    k = proj(x, p["wk"], p["bk"])
    v = proj(x, p["wv"], p["bv"])
    qg = proj(g, p["wqg"], p["bqg"])
    kg = proj(g, p["wkg"], p["bkg"])

    att = jax.nn.softmax(jnp.einsum('bnc,bmc->bnm', q, k), axis=-1)
    attg = jax.nn.softmax(jnp.einsum('bnc,bmc->bnm', qg, kg), axis=-1)
    ga = jax.nn.softmax(jnp.einsum('bnm,bmk->bnk', att, attg), axis=-1)
    out = jnp.einsum('bnm,bmc->bnc', ga, v)
    xf = jnp.transpose(x, (0, 2, 3, 1)).reshape(B, N, C)
    out = gamma * out + xf
    return jnp.transpose(out.reshape(B, H, W, C), (0, 3, 1, 2))


# ----------------------------------------------------------------------------
if __name__ == "__main__":
    B, C, Cg, H, W = 2, 4, 4, 16, 16
    kx, kg_ = jax.random.split(jax.random.PRNGKey(0))
    x = jax.random.normal(kx, (B, C, H, W), jnp.float32)
    g = jax.random.normal(kg_, (B, Cg, H, W), jnp.float32)

    params = make_gpam_params(C, Cg, seed=0)
    fwd = jax.jit(g_pam_forward)

    # 1) module-default gamma (= 0, as in nn.Parameter(torch.zeros(1))):
    #    forward reduces to the identity on x while still running the full
    #    attention path.
    out0 = jax.block_until_ready(fwd(x, g, params["packed"]))
    assert out0.shape == (B, C, H, W)
    assert bool(jnp.all(jnp.isfinite(out0)))
    assert bool(jnp.allclose(out0, x, atol=1e-5))

    # 2) non-zero gamma exercises the attention output; compare against the
    #    pure-JAX f32 reference (loose tolerance: bf16 MXU operands).
    gamma = jnp.asarray([0.7], jnp.float32)
    out1 = jax.block_until_ready(fwd(x, g, params["packed"], gamma=gamma))
    ref1 = g_pam_reference(x, g, params, gamma=gamma)
    assert bool(jnp.all(jnp.isfinite(out1)))
    assert bool(jnp.allclose(out1, ref1, atol=5e-2, rtol=5e-2)), \
        f"max abs err {float(jnp.max(jnp.abs(out1 - ref1)))}"

    print("KERNEL_OK")
</pallas_src>

<mosaic_0001>
module attributes {stable_mosaic.version = 11 : i64} {
  func.func @_gpam_kernel(%arg0: i32, %arg1: memref<1x256x128xf32, #tpu.memory_space<vmem>>, %arg2: memref<1x256x128xf32, #tpu.memory_space<vmem>>, %arg3: memref<128x384xbf16, #tpu.memory_space<vmem>>, %arg4: memref<128x256xbf16, #tpu.memory_space<vmem>>, %arg5: memref<1x384xf32, #tpu.memory_space<vmem>>, %arg6: memref<1x256xf32, #tpu.memory_space<vmem>>, %arg7: memref<1x1xf32, #tpu.memory_space<smem>>, %arg8: memref<1x256x128xf32, #tpu.memory_space<vmem>>) attributes {dimension_semantics = [#tpu.dimension_semantics<parallel>], iteration_bounds = array<i64: 2>, scalar_prefetch = 0 : i64, scratch_operands = 0 : i64, tpu.core_type = #tpu.core_type<tc>, window_params = [{transform_indices = @transform_0, window_bounds = array<i64: 1, 256, 128>}, {transform_indices = @transform_1, window_bounds = array<i64: 1, 256, 128>}, {pipeline_mode = #tpu.pipeline_mode<synchronous>, transform_indices = @transform_2, window_bounds = array<i64: 128, 384>}, {pipeline_mode = #tpu.pipeline_mode<synchronous>, transform_indices = @transform_3, window_bounds = array<i64: 128, 256>}, {pipeline_mode = #tpu.pipeline_mode<synchronous>, transform_indices = @transform_4, window_bounds = array<i64: 1, 384>}, {pipeline_mode = #tpu.pipeline_mode<synchronous>, transform_indices = @transform_5, window_bounds = array<i64: 1, 256>}, {transform_indices = @transform_6, window_bounds = array<i64: 1, 1>}, {transform_indices = @transform_7, window_bounds = array<i64: 1, 256, 128>}]} {
    %c0 = arith.constant 0 : index
    %c0_0 = arith.constant 0 : index
    %c0_1 = arith.constant 0 : index
    %0 = vector.load %arg1[%c0, %c0_0, %c0_1] : memref<1x256x128xf32, #tpu.memory_space<vmem>>, vector<1x256x128xf32>
    %1 = vector.shape_cast %0 : vector<1x256x128xf32> to vector<256x128xf32>
    %c0_2 = arith.constant 0 : index
    %c0_3 = arith.constant 0 : index
    %c0_4 = arith.constant 0 : index
    %2 = vector.load %arg2[%c0_2, %c0_3, %c0_4] : memref<1x256x128xf32, #tpu.memory_space<vmem>>, vector<1x256x128xf32>
    %3 = vector.shape_cast %2 : vector<1x256x128xf32> to vector<256x128xf32>
    %4 = arith.truncf %1 : vector<256x128xf32> to vector<256x128xbf16>
    %5 = arith.truncf %3 : vector<256x128xf32> to vector<256x128xbf16>
    %c0_5 = arith.constant 0 : index
    %c0_6 = arith.constant 0 : index
    %6 = vector.load %arg3[%c0_5, %c0_6] : memref<128x384xbf16, #tpu.memory_space<vmem>>, vector<128x384xbf16>
    %cst = arith.constant dense<0.000000e+00> : vector<256x384xf32>
    %7 = tpu.matmul %4, %6, %cst {dimension_numbers = #tpu.dot_dimension_numbers<[1], [0], [0], [1], [0, 0, 1, 1], [], []>} : vector<256x128xbf16>, vector<128x384xbf16>, vector<256x384xf32> -> vector<256x384xf32>
    %c0_7 = arith.constant 0 : index
    %c0_8 = arith.constant 0 : index
    %8 = vector.load %arg5[%c0_7, %c0_8] : memref<1x384xf32, #tpu.memory_space<vmem>>, vector<1x384xf32>
    %9 = vector.broadcast %8 : vector<1x384xf32> to vector<256x384xf32>
    %10 = arith.addf %7, %9 : vector<256x384xf32>
    %11 = vector.extract_strided_slice %10 {offsets = [0, 0], sizes = [256, 128], strides = [1, 1]} : vector<256x384xf32> to vector<256x128xf32>
    %12 = vector.extract_strided_slice %10 {offsets = [0, 128], sizes = [256, 128], strides = [1, 1]} : vector<256x384xf32> to vector<256x128xf32>
    %13 = vector.extract_strided_slice %10 {offsets = [0, 256], sizes = [256, 128], strides = [1, 1]} : vector<256x384xf32> to vector<256x128xf32>
    %c0_9 = arith.constant 0 : index
    %c0_10 = arith.constant 0 : index
    %14 = vector.load %arg4[%c0_9, %c0_10] : memref<128x256xbf16, #tpu.memory_space<vmem>>, vector<128x256xbf16>
    %cst_11 = arith.constant dense<0.000000e+00> : vector<256x256xf32>
    %15 = tpu.matmul %5, %14, %cst_11 {dimension_numbers = #tpu.dot_dimension_numbers<[1], [0], [0], [1], [0, 0, 1, 1], [], []>} : vector<256x128xbf16>, vector<128x256xbf16>, vector<256x256xf32> -> vector<256x256xf32>
    %c0_12 = arith.constant 0 : index
    %c0_13 = arith.constant 0 : index
    %16 = vector.load %arg6[%c0_12, %c0_13] : memref<1x256xf32, #tpu.memory_space<vmem>>, vector<1x256xf32>
    %17 = vector.broadcast %16 : vector<1x256xf32> to vector<256x256xf32>
    %18 = arith.addf %15, %17 : vector<256x256xf32>
    %19 = vector.extract_strided_slice %18 {offsets = [0, 0], sizes = [256, 128], strides = [1, 1]} : vector<256x256xf32> to vector<256x128xf32>
    %20 = vector.extract_strided_slice %18 {offsets = [0, 128], sizes = [256, 128], strides = [1, 1]} : vector<256x256xf32> to vector<256x128xf32>
    %21 = arith.truncf %11 : vector<256x128xf32> to vector<256x128xbf16>
    %22 = arith.truncf %12 : vector<256x128xf32> to vector<256x128xbf16>
    %cst_14 = arith.constant dense<0.000000e+00> : vector<256x256xf32>
    %23 = tpu.matmul %21, %22, %cst_14 {dimension_numbers = #tpu.dot_dimension_numbers<[1], [1], [0], [0], [0, 0, 1, 0], [], []>} : vector<256x128xbf16>, vector<256x128xbf16>, vector<256x256xf32> -> vector<256x256xf32>
    %cst_15 = arith.constant dense<0xFF800000> : vector<256xf32>
    %24 = vector.multi_reduction <maximumf>, %23, %cst_15 [1] : vector<256x256xf32> to vector<256xf32>
    %25 = vector.shape_cast %24 : vector<256xf32> to vector<256x1xf32>
    %26 = vector.broadcast %25 : vector<256x1xf32> to vector<256x256xf32>
    %27 = arith.subf %23, %26 : vector<256x256xf32>
    %28 = math.exp %27 : vector<256x256xf32>
    %cst_16 = arith.constant dense<0.000000e+00> : vector<256xf32>
    %29 = vector.multi_reduction <add>, %28, %cst_16 [1] : vector<256x256xf32> to vector<256xf32>
    %30 = vector.shape_cast %29 : vector<256xf32> to vector<256x1xf32>
    %31 = tpu.reciprocal %30 {approx = true} : vector<256x1xf32> -> vector<256x1xf32>
    %32 = vector.broadcast %31 : vector<256x1xf32> to vector<256x256xf32>
    %33 = arith.mulf %28, %32 : vector<256x256xf32>
    %34 = arith.truncf %19 : vector<256x128xf32> to vector<256x128xbf16>
    %35 = arith.truncf %20 : vector<256x128xf32> to vector<256x128xbf16>
    %cst_17 = arith.constant dense<0.000000e+00> : vector<256x256xf32>
    %36 = tpu.matmul %34, %35, %cst_17 {dimension_numbers = #tpu.dot_dimension_numbers<[1], [1], [0], [0], [0, 0, 1, 0], [], []>} : vector<256x128xbf16>, vector<256x128xbf16>, vector<256x256xf32> -> vector<256x256xf32>
    %cst_18 = arith.constant dense<0xFF800000> : vector<256xf32>
    %37 = vector.multi_reduction <maximumf>, %36, %cst_18 [1] : vector<256x256xf32> to vector<256xf32>
    %38 = vector.shape_cast %37 : vector<256xf32> to vector<256x1xf32>
    %39 = vector.broadcast %38 : vector<256x1xf32> to vector<256x256xf32>
    %40 = arith.subf %36, %39 : vector<256x256xf32>
    %41 = math.exp %40 : vector<256x256xf32>
    %cst_19 = arith.constant dense<0.000000e+00> : vector<256xf32>
    %42 = vector.multi_reduction <add>, %41, %cst_19 [1] : vector<256x256xf32> to vector<256xf32>
    %43 = vector.shape_cast %42 : vector<256xf32> to vector<256x1xf32>
    %44 = tpu.reciprocal %43 {approx = true} : vector<256x1xf32> -> vector<256x1xf32>
    %45 = vector.broadcast %44 : vector<256x1xf32> to vector<256x256xf32>
    %46 = arith.mulf %41, %45 : vector<256x256xf32>
    %47 = arith.truncf %33 : vector<256x256xf32> to vector<256x256xbf16>
    %48 = arith.truncf %46 : vector<256x256xf32> to vector<256x256xbf16>
    %cst_20 = arith.constant dense<0.000000e+00> : vector<256x256xf32>
    %49 = tpu.matmul %47, %48, %cst_20 {dimension_numbers = #tpu.dot_dimension_numbers<[1], [0], [0], [1], [0, 0, 1, 1], [], []>} : vector<256x256xbf16>, vector<256x256xbf16>, vector<256x256xf32> -> vector<256x256xf32>
    %cst_21 = arith.constant dense<0xFF800000> : vector<256xf32>
    %50 = vector.multi_reduction <maximumf>, %49, %cst_21 [1] : vector<256x256xf32> to vector<256xf32>
    %51 = vector.shape_cast %50 : vector<256xf32> to vector<256x1xf32>
    %52 = vector.broadcast %51 : vector<256x1xf32> to vector<256x256xf32>
    %53 = arith.subf %49, %52 : vector<256x256xf32>
    %54 = math.exp %53 : vector<256x256xf32>
    %cst_22 = arith.constant dense<0.000000e+00> : vector<256xf32>
    %55 = vector.multi_reduction <add>, %54, %cst_22 [1] : vector<256x256xf32> to vector<256xf32>
    %56 = vector.shape_cast %55 : vector<256xf32> to vector<256x1xf32>
    %57 = tpu.reciprocal %56 {approx = true} : vector<256x1xf32> -> vector<256x1xf32>
    %58 = vector.broadcast %57 : vector<256x1xf32> to vector<256x256xf32>
    %59 = arith.mulf %54, %58 : vector<256x256xf32>
    %60 = arith.truncf %59 : vector<256x256xf32> to vector<256x256xbf16>
    %61 = arith.truncf %13 : vector<256x128xf32> to vector<256x128xbf16>
    %cst_23 = arith.constant dense<0.000000e+00> : vector<256x128xf32>
    %62 = tpu.matmul %60, %61, %cst_23 {dimension_numbers = #tpu.dot_dimension_numbers<[1], [0], [0], [1], [0, 0, 1, 1], [], []>} : vector<256x256xbf16>, vector<256x128xbf16>, vector<256x128xf32> -> vector<256x128xf32>
    %c0_24 = arith.constant 0 : index
    %c0_25 = arith.constant 0 : index
    %63 = memref.load %arg7[%c0_24, %c0_25] : memref<1x1xf32, #tpu.memory_space<smem>>
    %64 = vector.broadcast %63 : f32 to vector<256x128xf32>
    %65 = arith.mulf %64, %62 : vector<256x128xf32>
    %66 = arith.addf %65, %1 : vector<256x128xf32>
    %c0_26 = arith.constant 0 : index
    %c0_27 = arith.constant 0 : index
    %c0_28 = arith.constant 0 : index
    %67 = vector.load %arg8[%c0_26, %c0_27, %c0_28] : memref<1x256x128xf32, #tpu.memory_space<vmem>>, vector<1x256x128xf32>
    %68 = vector.shape_cast %67 : vector<1x256x128xf32> to vector<256x128xf32>
    %69 = vector.shape_cast %66 : vector<256x128xf32> to vector<1x256x128xf32>
    tpu.vector_store %arg8[%c0_26, %c0_27, %c0_28], %69 {strides = array<i32>} : memref<1x256x128xf32, #tpu.memory_space<vmem>>, vector<1x256x128xf32>,
    return
  }
  func.func @transform_0(%arg0: i32) -> (i32, i32, i32) {
    %c0_i32 = arith.constant 0 : i32
    %c0_i32_0 = arith.constant 0 : i32
    %c0_i32_1 = arith.constant 0 : i32
    return %arg0, %c0_i32, %c0_i32_0 : i32, i32, i32
  }
  func.func @transform_1(%arg0: i32) -> (i32, i32, i32) {
    %c0_i32 = arith.constant 0 : i32
    %c0_i32_0 = arith.constant 0 : i32
    %c0_i32_1 = arith.constant 0 : i32
    return %arg0, %c0_i32, %c0_i32_0 : i32, i32, i32
  }
  func.func @transform_2(%arg0: i32) -> (i32, i32) {
    %c0_i32 = arith.constant 0 : i32
    %c0_i32_0 = arith.constant 0 : i32
    %c0_i32_1 = arith.constant 0 : i32
    return %c0_i32, %c0_i32_0 : i32, i32
  }
  func.func @transform_3(%arg0: i32) -> (i32, i32) {
    %c0_i32 = arith.constant 0 : i32
    %c0_i32_0 = arith.constant 0 : i32
    %c0_i32_1 = arith.constant 0 : i32
    return %c0_i32, %c0_i32_0 : i32, i32
  }
  func.func @transform_4(%arg0: i32) -> (i32, i32) {
    %c0_i32 = arith.constant 0 : i32
    %c0_i32_0 = arith.constant 0 : i32
    %c0_i32_1 = arith.constant 0 : i32
    return %c0_i32, %c0_i32_0 : i32, i32
  }
  func.func @transform_5(%arg0: i32) -> (i32, i32) {
    %c0_i32 = arith.constant 0 : i32
    %c0_i32_0 = arith.constant 0 : i32
    %c0_i32_1 = arith.constant 0 : i32
    return %c0_i32, %c0_i32_0 : i32, i32
  }
  func.func @transform_6(%arg0: i32) -> (i32, i32) {
    %c0_i32 = arith.constant 0 : i32
    %c0_i32_0 = arith.constant 0 : i32
    %c0_i32_1 = arith.constant 0 : i32
    return %c0_i32, %c0_i32_0 : i32, i32
  }
  func.func @transform_7(%arg0: i32) -> (i32, i32, i32) {
    %c0_i32 = arith.constant 0 : i32
    %c0_i32_0 = arith.constant 0 : i32
    %c0_i32_1 = arith.constant 0 : i32
    return %arg0, %c0_i32, %c0_i32_0 : i32, i32, i32
  }
}

</mosaic_0001>

<bundles_post_ra>
// kernel: g_pam_forward.1
= control target key start
LH: loop header
LB: loop body
LE: loop exit
PB: predicated region body
PF: predicated region fallthrough
CT: control target
= control target key end

     0   :  { %s4827_s26 = smov 0   ;;  %s7426_s0 = inlined_call_operand.vmem [shape: f32[2,256,128], index: 0, kind: input, shape index: {}]   ;;  %s7427_s1 = inlined_call_operand.vmem [shape: f32[2,256,128], index: 1, kind: input, shape index: {}]   ;;  %s7428_s2 = inlined_call_operand.vmem [shape: bf16[128,384], index: 2, kind: input, shape index: {}]   ;;  %s7429_s3 = inlined_call_operand.vmem [shape: bf16[128,256], index: 3, kind: input, shape index: {}]   ;;  %s7430_s4 = inlined_call_operand.vmem [shape: f32[1,384], index: 4, kind: input, shape index: {}]   ;;  %s7431_s5 = inlined_call_operand.vmem [shape: f32[1,256], index: 5, kind: input, shape index: {}]   ;;  %s7432_s6 = inlined_call_operand.<no memory space> [shape: f32[1,1], index: 6, kind: input, shape index: {}]   ;;  %s7433_s7 = inlined_call_operand.vmem [shape: f32[2,256,128], index: 7, kind: output, shape index: {}]  }
   0x1   :  { %12 = sst [smem:[#allocation2]] %s7432_s6 }
   0x2 LB: > { %s3750_s27 = sadd.s32 4294967295, %s4781_s26   ;;  %p3754_p0 = scmp.ge.s32.totalorder %s4781_s26, 1  ;;  %s4781_s26 = sphi %s4827_s26, %s18_s26  }
   0x3   : > { %p248_p1 = scmp.lt.s32.totalorder %s4781_s26, 3 }
   0x5   : > { %p249_p2 = pnand %p3754_p0, %p248_p1 }
   0x7   : > { %252 = sbr.rel (%p249_p2) target bundleno = 2065 (0x811), region = 48 }
   0xe   : > { %v4111_v0 = vld [vmem:[%s7428_s2 + $0x4] ss:$12 sps:$4 sm:$0xff]   ;;  %v4113_v1 = vld [vmem:[%s7428_s2 + $0x8] ss:$12 sps:$4 sm:$0xff]   ;;  %v4783_v2 = vmov 0   ;;  %p285_p3 = scmp.lt.s32.totalorder %s3750_s27, 1 }
   0xf   : > { %606 = vmatprep.mubr.bf16.mxu0 %v4783_v2  ;;  %574 = vmatprep.subr.bf16.mxu0 %v4111_v0  ;;  %v4114_v3 = vld [vmem:[%s7428_s2] ss:$12 sps:$4 sm:$0xff]   ;;  %v4115_v4 = vld [vmem:[%s7428_s2 + $0x1c] ss:$12 sps:$4 sm:$0xff]   ;;  %v4118_v6 = vld [vmem:[%s7428_s2 + $0x18] ss:$12 sps:$4 sm:$0xff]  }
  0x10   : > { %4038 = vmatprep.subr.bf16.mxu1 %v4113_v1  ;;  %575 = vmatpush1.bf16.msra.mxu0 %v4114_v3  ;;  %v4117_v5 = vld [vmem:[%s7428_s2 + $0x20] ss:$12 sps:$4 sm:$0xff]   ;;  %v4121_v8 = vld [vmem:[%s7428_s2 + $0x38] ss:$12 sps:$4 sm:$0xff]   ;;  %v4122_v9 = vld [vmem:[%s7428_s2 + $0x30] ss:$12 sps:$4 sm:$0xff]  }
  0x11   : > { %4039 = vmatpush3.bf16.msra.mxu1 %v4113_v1  ;;  %576 = vmatprep.subr.bf16.mxu0 %v4115_v4  ;;  %v4119_v7 = vld [vmem:[%s7428_s2 + $0x34] ss:$12 sps:$4 sm:$0xff]   ;;  %s8076_s27 = smov (!%p285_p3, %s3750_s27), 1  ;;  %v4123_v10 = vld [vmem:[%s7428_s2 + $0x4c] ss:$12 sps:$4 sm:$0xff]   ;;  %s3585_s9 = sld [smem:[#allocation2]] }
  0x12   : > { %4040 = vmatprep.subr.bf16.mxu1 %v4117_v5  ;;  %v4125_v11 = vld [vmem:[%s7428_s2 + $0x50] ss:$12 sps:$4 sm:$0xff]   ;;  %v4126_v12 = vld [vmem:[%s7428_s2 + $0x48] ss:$12 sps:$4 sm:$0xff]   ;;  %s4872_s6 = sshll.u32 %s8076_s27, 8 }
  0x13   : > { %v4127_v13 = vld [vmem:[%s7428_s2 + $0x64] ss:$12 sps:$4 sm:$0xff]   ;;  %v4129_v14 = vld [vmem:[%s7428_s2 + $0x68] ss:$12 sps:$4 sm:$0xff]   ;;  %v4130_v15 = vld [vmem:[%s7428_s2 + $0x60] ss:$12 sps:$4 sm:$0xff]   ;;  %s4887_s27 = scalar_lea.vmem %s7426_s0, %s4872_s6  ;;  %s5012_s25 = scalar_lea.vmem %s7427_s1, %s4872_s6 }
  0x14   : > { %577 = vmatpush1.bf16.msra.mxu0 %v4118_v6  ;;  %v4131_v16 = vld [vmem:[%s7428_s2 + $0x7c] ss:$12 sps:$4 sm:$0xff]   ;;  %v4133_v17 = vld [vmem:[%s7428_s2 + $0x80] ss:$12 sps:$4 sm:$0xff]   ;;  %v4134_v20 = vld [vmem:[%s7428_s2 + $0x78] ss:$12 sps:$4 sm:$0xff]   ;;  %s7326_s12 = scalar_lea.vmem %s7433_s7, %s4872_s6 }
  0x15   : > { %4041 = vmatpush3.bf16.msra.mxu1 %v4117_v5  ;;  %578 = vmatprep.subr.bf16.mxu0 %v4119_v7  ;;  %v301_v18 = vld [vmem:[%s4887_s27] sm:$0xff]  ;;  %v302_v19 = vld [vmem:[%s4887_s27 + $0x8] sm:$0xff]  ;;  %v4138_v24 = vld [vmem:[%s7428_s2 + $0x90] ss:$12 sps:$4 sm:$0xff]  }
  0x16   : > { %4042 = vmatprep.subr.bf16.mxu1 %v4121_v8  ;;  %v365_v21 = vpack.c.bf16 %v302_v19, %v301_v18  ;;  %v4135_v22 = vld [vmem:[%s7428_s2 + $0x94] ss:$12 sps:$4 sm:$0xff]   ;;  %v4137_v23 = vld [vmem:[%s7428_s2 + $0x98] ss:$12 sps:$4 sm:$0xff]   ;;  %v4141_v26 = vld [vmem:[%s7428_s2 + $0xb0] ss:$12 sps:$4 sm:$0xff]  }
  0x17   : > { %v4139_v25 = vld [vmem:[%s7428_s2 + $0xac] ss:$12 sps:$4 sm:$0xff]   ;;  %v4142_v27 = vld [vmem:[%s7428_s2 + $0xa8] ss:$12 sps:$4 sm:$0xff]   ;;  %v305_v30 = vld [vmem:[%s4887_s27 + $0x20] sm:$0xff] }
  0x18   : > { %579 = vmatpush1.bf16.msra.mxu0 %v4122_v9  ;;  %4054 = vmatprep.mubr.bf16.mxu1 %v365_v21  ;;  %v303_v28 = vld [vmem:[%s4887_s27 + $0x10] sm:$0xff]  ;;  %v304_v29 = vld [vmem:[%s4887_s27 + $0x18] sm:$0xff]  ;;  %v306_v31 = vld [vmem:[%s4887_s27 + $0x28] sm:$0xff] }
  0x19   : > { %4043 = vmatpush3.bf16.msra.mxu1 %v4121_v8  ;;  %580 = vmatprep.subr.bf16.mxu0 %v4123_v10  ;;  %v4145_v32 = vld [vmem:[%s7429_s3 + $0x4] ss:$8 sps:$4 sm:$0xff]   ;;  %v366_v33 = vpack.c.bf16 %v304_v29, %v303_v28  ;;  %v367_v34 = vpack.c.bf16 %v306_v31, %v305_v30  ;;  %v4143_v35 = vld [vmem:[%s7429_s3] ss:$8 sps:$4 sm:$0xff]   ;;  %v4148_v36 = vld [vmem:[%s7429_s3 + $0x14] ss:$8 sps:$4 sm:$0xff]  }
  0x1a   : > { %4044 = vmatprep.subr.bf16.mxu1 %v4125_v11  ;;  %v307_v37 = vld [vmem:[%s4887_s27 + $0x30] sm:$0xff]  ;;  %v308_v38 = vld [vmem:[%s4887_s27 + $0x38] sm:$0xff]  ;;  %v309_v39 = vld [vmem:[%s4887_s27 + $0x40] sm:$0xff] }
  0x1b   : > { %v310_v40 = vld [vmem:[%s4887_s27 + $0x48] sm:$0xff]  ;;  %v4146_v41 = vld [vmem:[%s7429_s3 + $0x10] ss:$8 sps:$4 sm:$0xff]   ;;  %v368_v43 = vpack.c.bf16 %v308_v38, %v307_v37  ;;  %v4154_v46 = vld [vmem:[%s7429_s3 + $0x34] ss:$8 sps:$4 sm:$0xff]  }
  0x1c   : > { %581 = vmatpush1.bf16.msra.mxu0 %v4126_v12  ;;  %v4151_v42 = vld [vmem:[%s7429_s3 + $0x24] ss:$8 sps:$4 sm:$0xff]   ;;  %v369_v44 = vpack.c.bf16 %v310_v40, %v309_v39  ;;  %v4149_v45 = vld [vmem:[%s7429_s3 + $0x20] ss:$8 sps:$4 sm:$0xff]   ;;  %v311_v47 = vld [vmem:[%s4887_s27 + $0x50] sm:$0xff] }
  0x1d   : > { %4045 = vmatpush3.bf16.msra.mxu1 %v4125_v11  ;;  %582 = vmatprep.subr.bf16.mxu0 %v4127_v13  ;;  %v312_v48 = vld [vmem:[%s4887_s27 + $0x58] sm:$0xff]  ;;  %v313_v49 = vld [vmem:[%s4887_s27 + $0x60] sm:$0xff]  ;;  %v314_v50 = vld [vmem:[%s4887_s27 + $0x68] sm:$0xff] }
  0x1e   : > { %4046 = vmatprep.subr.bf16.mxu1 %v4129_v14  ;;  %v4152_v51 = vld [vmem:[%s7429_s3 + $0x30] ss:$8 sps:$4 sm:$0xff]   ;;  %v4157_v52 = vld [vmem:[%s7429_s3 + $0x44] ss:$8 sps:$4 sm:$0xff]   ;;  %v370_v53 = vpack.c.bf16 %v312_v48, %v311_v47  ;;  %v371_v54 = vpack.c.bf16 %v314_v50, %v313_v49  ;;  %v4155_v55 = vld [vmem:[%s7429_s3 + $0x40] ss:$8 sps:$4 sm:$0xff]  }
  0x1f   : > { %v4160_v56 = vld [vmem:[%s7429_s3 + $0x54] ss:$8 sps:$4 sm:$0xff]   ;;  %v317_v59 = vld [vmem:[%s4887_s27 + $0x80] sm:$0xff]  ;;  %v318_v60 = vld [vmem:[%s4887_s27 + $0x88] sm:$0xff] }
  0x20   : > { %583 = vmatpush1.bf16.msra.mxu0 %v4130_v15  ;;  %v315_v57 = vld [vmem:[%s4887_s27 + $0x70] sm:$0xff]  ;;  %v316_v58 = vld [vmem:[%s4887_s27 + $0x78] sm:$0xff]  ;;  %v4163_v62 = vld [vmem:[%s7429_s3 + $0x64] ss:$8 sps:$4 sm:$0xff]   ;;  %v373_v0 = vpack.c.bf16 %v318_v60, %v317_v59 }
  0x21   : > { %4047 = vmatpush3.bf16.msra.mxu1 %v4129_v14  ;;  %584 = vmatprep.subr.bf16.mxu0 %v4131_v16  ;;  %v4158_v61 = vld [vmem:[%s7429_s3 + $0x50] ss:$8 sps:$4 sm:$0xff]   ;;  %v372_v63 = vpack.c.bf16 %v316_v58, %v315_v57  ;;  %v4161_v1 = vld [vmem:[%s7429_s3 + $0x60] ss:$8 sps:$4 sm:$0xff]   ;;  %v4166_v3 = vld [vmem:[%s7429_s3 + $0x74] ss:$8 sps:$4 sm:$0xff]  }
  0x22   : > { %4048 = vmatprep.subr.bf16.mxu1 %v4133_v17  ;;  %v319_v4 = vld [vmem:[%s4887_s27 + $0x90] sm:$0xff]  ;;  %v320_v5 = vld [vmem:[%s4887_s27 + $0x98] sm:$0xff]  ;;  %v321_v6 = vld [vmem:[%s4887_s27 + $0xa0] sm:$0xff] }
  0x23   : > { %v322_v7 = vld [vmem:[%s4887_s27 + $0xa8] sm:$0xff]  ;;  %v4164_v8 = vld [vmem:[%s7429_s3 + $0x70] ss:$8 sps:$4 sm:$0xff]   ;;  %v374_v9 = vpack.c.bf16 %v320_v5, %v319_v4  ;;  %v325_v13 = vld [vmem:[%s4887_s27 + $0xc0] sm:$0xff] }
  0x24   : > { %585 = vmatpush1.bf16.msra.mxu0 %v4134_v20  ;;  %v375_v10 = vpack.c.bf16 %v322_v7, %v321_v6  ;;  %v323_v11 = vld [vmem:[%s4887_s27 + $0xb0] sm:$0xff]  ;;  %v324_v12 = vld [vmem:[%s4887_s27 + $0xb8] sm:$0xff]  ;;  %v326_v14 = vld [vmem:[%s4887_s27 + $0xc8] sm:$0xff] }
  0x25   : > { %4049 = vmatpush3.bf16.msra.mxu1 %v4133_v17  ;;  %586 = vmatprep.subr.bf16.mxu0 %v4135_v22  ;;  %v376_v15 = vpack.c.bf16 %v324_v12, %v323_v11  ;;  %v377_v16 = vpack.c.bf16 %v326_v14, %v325_v13  ;;  %v327_v17 = vld [vmem:[%s4887_s27 + $0xd0] sm:$0xff]  ;;  %v328_v18 = vld [vmem:[%s4887_s27 + $0xd8] sm:$0xff]  ;;  %v329_v19 = vld [vmem:[%s4887_s27 + $0xe0] sm:$0xff] }
  0x26   : > { %4050 = vmatprep.subr.bf16.mxu1 %v4137_v23  ;;  %v330_v20 = vld [vmem:[%s4887_s27 + $0xe8] sm:$0xff]  ;;  %v5024_v30 = vld [vmem:[%s7430_s4] sm:$0x7]  ;;  %v339_v40 = vld [vmem:[%s5012_s25 + $0x30] sm:$0xff] }
  0x27   : > { %v5000_v22 = vpack.c.bf16 %v330_v20, %v329_v19  ;;  %v334_v28 = vld [vmem:[%s5012_s25 + $0x8] sm:$0xff]  ;;  %v337_v37 = vld [vmem:[%s5012_s25 + $0x20] sm:$0xff]  ;;  %v344_v47 = vld [vmem:[%s5012_s25 + $0x58] sm:$0xff] }
  0x28   : > { %587 = vmatpush1.bf16.msra.mxu0 %v4138_v24  ;;  %v332_v24 = vld [vmem:[%s4887_s27 + $0xf8] sm:$0xff]  ;;  %v338_v38 = vld [vmem:[%s5012_s25 + $0x28] sm:$0xff]  ;;  %v345_v49 = vld [vmem:[%s5012_s25 + $0x60] sm:$0xff] }
  0x29   : > { %4051 = vmatpush3.bf16.msra.mxu1 %v4137_v23  ;;  %588 = vmatprep.subr.bf16.mxu0 %v4139_v25  ;;  %v331_v23 = vld [vmem:[%s4887_s27 + $0xf0] sm:$0xff]  ;;  %v383_v39 = vpack.c.bf16 %v338_v38, %v337_v37  ;;  %v346_v50 = vld [vmem:[%s5012_s25 + $0x68] sm:$0xff]  ;;  %v349_v57 = vld [vmem:[%s5012_s25 + $0x80] sm:$0xff] }
  0x2a   : > { %4052 = vmatprep.subr.bf16.mxu1 %v4141_v26  ;;  %v5006_v25 = vpack.c.bf16 %v332_v24, %v331_v23  ;;  %v350_v58 = vld [vmem:[%s5012_s25 + $0x88] sm:$0xff]  ;;  %v351_v60 = vld [vmem:[%s5012_s25 + $0x90] sm:$0xff]  ;;  %v356_v4 = vld [vmem:[%s5012_s25 + $0xb8] sm:$0xff] }
  0x2b   : > { %v389_v59 = vpack.c.bf16 %v350_v58, %v349_v57  ;;  %v5079_v5 = vld [vmem:[%s7431_s5] sm:$0x3]  ;;  %v359_v11 = vld [vmem:[%s5012_s25 + $0xd0] sm:$0xff]  ;;  %v360_v12 = vld [vmem:[%s5012_s25 + $0xd8] sm:$0xff] }
  0x2c   : > { %589 = vmatpush1.bf16.msra.mxu0 %v4142_v27  ;;  %v333_v27 = vld [vmem:[%s5012_s25] sm:$0xff]  ;;  %v394_v13 = vpack.c.bf16 %v360_v12, %v359_v11 }
  0x2d   : > { %4053 = vmatpush3.bf16.msra.mxu1 %v4141_v26  ;;  %v431_v26 = vlaneseq  ;;  %v381_v31 = vpack.c.bf16 %v334_v28, %v333_v27  ;;  %v361_v14 = vld [vmem:[%s5012_s25 + $0xe0] sm:$0xff] }
  0x2e   : > { %1036 = vmatprep.subr.bf16.mxu1 %v4145_v32 }
  0x2f   : > { %607 = vmatmul.mubr.bf16.vlgmr.msra.gmra.mrb[0].mxu0 %v365_v21  ;;  %v378_v21 = vpack.c.bf16 %v328_v18, %v327_v17  ;;  %v5019_v29 = vshrl.u32 %v431_v26, 7  ;;  %v363_v17 = vld [vmem:[%s5012_s25 + $0xf0] sm:$0xff]  ;;  %v364_v18 = vld [vmem:[%s5012_s25 + $0xf8] sm:$0xff] }
  0x30   : > { %4055 = vmatmul.mubr.bf16.vlgmr.msra.gmra.mrb[0].mxu1 %v366_v33  ;;  %616 = vmatprep.mubr.bf16.mxu0 %v4783_v2  ;;  %v396_v19 = vpack.c.bf16 %v364_v18, %v363_v17 }
  0x31   : > { %4058 = vmatprep.mubr.bf16.mxu1 %v367_v34  ;;  %1037 = vmatpush1.bf16.msra.mxu1 %v4143_v35  ;;  %v441_v32 = vsub.s32 2, %v5019_v29  ;;  %v336_v35 = vld [vmem:[%s5012_s25 + $0x18] sm:$0xff]  ;;  %v433_v20 = vsub.s32 0, %v5019_v29 }
  0x32   : > { %1038 = vmatprep.subr.bf16.mxu1 %v4148_v36 }
  0x35   : > { %1039 = vmatpush1.bf16.msra.mxu1 %v4146_v41  ;;  %v340_v41 = vld [vmem:[%s5012_s25 + $0x38] sm:$0xff] }
  0x36   : > { %1040 = vmatprep.subr.bf16.mxu1 %v4151_v42  ;;  %v384_v42 = vpack.c.bf16 %v340_v41, %v339_v40 }
  0x37   : > { %617 = vmatmul.mubr.bf16.gmra.mrb[4].mxu0 %v366_v33  ;;  %v5028_v33 = vrot.slane %v5024_v30, %v441_v32 }
  0x38   : > { %4059 = vmatmul.mubr.bf16.gmra.mrb[4].mxu1 %v368_v43  ;;  %626 = vmatprep.mubr.bf16.mxu0 %v4783_v2 }
  0x39   : > { %4062 = vmatprep.mubr.bf16.mxu1 %v369_v44  ;;  %1041 = vmatpush1.bf16.msra.mxu1 %v4149_v45 }
  0x3a   : > { %1042 = vmatprep.subr.bf16.mxu1 %v4154_v46  ;;  %v343_v46 = vld [vmem:[%s5012_s25 + $0x50] sm:$0xff] }
  0x3b   : > { %v386_v48 = vpack.c.bf16 %v344_v47, %v343_v46 }
  0x3d   : > { %1043 = vmatpush1.bf16.msra.mxu1 %v4152_v51  ;;  %v387_v51 = vpack.c.bf16 %v346_v50, %v345_v49 }
  0x3e   : > { %1044 = vmatprep.subr.bf16.mxu1 %v4157_v52  ;;  %v347_v52 = vld [vmem:[%s5012_s25 + $0x70] sm:$0xff] }
  0x3f   : > { %627 = vmatmul.mubr.bf16.gmra.mrb[8].mxu0 %v367_v34  ;;  %v335_v34 = vld [vmem:[%s5012_s25 + $0x10] sm:$0xff] }
  0x40   : > { %4063 = vmatmul.mubr.bf16.gmra.mrb[8].mxu1 %v370_v53  ;;  %636 = vmatprep.mubr.bf16.mxu0 %v4783_v2  ;;  %v382_v36 = vpack.c.bf16 %v336_v35, %v335_v34 }
  0x41   : > { %4066 = vmatprep.mubr.bf16.mxu1 %v371_v54  ;;  %1045 = vmatpush1.bf16.msra.mxu1 %v4155_v55  ;;  %v437_v55 = vsub.s32 1, %v5019_v29 }
  0x42   : > { %1046 = vmatprep.subr.bf16.mxu1 %v4160_v56 }
  0x43   : > { %v5061_v56 = vrot.slane %v5024_v30, %v437_v55  ;;  %v5082_v6 = vrot.slane %v5079_v5, %v437_v55 }
  0x45   : > { %1047 = vmatpush1.bf16.msra.mxu1 %v4158_v61  ;;  %v352_v61 = vld [vmem:[%s5012_s25 + $0x98] sm:$0xff] }
  0x46   : > { %1048 = vmatprep.subr.bf16.mxu1 %v4163_v62  ;;  %v390_v62 = vpack.c.bf16 %v352_v61, %v351_v60 }
  0x47   : > { %637 = vmatmul.mubr.bf16.gmra.mrb[12].mxu0 %v368_v43  ;;  %v341_v43 = vld [vmem:[%s5012_s25 + $0x40] sm:$0xff] }
  0x48   : > { %4067 = vmatmul.mubr.bf16.gmra.mrb[12].mxu1 %v372_v63  ;;  %646 = vmatprep.mubr.bf16.mxu0 %v4783_v2 }
  0x49   : > { %4070 = vmatprep.mubr.bf16.mxu1 %v373_v0  ;;  %1049 = vmatpush1.bf16.msra.mxu1 %v4161_v1 }
  0x4a   : > { %1050 = vmatprep.subr.bf16.mxu1 %v4166_v3  ;;  %v355_v3 = vld [vmem:[%s5012_s25 + $0xb0] sm:$0xff] }
  0x4b   : > { %v392_v7 = vpack.c.bf16 %v356_v4, %v355_v3 }
  0x4d   : > { %1051 = vmatpush1.bf16.msra.mxu1 %v4164_v8  ;;  %v357_v8 = vld [vmem:[%s5012_s25 + $0xc0] sm:$0xff] }
  0x4f   : > { %647 = vmatmul.mubr.bf16.gmra.mrb[16].mxu0 %v369_v44  ;;  %v342_v44 = vld [vmem:[%s5012_s25 + $0x48] sm:$0xff] }
  0x50   : > { %4071 = vmatmul.mubr.bf16.gmra.mrb[16].mxu1 %v374_v9  ;;  %656 = vmatprep.mubr.bf16.mxu0 %v4783_v2  ;;  %v385_v45 = vpack.c.bf16 %v342_v44, %v341_v43 }
  0x51   : > { %4074 = vmatprep.mubr.bf16.mxu1 %v375_v10 }
  0x57   : > { %657 = vmatmul.mubr.bf16.gmra.mrb[20].mxu0 %v370_v53  ;;  %v348_v53 = vld [vmem:[%s5012_s25 + $0x78] sm:$0xff] }
  0x58   : > { %4075 = vmatmul.mubr.bf16.gmra.mrb[20].mxu1 %v376_v15  ;;  %666 = vmatprep.mubr.bf16.mxu0 %v4783_v2 }
  0x59   : > { %4078 = vmatprep.mubr.bf16.mxu1 %v377_v16 }
  0x5f   : > { %667 = vmatmul.mubr.bf16.gmra.mrb[24].mxu0 %v371_v54  ;;  %v388_v54 = vpack.c.bf16 %v348_v53, %v347_v52 }
  0x60   : > { %4079 = vmatmul.mubr.bf16.gmra.mrb[24].mxu1 %v378_v21  ;;  %676 = vmatprep.mubr.bf16.mxu0 %v4783_v2 }
  0x61   : > { %4082 = vmatprep.mubr.bf16.mxu1 %v5000_v22 }
  0x67   : > { %677 = vmatmul.mubr.bf16.gmra.mrb[28].mxu0 %v372_v63  ;;  %v353_v63 = vld [vmem:[%s5012_s25 + $0xa0] sm:$0xff] }
  0x68   : > { %4083 = vmatmul.mubr.bf16.gmra.mrb[28].mxu1 %v5006_v25  ;;  %686 = vmatprep.mubr.bf16.mxu0 %v4783_v2 }
  0x69   : > { %1068 = vmatprep.mubr.bf16.mxu1 %v4783_v2 }
  0x6f   : > { %687 = vmatmul.mubr.bf16.gmra.mrb[32].mxu0 %v373_v0  ;;  %v354_v0 = vld [vmem:[%s5012_s25 + $0xa8] sm:$0xff] }
  0x70   : > { %1069 = vmatmul.mubr.bf16.vlgmr.msra.gmra.mrb[32].mxu1 %v381_v31  ;;  %696 = vmatprep.mubr.bf16.mxu0 %v4783_v2  ;;  %v391_v1 = vpack.c.bf16 %v354_v0, %v353_v63 }
  0x71   : > { %1078 = vmatprep.mubr.bf16.mxu1 %v4783_v2 }
  0x77   : > { %697 = vmatmul.mubr.bf16.gmra.mrb[36].mxu0 %v374_v9  ;;  %v358_v9 = vld [vmem:[%s5012_s25 + $0xc8] sm:$0xff] }
  0x78   : > { %1079 = vmatmul.mubr.bf16.gmra.mrb[36].mxu1 %v382_v36  ;;  %706 = vmatprep.mubr.bf16.mxu0 %v4783_v2 }
  0x79   : > { %1088 = vmatprep.mubr.bf16.mxu1 %v4783_v2 }
  0x7f   : > { %707 = vmatmul.mubr.bf16.gmra.mrb[40].mxu0 %v375_v10  ;;  %v393_v10 = vpack.c.bf16 %v358_v9, %v357_v8 }
  0x80   : > { %1089 = vmatmul.mubr.bf16.gmra.mrb[40].mxu1 %v383_v39  ;;  %716 = vmatprep.mubr.bf16.mxu0 %v4783_v2 }
  0x81   : > { %1098 = vmatprep.mubr.bf16.mxu1 %v4783_v2 }
  0x87   : > { %717 = vmatmul.mubr.bf16.gmra.mrb[44].mxu0 %v376_v15  ;;  %v362_v15 = vld [vmem:[%s5012_s25 + $0xe8] sm:$0xff] }
  0x88   : > { %1099 = vmatmul.mubr.bf16.gmra.mrb[44].mxu1 %v384_v42  ;;  %726 = vmatprep.mubr.bf16.mxu0 %v4783_v2 }
  0x89   : > { %1108 = vmatprep.mubr.bf16.mxu1 %v4783_v2 }
  0x8f   : > { %727 = vmatmul.mubr.bf16.gmra.mrb[48].mxu0 %v377_v16  ;;  %v395_v16 = vpack.c.bf16 %v362_v15, %v361_v14 }
  0x90   : > { %1109 = vmatmul.mubr.bf16.gmra.mrb[48].mxu1 %v385_v45  ;;  %736 = vmatprep.mubr.bf16.mxu0 %v4783_v2 }
  0x91   : > { %1118 = vmatprep.mubr.bf16.mxu1 %v4783_v2 }
  0x97   : > { %737 = vmatmul.mubr.bf16.gmra.mrb[52].mxu0 %v378_v21  ;;  %v5100_v21 = vrot.slane %v5024_v30, %v433_v20 }
  0x98   : > { %1119 = vmatmul.mubr.bf16.gmra.mrb[52].mxu1 %v386_v48  ;;  %746 = vmatprep.mubr.bf16.mxu0 %v4783_v2 }
  0x99   : > { %1128 = vmatprep.mubr.bf16.mxu1 %v4783_v2 }
  0x9f   : > { %747 = vmatmul.mubr.bf16.gmra.mrb[56].mxu0 %v5000_v22 }
  0xa0   : > { %1129 = vmatmul.mubr.bf16.gmra.mrb[56].mxu1 %v387_v51  ;;  %756 = vmatprep.mubr.bf16.mxu0 %v4783_v2 }
  0xa1   : > { %1138 = vmatprep.mubr.bf16.mxu1 %v4783_v2 }
  0xa7   : > { %757 = vmatmul.mubr.bf16.gmra.mrb[60].mxu0 %v5006_v25 }
  0xa8   : > { %1139 = vmatmul.mubr.bf16.gmra.mrb[60].mxu1 %v388_v54 }
  0xa9   : > { %1148 = vmatprep.mubr.bf16.mxu1 %v4783_v2 }
  0xb0   : > { %1149 = vmatmul.mubr.bf16.gmra.mrb[64].mxu1 %v389_v59 }
  0xb1   : > { %1158 = vmatprep.mubr.bf16.mxu1 %v4783_v2 }
  0xb8   : > { %1159 = vmatmul.mubr.bf16.gmra.mrb[68].mxu1 %v390_v62 }
  0xb9   : > { %1168 = vmatprep.mubr.bf16.mxu1 %v4783_v2 }
  0xc0   : > { %1169 = vmatmul.mubr.bf16.gmra.mrb[72].mxu1 %v391_v1 }
  0xc1   : > { %1178 = vmatprep.mubr.bf16.mxu1 %v4783_v2 }
  0xc8   : > { %1179 = vmatmul.mubr.bf16.gmra.mrb[76].mxu1 %v392_v7 }
  0xc9   : > { %1188 = vmatprep.mubr.bf16.mxu1 %v4783_v2 }
  0xd0   : > { %1189 = vmatmul.mubr.bf16.gmra.mrb[80].mxu1 %v393_v10 }
  0xd1   : > { %1198 = vmatprep.mubr.bf16.mxu1 %v4783_v2 }
  0xd8   : > { %1199 = vmatmul.mubr.bf16.gmra.mrb[84].mxu1 %v394_v13 }
  0xd9   : > { %1208 = vmatprep.mubr.bf16.mxu1 %v4783_v2 }
  0xe0   : > { %1209 = vmatmul.mubr.bf16.gmra.mrb[88].mxu1 %v395_v16 }
  0xe1   : > { %1218 = vmatprep.mubr.bf16.mxu1 %v4783_v2 }
  0xe8   : > { %1219 = vmatmul.mubr.bf16.gmra.mrb[92].mxu1 %v396_v19 }
 0x102   : > { %v608_v23 = vpop.f32.mrb[0].mxu0 }
 0x103   : > { %v4056_v22 = vpop.f32.mrb[0].mxu1  ;;  %v609_v26 = vadd.f32 %v608_v23, %v5100_v21  ;;  %v610_v27 = vpop.f32.mrb[1].mxu0 }
 0x104   : > { %v810_v24 = vadd.f32 %v4056_v22, %v5028_v33  ;;  %v801_v25 = vpop.f32.mrb[1].mxu1  ;;  %v5106_v31 = vadd.f32 %v610_v27, %v5061_v56  ;;  %v612_v32 = vpop.f32.mrb[2].mxu0 }
 0x105   : > { %v802_v2 = vadd.f32 %v801_v25, %v5028_v33  ;;  %v4057_v28 = vpop.f32.mrb[2].mxu1  ;;  %v613_v30 = vadd.f32 %v612_v32, %v5100_v21  ;;  %v614_v36 = vpop.f32.mrb[3].mxu0 }
 0x106   : > { %v813_v34 = vadd.f32 %v4057_v28, %v5028_v33  ;;  %v804_v35 = vpop.f32.mrb[3].mxu1  ;;  %v5112_v38 = vadd.f32 %v614_v36, %v5061_v56 }
 0x107   : > { %v805_v37 = vadd.f32 %v804_v35, %v5028_v33  ;;  %v5116_v40 = vpack.c.bf16 %v613_v30, %v609_v26 }
 0x108   : > { %v5114_v39 = vpack.c.bf16 %v813_v34, %v810_v24  ;;  %v1245_v42 = vpack.c.bf16 %v5112_v38, %v5106_v31 }
 0x109   : > { %v5118_v41 = vpack.c.bf16 %v805_v37, %v802_v2  ;;  %3846 = vmatprep.mubr.bf16.mxu0 %v5116_v40 }
 0x10a   : > { %7641 = vst [vmem:[#allocation3_spill] sm:$0xff] %v5114_v39  ;;  %v618_v44 = vpop.f32.mrb[4].mxu0 }
 0x10b   : > { %7642 = vst [vmem:[#allocation4_spill] sm:$0xff] %v5118_v41  ;;  %v4060_v43 = vpop.f32.mrb[4].mxu1  ;;  %v619_v47 = vadd.f32 %v618_v44, %v5100_v21  ;;  %v620_v48 = vpop.f32.mrb[5].mxu0 }
 0x10c   : > { %v826_v45 = vadd.f32 %v4060_v43, %v5028_v33  ;;  %v817_v46 = vpop.f32.mrb[5].mxu1  ;;  %v5127_v51 = vadd.f32 %v620_v48, %v5061_v56  ;;  %v622_v52 = vpop.f32.mrb[6].mxu0 }
 0x10d   : > { %v818_v49 = vadd.f32 %v817_v46, %v5028_v33  ;;  %v4061_v50 = vpop.f32.mrb[6].mxu1  ;;  %v623_v55 = vadd.f32 %v622_v52, %v5100_v21  ;;  %v624_v57 = vpop.f32.mrb[7].mxu0 }
 0x10e   : > { %v829_v53 = vadd.f32 %v4061_v50, %v5028_v33  ;;  %v820_v54 = vpop.f32.mrb[7].mxu1  ;;  %v5133_v59 = vadd.f32 %v624_v57, %v5061_v56 }
 0x10f   : > { %v821_v58 = vadd.f32 %v820_v54, %v5028_v33  ;;  %v5137_v61 = vpack.c.bf16 %v623_v55, %v619_v47 }
 0x110   : > { %v5135_v60 = vpack.c.bf16 %v829_v53, %v826_v45 }
 0x111   : > { %v5139_v62 = vpack.c.bf16 %v821_v58, %v818_v49 }
 0x112   : > { %7643 = vst [vmem:[#allocation5_spill] sm:$0xff] %v5135_v60  ;;  %v628_v1 = vpop.f32.mrb[8].mxu0 }
 0x113   : > { %7644 = vst [vmem:[#allocation6_spill] sm:$0xff] %v5139_v62  ;;  %v4064_v0 = vpop.f32.mrb[8].mxu1  ;;  %v629_v7 = vadd.f32 %v628_v1, %v5100_v21  ;;  %v630_v8 = vpop.f32.mrb[9].mxu0 }
 0x114   : > { %v842_v3 = vadd.f32 %v4064_v0, %v5028_v33  ;;  %v833_v4 = vpop.f32.mrb[9].mxu1  ;;  %v5147_v11 = vadd.f32 %v630_v8, %v5061_v56  ;;  %v632_v12 = vpop.f32.mrb[10].mxu0 }
 0x115   : > { %v834_v9 = vadd.f32 %v833_v4, %v5028_v33  ;;  %v4065_v10 = vpop.f32.mrb[10].mxu1  ;;  %v633_v15 = vadd.f32 %v632_v12, %v5100_v21  ;;  %v634_v16 = vpop.f32.mrb[11].mxu0 }
 0x116   : > { %v845_v13 = vadd.f32 %v4065_v10, %v5028_v33  ;;  %v836_v14 = vpop.f32.mrb[11].mxu1  ;;  %v5153_v18 = vadd.f32 %v634_v16, %v5061_v56 }
 0x117   : > { %v837_v17 = vadd.f32 %v836_v14, %v5028_v33  ;;  %v5157_v22 = vpack.c.bf16 %v633_v15, %v629_v7 }
 0x118   : > { %v5155_v19 = vpack.c.bf16 %v845_v13, %v842_v3 }
 0x119   : > { %v5159_v23 = vpack.c.bf16 %v837_v17, %v834_v9 }
 0x11a   : > { %7645 = vst [vmem:[#allocation7_spill] sm:$0xff] %v5155_v19  ;;  %v638_v26 = vpop.f32.mrb[12].mxu0 }
 0x11b   : > { %7646 = vst [vmem:[#allocation8_spill] sm:$0xff] %v5159_v23  ;;  %v4068_v25 = vpop.f32.mrb[12].mxu1  ;;  %v639_v28 = vadd.f32 %v638_v26, %v5100_v21  ;;  %v640_v32 = vpop.f32.mrb[13].mxu0 }
 0x11c   : > { %v858_v27 = vadd.f32 %v4068_v25, %v5028_v33  ;;  %v849_v2 = vpop.f32.mrb[13].mxu1  ;;  %v5167_v30 = vadd.f32 %v640_v32, %v5061_v56  ;;  %v642_v36 = vpop.f32.mrb[14].mxu0 }
 0x11d   : > { %v850_v34 = vadd.f32 %v849_v2, %v5028_v33  ;;  %v4069_v35 = vpop.f32.mrb[14].mxu1  ;;  %v643_v44 = vadd.f32 %v642_v36, %v5100_v21  ;;  %v644_v45 = vpop.f32.mrb[15].mxu0 }
 0x11e   : > { %v861_v37 = vadd.f32 %v4069_v35, %v5028_v33  ;;  %v852_v43 = vpop.f32.mrb[15].mxu1  ;;  %v5173_v47 = vadd.f32 %v644_v45, %v5061_v56 }
 0x11f   : > { %v853_v46 = vadd.f32 %v852_v43, %v5028_v33  ;;  %v5177_v49 = vpack.c.bf16 %v643_v44, %v639_v28 }
 0x120   : > { %v5175_v48 = vpack.c.bf16 %v861_v37, %v858_v27 }
 0x121   : > { %v5179_v50 = vpack.c.bf16 %v853_v46, %v850_v34 }
 0x122   : > { %7647 = vst [vmem:[#allocation9_spill] sm:$0xff] %v5175_v48  ;;  %v648_v54 = vpop.f32.mrb[16].mxu0 }
 0x123   : > { %7648 = vst [vmem:[#allocation10_spill] sm:$0xff] %v5179_v50  ;;  %v4072_v53 = vpop.f32.mrb[16].mxu1  ;;  %v649_v58 = vadd.f32 %v648_v54, %v5100_v21  ;;  %v650_v0 = vpop.f32.mrb[17].mxu0 }
 0x124   : > { %v874_v55 = vadd.f32 %v4072_v53, %v5028_v33  ;;  %v865_v57 = vpop.f32.mrb[17].mxu1  ;;  %v5187_v4 = vadd.f32 %v650_v0, %v5061_v56  ;;  %v652_v7 = vpop.f32.mrb[18].mxu0 }
 0x125   : > { %v866_v1 = vadd.f32 %v865_v57, %v5028_v33  ;;  %v4073_v3 = vpop.f32.mrb[18].mxu1  ;;  %v653_v10 = vadd.f32 %v652_v7, %v5100_v21  ;;  %v654_v12 = vpop.f32.mrb[19].mxu0 }
 0x126   : > { %v877_v8 = vadd.f32 %v4073_v3, %v5028_v33  ;;  %v868_v9 = vpop.f32.mrb[19].mxu1  ;;  %v5193_v14 = vadd.f32 %v654_v12, %v5061_v56 }
 0x127   : > { %v869_v13 = vadd.f32 %v868_v9, %v5028_v33  ;;  %v5197_v16 = vpack.c.bf16 %v653_v10, %v649_v58 }
 0x128   : > { %v5195_v15 = vpack.c.bf16 %v877_v8, %v874_v55 }
 0x129   : > { %v5199_v17 = vpack.c.bf16 %v869_v13, %v866_v1 }
 0x12a   : > { %7649 = vst [vmem:[#allocation11_spill] sm:$0xff] %v5195_v15  ;;  %v658_v27 = vpop.f32.mrb[20].mxu0 }
 0x12b   : > { %7650 = vst [vmem:[#allocation12_spill] sm:$0xff] %v5199_v17  ;;  %v4076_v26 = vpop.f32.mrb[20].mxu1  ;;  %v659_v32 = vadd.f32 %v658_v27, %v5100_v21  ;;  %v660_v34 = vpop.f32.mrb[21].mxu0 }
 0x12c   : > { %v890_v2 = vadd.f32 %v4076_v26, %v5028_v33  ;;  %v881_v28 = vpop.f32.mrb[21].mxu1  ;;  %v5207_v37 = vadd.f32 %v660_v34, %v5061_v56  ;;  %v662_v43 = vpop.f32.mrb[22].mxu0 }
 0x12d   : > { %v882_v35 = vadd.f32 %v881_v28, %v5028_v33  ;;  %v4077_v36 = vpop.f32.mrb[22].mxu1  ;;  %v663_v46 = vadd.f32 %v662_v43, %v5100_v21  ;;  %v664_v53 = vpop.f32.mrb[23].mxu0 }
 0x12e   : > { %v893_v44 = vadd.f32 %v4077_v36, %v5028_v33  ;;  %v884_v45 = vpop.f32.mrb[23].mxu1  ;;  %v5213_v55 = vadd.f32 %v664_v53, %v5061_v56 }
 0x12f   : > { %v885_v54 = vadd.f32 %v884_v45, %v5028_v33  ;;  %v5217_v58 = vpack.c.bf16 %v663_v46, %v659_v32 }
 0x130   : > { %v5215_v57 = vpack.c.bf16 %v893_v44, %v890_v2 }
 0x131   : > { %v5219_v0 = vpack.c.bf16 %v885_v54, %v882_v35 }
 0x132   : > { %7651 = vst [vmem:[#allocation13_spill] sm:$0xff] %v5215_v57  ;;  %v668_v7 = vpop.f32.mrb[24].mxu0 }
 0x133   : > { %7652 = vst [vmem:[#allocation14_spill] sm:$0xff] %v5219_v0  ;;  %v4080_v3 = vpop.f32.mrb[24].mxu1  ;;  %v669_v10 = vadd.f32 %v668_v7, %v5100_v21  ;;  %v670_v12 = vpop.f32.mrb[25].mxu0 }
 0x134   : > { %v906_v8 = vadd.f32 %v4080_v3, %v5028_v33  ;;  %v897_v9 = vpop.f32.mrb[25].mxu1  ;;  %v5227_v27 = vadd.f32 %v670_v12, %v5061_v56  ;;  %v672_v2 = vpop.f32.mrb[26].mxu0 }
 0x135   : > { %v898_v13 = vadd.f32 %v897_v9, %v5028_v33  ;;  %v4081_v26 = vpop.f32.mrb[26].mxu1  ;;  %v673_v34 = vadd.f32 %v672_v2, %v5100_v21  ;;  %v674_v35 = vpop.f32.mrb[27].mxu0 }
 0x136   : > { %v909_v28 = vadd.f32 %v4081_v26, %v5028_v33  ;;  %v900_v32 = vpop.f32.mrb[27].mxu1  ;;  %v5233_v43 = vadd.f32 %v674_v35, %v5061_v56 }
 0x137   : > { %v901_v36 = vadd.f32 %v900_v32, %v5028_v33  ;;  %v5237_v45 = vpack.c.bf16 %v673_v34, %v669_v10 }
 0x138   : > { %v5235_v44 = vpack.c.bf16 %v909_v28, %v906_v8 }
 0x139   : > { %v5239_v46 = vpack.c.bf16 %v901_v36, %v898_v13 }
 0x13a   : > { %7653 = vst [vmem:[#allocation15_spill] sm:$0xff] %v5235_v44  ;;  %v678_v3 = vpop.f32.mrb[28].mxu0 }
 0x13b   : > { %7654 = vst [vmem:[#allocation16_spill] sm:$0xff] %v5239_v46  ;;  %v4084_v54 = vpop.f32.mrb[28].mxu1  ;;  %v679_v12 = vadd.f32 %v678_v3, %v5100_v21  ;;  %v680_v26 = vpop.f32.mrb[29].mxu0 }
 0x13c   : > { %v922_v7 = vadd.f32 %v4084_v54, %v5028_v33  ;;  %v913_v9 = vpop.f32.mrb[29].mxu1  ;;  %v5247_v8 = vadd.f32 %v680_v26, %v5061_v56  ;;  %v682_v10 = vpop.f32.mrb[30].mxu0 }
 0x13d   : > { %v914_v2 = vadd.f32 %v913_v9, %v5028_v33  ;;  %v4085_v32 = vpop.f32.mrb[30].mxu1  ;;  %v683_v34 = vadd.f32 %v682_v10, %v5100_v21  ;;  %v684_v35 = vpop.f32.mrb[31].mxu0 }
 0x13e   : > { %v925_v13 = vadd.f32 %v4085_v32, %v5028_v33  ;;  %v916_v28 = vpop.f32.mrb[31].mxu1  ;;  %v5253_v54 = vadd.f32 %v684_v35, %v5061_v56  ;;  %v5266_v32 = vrot.slane %v5079_v5, %v433_v20 }
 0x13f   : > { %v917_v36 = vadd.f32 %v916_v28, %v5028_v33  ;;  %v5257_v53 = vpack.c.bf16 %v683_v34, %v679_v12 }
 0x140   : > { %v5255_v3 = vpack.c.bf16 %v925_v13, %v922_v7 }
 0x141   : > { %v5259_v9 = vpack.c.bf16 %v917_v36, %v914_v2 }
 0x142   : > { %7655 = vst [vmem:[#allocation17_spill] sm:$0xff] %v5255_v3  ;;  %v688_v10 = vpop.f32.mrb[32].mxu0 }
 0x143   : > { %7656 = vst [vmem:[#allocation18_spill] sm:$0xff] %v5259_v9  ;;  %v1070_v1 = vpop.f32.mrb[32].mxu1  ;;  %v689_v33 = vadd.f32 %v688_v10, %v5100_v21  ;;  %v690_v28 = vpop.f32.mrb[33].mxu0 }
 0x144   : > { %v1072_v35 = vpop.f32.mrb[33].mxu1  ;;  %v691_v7 = vadd.f32 %v690_v28, %v5061_v56  ;;  %v692_v2 = vpop.f32.mrb[34].mxu0  ;;  %v1071_v34 = vadd.f32 %v1070_v1, %v5266_v32 }
 0x145   : > { %v5271_v12 = vadd.f32 %v1072_v35, %v5082_v6  ;;  %v1074_v13 = vpop.f32.mrb[34].mxu1  ;;  %v693_v29 = vadd.f32 %v692_v2, %v5100_v21  ;;  %v694_v20 = vpop.f32.mrb[35].mxu0 }
 0x146   : > { %v1075_v5 = vadd.f32 %v1074_v13, %v5266_v32  ;;  %v1076_v36 = vpop.f32.mrb[35].mxu1  ;;  %v695_v26 = vadd.f32 %v694_v20, %v5061_v56 }
 0x147   : > { %v5278_v10 = vadd.f32 %v1076_v36, %v5082_v6  ;;  %v5280_v25 = vpack.c.bf16 %v693_v29, %v689_v33 }
 0x148   : > { %v5282_v28 = vpack.c.bf16 %v1075_v5, %v1071_v34  ;;  %v1253_v35 = vpack.c.bf16 %v695_v26, %v691_v7 }
 0x14a   : > { %3894 = vmatprep.mubr.bf16.mxu1 %v5282_v28  ;;  %v698_v1 = vpop.f32.mrb[36].mxu0  ;;  %3830 = vmatprep.subr.bf16.mxu0 %v1253_v35 }
 0x14b   : > { %v1080_v2 = vpop.f32.mrb[36].mxu1  ;;  %v699_v13 = vadd.f32 %v698_v1, %v5100_v21  ;;  %v700_v24 = vpop.f32.mrb[37].mxu0  ;;  %3831 = vmatpush3.bf16.xpose.msra.mxu0 %v1245_v42 }
 0x14c   : > { %v1082_v20 = vpop.f32.mrb[37].mxu1  ;;  %v701_v33 = vadd.f32 %v700_v24, %v5061_v56  ;;  %v702_v7 = vpop.f32.mrb[38].mxu0  ;;  %v1081_v29 = vadd.f32 %v1080_v2, %v5266_v32 }
 0x14d   : > { %v5293_v26 = vadd.f32 %v1082_v20, %v5082_v6  ;;  %v1084_v34 = vpop.f32.mrb[38].mxu1  ;;  %v703_v5 = vadd.f32 %v702_v7, %v5100_v21  ;;  %v704_v35 = vpop.f32.mrb[39].mxu0 }
 0x14e   : > { %v1085_v36 = vadd.f32 %v1084_v34, %v5266_v32  ;;  %v1086_v1 = vpop.f32.mrb[39].mxu1  ;;  %v705_v52 = vadd.f32 %v704_v35, %v5061_v56  ;;  %v7657_v35 = vpack.c.bf16 %v5133_v59, %v5127_v51 }
 0x14f   : > { %v5300_v31 = vadd.f32 %v1086_v1, %v5082_v6  ;;  %v5302_v38 = vpack.c.bf16 %v703_v5, %v699_v13 }
 0x150   : > { %v5304_v42 = vpack.c.bf16 %v1085_v36, %v1081_v29  ;;  %v1254_v24 = vpack.c.bf16 %v705_v52, %v701_v33 }
 0x152   : > { %v708_v2 = vpop.f32.mrb[40].mxu0  ;;  %3832 = vmatprep.subr.bf16.mxu0 %v1254_v24 }
 0x153   : > { %v1090_v63 = vpop.f32.mrb[40].mxu1  ;;  %v709_v7 = vadd.f32 %v708_v2, %v5100_v21  ;;  %v710_v34 = vpop.f32.mrb[41].mxu0  ;;  %3833 = vmatpush3.bf16.xpose.msra.mxu0 %v7657_v35 }
 0x154   : > { %v1092_v48 = vpop.f32.mrb[41].mxu1  ;;  %v711_v13 = vadd.f32 %v710_v34, %v5061_v56  ;;  %v712_v52 = vpop.f32.mrb[42].mxu0  ;;  %v1091_v5 = vadd.f32 %v1090_v63, %v5266_v32 }
 0x155   : > { %v5314_v29 = vadd.f32 %v1092_v48, %v5082_v6  ;;  %v1094_v33 = vpop.f32.mrb[42].mxu1  ;;  %v713_v36 = vadd.f32 %v712_v52, %v5100_v21  ;;  %v714_v24 = vpop.f32.mrb[43].mxu0 }
 0x156   : > { %v1095_v1 = vadd.f32 %v1094_v33, %v5266_v32  ;;  %v1096_v2 = vpop.f32.mrb[43].mxu1  ;;  %v715_v20 = vadd.f32 %v714_v24, %v5061_v56  ;;  %v7658_v24 = vpack.c.bf16 %v5153_v18, %v5147_v11 }
 0x157   : > { %v5321_v51 = vadd.f32 %v1096_v2, %v5082_v6  ;;  %v5323_v59 = vpack.c.bf16 %v713_v36, %v709_v7 }
 0x158   : > { %v5325_v34 = vpack.c.bf16 %v1095_v1, %v1091_v5  ;;  %v1255_v48 = vpack.c.bf16 %v715_v20, %v711_v13 }
 0x15a   : > { %v718_v63 = vpop.f32.mrb[44].mxu0  ;;  %3834 = vmatprep.subr.bf16.mxu0 %v1255_v48 }
 0x15b   : > { %v1100_v3 = vpop.f32.mrb[44].mxu1  ;;  %v719_v52 = vadd.f32 %v718_v63, %v5100_v21  ;;  %v720_v33 = vpop.f32.mrb[45].mxu0  ;;  %3835 = vmatpush3.bf16.xpose.msra.mxu0 %v7658_v24 }
 0x15c   : > { %v1102_v50 = vpop.f32.mrb[45].mxu1  ;;  %v721_v7 = vadd.f32 %v720_v33, %v5061_v56  ;;  %v722_v20 = vpop.f32.mrb[46].mxu0  ;;  %v1101_v36 = vadd.f32 %v1100_v3, %v5266_v32 }
 0x15d   : > { %v5335_v5 = vadd.f32 %v1102_v50, %v5082_v6  ;;  %v1104_v13 = vpop.f32.mrb[46].mxu1  ;;  %v723_v1 = vadd.f32 %v722_v20, %v5100_v21  ;;  %v724_v48 = vpop.f32.mrb[47].mxu0 }
 0x15e   : > { %v1105_v2 = vadd.f32 %v1104_v13, %v5266_v32  ;;  %v1106_v63 = vpop.f32.mrb[47].mxu1  ;;  %v725_v35 = vadd.f32 %v724_v48, %v5061_v56  ;;  %v7659_v48 = vpack.c.bf16 %v5173_v47, %v5167_v30 }
 0x15f   : > { %v5342_v11 = vadd.f32 %v1106_v63, %v5082_v6  ;;  %v5344_v18 = vpack.c.bf16 %v723_v1, %v719_v52 }
 0x160   : > { %v5346_v33 = vpack.c.bf16 %v1105_v2, %v1101_v36  ;;  %v1256_v50 = vpack.c.bf16 %v725_v35, %v721_v7 }
 0x162   : > { %v728_v3 = vpop.f32.mrb[48].mxu0  ;;  %3836 = vmatprep.subr.bf16.mxu0 %v1256_v50 }
 0x163   : > { %v1110_v9 = vpop.f32.mrb[48].mxu1  ;;  %v729_v20 = vadd.f32 %v728_v3, %v5100_v21  ;;  %v730_v13 = vpop.f32.mrb[49].mxu0  ;;  %3837 = vmatpush3.bf16.xpose.msra.mxu0 %v7659_v48 }
 0x164   : > { %v1112_v19 = vpop.f32.mrb[49].mxu1  ;;  %v731_v52 = vadd.f32 %v730_v13, %v5061_v56  ;;  %v732_v35 = vpop.f32.mrb[50].mxu0  ;;  %v1111_v1 = vadd.f32 %v1110_v9, %v5266_v32 }
 0x165   : > { %v5356_v36 = vadd.f32 %v1112_v19, %v5082_v6  ;;  %v1114_v7 = vpop.f32.mrb[50].mxu1  ;;  %v733_v2 = vadd.f32 %v732_v35, %v5100_v21  ;;  %v734_v50 = vpop.f32.mrb[51].mxu0 }
 0x166   : > { %v1115_v63 = vadd.f32 %v1114_v7, %v5266_v32  ;;  %v1116_v3 = vpop.f32.mrb[51].mxu1  ;;  %v735_v24 = vadd.f32 %v734_v50, %v5061_v56  ;;  %v7662_v50 = vpack.c.bf16 %v5193_v14, %v5187_v4 }
 0x167   : > { %v5363_v30 = vadd.f32 %v1116_v3, %v5082_v6  ;;  %v5365_v47 = vpack.c.bf16 %v733_v2, %v729_v20 }
 0x168   : > { %v5367_v13 = vpack.c.bf16 %v1115_v63, %v1111_v1  ;;  %v1257_v19 = vpack.c.bf16 %v735_v24, %v731_v52 }
 0x169   : > { %7660 = vst [vmem:[#allocation19_spill] sm:$0xff] %v5365_v47 }
 0x16a   : > { %7661 = vst [vmem:[#allocation20_spill] sm:$0xff] %v5367_v13  ;;  %v738_v9 = vpop.f32.mrb[52].mxu0  ;;  %3838 = vmatprep.subr.bf16.mxu0 %v1257_v19 }
 0x16b   : > { %v1120_v44 = vpop.f32.mrb[52].mxu1  ;;  %v739_v35 = vadd.f32 %v738_v9, %v5100_v21  ;;  %v740_v7 = vpop.f32.mrb[53].mxu0  ;;  %3839 = vmatpush3.bf16.xpose.msra.mxu0 %v7662_v50 }
 0x16c   : > { %v1122_v23 = vpop.f32.mrb[53].mxu1  ;;  %v741_v20 = vadd.f32 %v740_v7, %v5061_v56  ;;  %v742_v24 = vpop.f32.mrb[54].mxu0  ;;  %v1121_v2 = vadd.f32 %v1120_v44, %v5266_v32 }
 0x16d   : > { %v5377_v1 = vadd.f32 %v1122_v23, %v5082_v6  ;;  %v1124_v52 = vpop.f32.mrb[54].mxu1  ;;  %v743_v63 = vadd.f32 %v742_v24, %v5100_v21  ;;  %v744_v19 = vpop.f32.mrb[55].mxu0 }
 0x16e   : > { %v1125_v3 = vadd.f32 %v1124_v52, %v5266_v32  ;;  %v1126_v9 = vpop.f32.mrb[55].mxu1  ;;  %v745_v48 = vadd.f32 %v744_v19, %v5061_v56  ;;  %v7665_v19 = vpack.c.bf16 %v5213_v55, %v5207_v37 }
 0x16f   : > { %v5384_v4 = vadd.f32 %v1126_v9, %v5082_v6  ;;  %v5386_v14 = vpack.c.bf16 %v743_v63, %v739_v35 }
 0x170   : > { %v5388_v7 = vpack.c.bf16 %v1125_v3, %v1121_v2  ;;  %v1258_v23 = vpack.c.bf16 %v745_v48, %v741_v20 }
 0x171   : > { %7663 = vst [vmem:[#allocation21_spill] sm:$0xff] %v5386_v14 }
 0x172   : > { %7664 = vst [vmem:[#allocation22_spill] sm:$0xff] %v5388_v7  ;;  %v748_v44 = vpop.f32.mrb[56].mxu0  ;;  %3840 = vmatprep.subr.bf16.mxu0 %v1258_v23 }
 0x173   : > { %v1130_v13 = vpop.f32.mrb[56].mxu1  ;;  %v749_v24 = vadd.f32 %v748_v44, %v5100_v21  ;;  %v750_v52 = vpop.f32.mrb[57].mxu0  ;;  %3841 = vmatpush3.bf16.xpose.msra.mxu0 %v7665_v19 }
 0x174   : > { %v1132_v47 = vpop.f32.mrb[57].mxu1  ;;  %v751_v35 = vadd.f32 %v750_v52, %v5061_v56  ;;  %v752_v48 = vpop.f32.mrb[58].mxu0  ;;  %v1131_v63 = vadd.f32 %v1130_v13, %v5266_v32 }
 0x175   : > { %v5398_v2 = vadd.f32 %v1132_v47, %v5082_v6  ;;  %v1134_v20 = vpop.f32.mrb[58].mxu1  ;;  %v753_v3 = vadd.f32 %v752_v48, %v5100_v21  ;;  %v754_v23 = vpop.f32.mrb[59].mxu0 }
 0x176   : > { %v1135_v9 = vadd.f32 %v1134_v20, %v5266_v32  ;;  %v1136_v44 = vpop.f32.mrb[59].mxu1  ;;  %v755_v50 = vadd.f32 %v754_v23, %v5061_v56  ;;  %v7666_v23 = vpack.c.bf16 %v5233_v43, %v5227_v27 }
 0x177   : > { %v5405_v37 = vadd.f32 %v1136_v44, %v5082_v6  ;;  %v5407_v55 = vpack.c.bf16 %v753_v3, %v749_v24 }
 0x178   : > { %v5409_v52 = vpack.c.bf16 %v1135_v9, %v1131_v63  ;;  %v1259_v47 = vpack.c.bf16 %v755_v50, %v751_v35 }
 0x17a   : > { %v758_v13 = vpop.f32.mrb[60].mxu0  ;;  %3842 = vmatprep.subr.bf16.mxu0 %v1259_v47 }
 0x17b   : > { %v1140_v7 = vpop.f32.mrb[60].mxu1  ;;  %v759_v48 = vadd.f32 %v758_v13, %v5100_v21  ;;  %v760_v20 = vpop.f32.mrb[61].mxu0  ;;  %3843 = vmatpush3.bf16.xpose.msra.mxu0 %v7666_v23 }
 0x17c   : > { %v1142_v14 = vpop.f32.mrb[61].mxu1  ;;  %v761_v24 = vadd.f32 %v760_v20, %v5061_v56  ;;  %v762_v50 = vpop.f32.mrb[62].mxu0  ;;  %v1141_v3 = vadd.f32 %v1140_v7, %v5266_v32 }
 0x17d   : > { %v5419_v63 = vadd.f32 %v1142_v14, %v5082_v6  ;;  %v1144_v35 = vpop.f32.mrb[62].mxu1  ;;  %v763_v9 = vadd.f32 %v762_v50, %v5100_v21  ;;  %v764_v47 = vpop.f32.mrb[63].mxu0  ;;  %v7667_v50 = vpack.c.bf16 %v5253_v54, %v5247_v8  ;;  %v7668_v8 = vpack.c.bf16 %v5278_v10, %v5271_v12 }
 0x17e   : > { %v1145_v44 = vadd.f32 %v1144_v35, %v5266_v32  ;;  %v1146_v13 = vpop.f32.mrb[63].mxu1  ;;  %v765_v19 = vadd.f32 %v764_v47, %v5061_v56  ;;  %v7669_v12 = vpack.c.bf16 %v5300_v31, %v5293_v26  ;;  %v7670_v26 = vpack.c.bf16 %v5321_v51, %v5314_v29 }
 0x17f   : > { %v5426_v27 = vadd.f32 %v1146_v13, %v5082_v6  ;;  %v5428_v43 = vpack.c.bf16 %v763_v9, %v759_v48  ;;  %v7671_v29 = vpack.c.bf16 %v5342_v11, %v5335_v5  ;;  %v7672_v5 = vpack.c.bf16 %v5363_v30, %v5356_v36 }
 0x180   : > { %v5430_v20 = vpack.c.bf16 %v1145_v44, %v1141_v3  ;;  %v1260_v14 = vpack.c.bf16 %v765_v19, %v761_v24  ;;  %v7673_v36 = vpack.c.bf16 %v5384_v4, %v5377_v1  ;;  %v7674_v1 = vpack.c.bf16 %v5405_v37, %v5398_v2  ;;  %v7684_v2 = vld [vmem:[#allocation21_spill] sm:$0xff]  ;;  %v7685_v37 = vld [vmem:[#allocation22_spill] sm:$0xff] }
 0x181   : > { %v1957_v23 = vpack.c.bf16 %v5426_v27, %v5419_v63 }
 0x182   : > { %3844 = vmatprep.subr.bf16.mxu0 %v1260_v14 }
 0x183   : > { %v1150_v7 = vpop.f32.mrb[64].mxu1  ;;  %3845 = vmatpush3.bf16.xpose.msra.mxu0 %v7667_v50 }
 0x184   : > { %v1152_v21 = vpop.f32.mrb[65].mxu1  ;;  %v1151_v47 = vadd.f32 %v1150_v7, %v5266_v32 }
 0x185   : > { %v1153_v56 = vadd.f32 %v1152_v21, %v5082_v6  ;;  %v1154_v35 = vpop.f32.mrb[66].mxu1 }
 0x186   : > { %v1155_v48 = vadd.f32 %v1154_v35, %v5266_v32  ;;  %v1156_v3 = vpop.f32.mrb[67].mxu1 }
 0x187   : > { %v1157_v19 = vadd.f32 %v1156_v3, %v5082_v6 }
 0x188   : > { %v5441_v24 = vpack.c.bf16 %v1155_v48, %v1151_v47 }
 0x189   : > { %v1958_v9 = vpack.c.bf16 %v1157_v19, %v1153_v56 }
 0x18a   : > { %3847 = vmatmul.mubr.bf16.vlgmr.msra.gmra.mrb[64].mxu0 %v5116_v40 }
 0x18b   : > { %v1160_v44 = vpop.f32.mrb[68].mxu1  ;;  %3878 = vmatprep.subr.bf16.mxu1 %v1958_v9  ;;  %3848 = vmatprep.mubr.bf16.mxu0 %v5137_v61 }
 0x18c   : > { %v1162_v13 = vpop.f32.mrb[69].mxu1  ;;  %3879 = vmatpush3.bf16.xpose.msra.mxu1 %v7668_v8  ;;  %v1161_v7 = vadd.f32 %v1160_v44, %v5266_v32 }
 0x18d   : > { %v1163_v54 = vadd.f32 %v1162_v13, %v5082_v6  ;;  %v1164_v14 = vpop.f32.mrb[70].mxu1 }
 0x18e   : > { %v1165_v21 = vadd.f32 %v1164_v14, %v5266_v32  ;;  %v1166_v50 = vpop.f32.mrb[71].mxu1 }
 0x18f   : > { %v1167_v56 = vadd.f32 %v1166_v50, %v5082_v6 }
 0x190   : > { %v5452_v35 = vpack.c.bf16 %v1165_v21, %v1161_v7 }
 0x191   : > { %v1959_v40 = vpack.c.bf16 %v1167_v56, %v1163_v54 }
 0x192   : > { %3849 = vmatmul.mubr.bf16.gmra.mrb[68].mxu0 %v5137_v61 }
 0x193   : > { %v1170_v47 = vpop.f32.mrb[72].mxu1  ;;  %3880 = vmatprep.subr.bf16.mxu1 %v1959_v40  ;;  %3850 = vmatprep.mubr.bf16.mxu0 %v5157_v22 }
 0x194   : > { %v1172_v48 = vpop.f32.mrb[73].mxu1  ;;  %3881 = vmatpush3.bf16.xpose.msra.mxu1 %v7669_v12  ;;  %v1171_v19 = vadd.f32 %v1170_v47, %v5266_v32 }
 0x195   : > { %v1173_v10 = vadd.f32 %v1172_v48, %v5082_v6  ;;  %v1174_v3 = vpop.f32.mrb[74].mxu1 }
 0x196   : > { %v1175_v9 = vadd.f32 %v1174_v3, %v5266_v32  ;;  %v1176_v44 = vpop.f32.mrb[75].mxu1 }
 0x197   : > { %v1177_v13 = vadd.f32 %v1176_v44, %v5082_v6 }
 0x198   : > { %v5463_v8 = vpack.c.bf16 %v1175_v9, %v1171_v19 }
 0x199   : > { %v1960_v61 = vpack.c.bf16 %v1177_v13, %v1173_v10 }
 0x19a   : > { %3851 = vmatmul.mubr.bf16.gmra.mrb[72].mxu0 %v5157_v22 }
 0x19b   : > { %v1180_v54 = vpop.f32.mrb[76].mxu1  ;;  %3882 = vmatprep.subr.bf16.mxu1 %v1960_v61  ;;  %3852 = vmatprep.mubr.bf16.mxu0 %v5177_v49 }
 0x19c   : > { %v1182_v14 = vpop.f32.mrb[77].mxu1  ;;  %3883 = vmatpush3.bf16.xpose.msra.mxu1 %v7670_v26  ;;  %v1181_v21 = vadd.f32 %v1180_v54, %v5266_v32 }
 0x19d   : > { %v1183_v31 = vadd.f32 %v1182_v14, %v5082_v6  ;;  %v1184_v7 = vpop.f32.mrb[78].mxu1 }
 0x19e   : > { %v1185_v50 = vadd.f32 %v1184_v7, %v5266_v32  ;;  %v1186_v56 = vpop.f32.mrb[79].mxu1 }
 0x19f   : > { %v1187_v40 = vadd.f32 %v1186_v56, %v5082_v6 }
 0x1a0   : > { %v5474_v47 = vpack.c.bf16 %v1185_v50, %v1181_v21 }
 0x1a1   : > { %v1961_v22 = vpack.c.bf16 %v1187_v40, %v1183_v31 }
 0x1a2   : > { %3853 = vmatmul.mubr.bf16.gmra.mrb[76].mxu0 %v5177_v49 }
 0x1a3   : > { %v1190_v48 = vpop.f32.mrb[80].mxu1  ;;  %3884 = vmatprep.subr.bf16.mxu1 %v1961_v22  ;;  %3854 = vmatprep.mubr.bf16.mxu0 %v5197_v16 }
 0x1a4   : > { %v1192_v12 = vpop.f32.mrb[81].mxu1  ;;  %3885 = vmatpush3.bf16.xpose.msra.mxu1 %v7671_v29  ;;  %v1191_v3 = vadd.f32 %v1190_v48, %v5266_v32 }
 0x1a5   : > { %v1193_v51 = vadd.f32 %v1192_v12, %v5082_v6  ;;  %v1194_v10 = vpop.f32.mrb[82].mxu1 }
 0x1a6   : > { %v1195_v19 = vadd.f32 %v1194_v10, %v5266_v32  ;;  %v1196_v9 = vpop.f32.mrb[83].mxu1 }
 0x1a7   : > { %v1197_v44 = vadd.f32 %v1196_v9, %v5082_v6 }
 0x1a8   : > { %v5485_v13 = vpack.c.bf16 %v1195_v19, %v1191_v3 }
 0x1a9   : > { %v1962_v49 = vpack.c.bf16 %v1197_v44, %v1193_v51 }
 0x1aa   : > { %3855 = vmatmul.mubr.bf16.gmra.mrb[80].mxu0 %v5197_v16 }
 0x1ab   : > { %v1200_v61 = vpop.f32.mrb[84].mxu1  ;;  %3886 = vmatprep.subr.bf16.mxu1 %v1962_v49  ;;  %3856 = vmatprep.mubr.bf16.mxu0 %v5217_v58 }
 0x1ac   : > { %v1202_v54 = vpop.f32.mrb[85].mxu1  ;;  %3887 = vmatpush3.bf16.xpose.msra.mxu1 %v7672_v5  ;;  %v1201_v26 = vadd.f32 %v1200_v61, %v5266_v32 }
 0x1ad   : > { %v1203_v11 = vadd.f32 %v1202_v54, %v5082_v6  ;;  %v1204_v14 = vpop.f32.mrb[86].mxu1 }
 0x1ae   : > { %v1205_v31 = vadd.f32 %v1204_v14, %v5266_v32  ;;  %v1206_v7 = vpop.f32.mrb[87].mxu1 }
 0x1af   : > { %v1207_v21 = vadd.f32 %v1206_v7, %v5082_v6 }
 0x1b0   : > { %v5496_v50 = vpack.c.bf16 %v1205_v31, %v1201_v26 }
 0x1b1   : > { %v1963_v16 = vpack.c.bf16 %v1207_v21, %v1203_v11 }
 0x1b2   : > { %3857 = vmatmul.mubr.bf16.gmra.mrb[84].mxu0 %v5217_v58 }
 0x1b3   : > { %v1210_v56 = vpop.f32.mrb[88].mxu1  ;;  %3888 = vmatprep.subr.bf16.mxu1 %v1963_v16  ;;  %3858 = vmatprep.mubr.bf16.mxu0 %v5237_v45 }
 0x1b4   : > { %v1212_v40 = vpop.f32.mrb[89].mxu1  ;;  %3889 = vmatpush3.bf16.xpose.msra.mxu1 %v7673_v36  ;;  %v1211_v48 = vadd.f32 %v1210_v56, %v5266_v32 }
 0x1b5   : > { %v1213_v30 = vadd.f32 %v1212_v40, %v5082_v6  ;;  %v1214_v22 = vpop.f32.mrb[90].mxu1 }
 0x1b6   : > { %v1215_v12 = vadd.f32 %v1214_v22, %v5266_v32  ;;  %v1216_v29 = vpop.f32.mrb[91].mxu1 }
 0x1b7   : > { %v1217_v51 = vadd.f32 %v1216_v29, %v5082_v6 }
 0x1b8   : > { %v5507_v10 = vpack.c.bf16 %v1215_v12, %v1211_v48 }
 0x1b9   : > { %v1964_v58 = vpack.c.bf16 %v1217_v51, %v1213_v30 }
 0x1ba   : > { %3859 = vmatmul.mubr.bf16.gmra.mrb[88].mxu0 %v5237_v45 }
 0x1bb   : > { %v1220_v3 = vpop.f32.mrb[92].mxu1  ;;  %3890 = vmatprep.subr.bf16.mxu1 %v1964_v58  ;;  %3860 = vmatprep.mubr.bf16.mxu0 %v5257_v53 }
 0x1bc   : > { %v1222_v19 = vpop.f32.mrb[93].mxu1  ;;  %3891 = vmatpush3.bf16.xpose.msra.mxu1 %v7674_v1  ;;  %v1221_v44 = vadd.f32 %v1220_v3, %v5266_v32 }
 0x1bd   : > { %v1223_v4 = vadd.f32 %v1222_v19, %v5082_v6  ;;  %v1224_v9 = vpop.f32.mrb[94].mxu1 }
 0x1be   : > { %v1225_v49 = vadd.f32 %v1224_v9, %v5266_v32  ;;  %v1226_v61 = vpop.f32.mrb[95].mxu1  ;;  %v7678_v32 = vld [vmem:[#allocation18_spill] sm:$0xff] }
 0x1bf   : > { %v1227_v54 = vadd.f32 %v1226_v61, %v5082_v6  ;;  %v7675_v6 = vld [vmem:[#allocation8_spill] sm:$0xff] }
 0x1c0   : > { %v5518_v5 = vpack.c.bf16 %v1225_v49, %v1221_v44 }
 0x1c1   : > { %v1965_v45 = vpack.c.bf16 %v1227_v54, %v1223_v4 }
 0x1c2   : > { %3861 = vmatmul.mubr.bf16.gmra.mrb[92].mxu0 %v5257_v53  ;;  %v7677_v53 = vld [vmem:[#allocation7_spill] sm:$0xff] }
 0x1c3   : > { %3892 = vmatprep.subr.bf16.mxu1 %v1965_v45  ;;  %3862 = vmatprep.mubr.bf16.mxu0 %v5280_v25 }
 0x1c4   : > { %3893 = vmatpush3.bf16.xpose.msra.mxu1 %v1957_v23 }
 0x1c5   : > { %4086 = vmatprep.subr.bf16.mxu1 %v5199_v17 }
 0x1ca   : > { %3863 = vmatmul.mubr.bf16.gmra.mrb[96].mxu0 %v5280_v25  ;;  %v7676_v25 = vld [vmem:[#allocation15_spill] sm:$0xff] }
 0x1cb   : > { %3895 = vmatmul.mubr.bf16.vlgmr.msra.gmra.mrb[96].mxu1 %v5282_v28  ;;  %3864 = vmatprep.mubr.bf16.mxu0 %v5302_v38  ;;  %v7679_v28 = vld [vmem:[#allocation19_spill] sm:$0xff] }
 0x1cc   : > { %3896 = vmatprep.mubr.bf16.mxu1 %v5304_v42  ;;  %4094 = vmatpush3.bf16.msra.mxu1 %v5118_v41 }
 0x1cd   : > { %4087 = vmatprep.subr.bf16.mxu1 %v5195_v15 }
 0x1d0   : > { %4095 = vmatpush3.bf16.msra.mxu1 %v5114_v39 }
 0x1d1   : > { %4088 = vmatprep.subr.bf16.mxu1 %v5219_v0 }
 0x1d2   : > { %3865 = vmatmul.mubr.bf16.gmra.mrb[100].mxu0 %v5302_v38  ;;  %v7680_v38 = vld [vmem:[#allocation20_spill] sm:$0xff] }
 0x1d3   : > { %3897 = vmatmul.mubr.bf16.gmra.mrb[100].mxu1 %v5304_v42  ;;  %3866 = vmatprep.mubr.bf16.mxu0 %v5323_v59  ;;  %v7681_v42 = vld [vmem:[#allocation10_spill] sm:$0xff] }
 0x1d4   : > { %3898 = vmatprep.mubr.bf16.mxu1 %v5325_v34  ;;  %4096 = vmatpush3.bf16.msra.mxu1 %v5139_v62 }
 0x1d5   : > { %4089 = vmatprep.subr.bf16.mxu1 %v5215_v57 }
 0x1d8   : > { %4097 = vmatpush3.bf16.msra.mxu1 %v5135_v60 }
 0x1d9   : > { %4090 = vmatprep.subr.bf16.mxu1 %v5239_v46 }
 0x1da   : > { %3867 = vmatmul.mubr.bf16.gmra.mrb[104].mxu0 %v5323_v59  ;;  %v7682_v59 = vld [vmem:[#allocation17_spill] sm:$0xff] }
 0x1db   : > { %3899 = vmatmul.mubr.bf16.gmra.mrb[104].mxu1 %v5325_v34  ;;  %3868 = vmatprep.mubr.bf16.mxu0 %v5344_v18  ;;  %v7683_v34 = vld [vmem:[#allocation9_spill] sm:$0xff] }
 0x1dc   : > { %3900 = vmatprep.mubr.bf16.mxu1 %v5346_v33  ;;  %4098 = vmatpush3.bf16.msra.mxu1 %v7675_v6 }
 0x1dd   : > { %4091 = vmatprep.subr.bf16.mxu1 %v7676_v25 }
 0x1e0   : > { %4099 = vmatpush3.bf16.msra.mxu1 %v7677_v53 }
 0x1e1   : > { %4092 = vmatprep.subr.bf16.mxu1 %v7678_v32 }
 0x1e2   : > { %3869 = vmatmul.mubr.bf16.gmra.mrb[108].mxu0 %v5344_v18 }
 0x1e3   : > { %3901 = vmatmul.mubr.bf16.gmra.mrb[108].mxu1 %v5346_v33  ;;  %3870 = vmatprep.mubr.bf16.mxu0 %v7679_v28 }
 0x1e4   : > { %3902 = vmatprep.mubr.bf16.mxu1 %v7680_v38  ;;  %4100 = vmatpush3.bf16.msra.mxu1 %v7681_v42 }
 0x1e5   : > { %4093 = vmatprep.subr.bf16.mxu1 %v7682_v59 }
 0x1e8   : > { %4101 = vmatpush3.bf16.msra.mxu1 %v7683_v34 }
 0x1ea   : > { %3871 = vmatmul.mubr.bf16.gmra.mrb[112].mxu0 %v7679_v28 }
 0x1eb   : > { %3903 = vmatmul.mubr.bf16.gmra.mrb[112].mxu1 %v7680_v38  ;;  %3872 = vmatprep.mubr.bf16.mxu0 %v7684_v2 }
 0x1ec   : > { %3904 = vmatprep.mubr.bf16.mxu1 %v7685_v37 }
 0x1f2   : > { %3873 = vmatmul.mubr.bf16.gmra.mrb[116].mxu0 %v7684_v2 }
 0x1f3   : > { %3905 = vmatmul.mubr.bf16.gmra.mrb[116].mxu1 %v7685_v37  ;;  %3874 = vmatprep.mubr.bf16.mxu0 %v5407_v55 }
 0x1f4   : > { %3906 = vmatprep.mubr.bf16.mxu1 %v5409_v52 }
 0x1fa   : > { %3875 = vmatmul.mubr.bf16.gmra.mrb[120].mxu0 %v5407_v55 }
 0x1fb   : > { %3907 = vmatmul.mubr.bf16.gmra.mrb[120].mxu1 %v5409_v52  ;;  %3876 = vmatprep.mubr.bf16.mxu0 %v5428_v43 }
 0x1fc   : > { %3908 = vmatprep.mubr.bf16.mxu1 %v5430_v20 }
 0x202   : > { %3877 = vmatmul.mubr.bf16.gmra.mrb[124].mxu0 %v5428_v43 }
 0x203   : > { %3909 = vmatmul.mubr.bf16.gmra.mrb[124].mxu1 %v5430_v20 }
 0x204   : > { %3910 = vmatprep.mubr.bf16.mxu1 %v5441_v24 }
 0x20b   : > { %3911 = vmatmul.mubr.bf16.gmra.mrb[128].mxu1 %v5441_v24 }
 0x20c   : > { %3912 = vmatprep.mubr.bf16.mxu1 %v5452_v35 }
 0x213   : > { %3913 = vmatmul.mubr.bf16.gmra.mrb[132].mxu1 %v5452_v35 }
 0x214   : > { %3914 = vmatprep.mubr.bf16.mxu1 %v5463_v8 }
 0x21b   : > { %3915 = vmatmul.mubr.bf16.gmra.mrb[136].mxu1 %v5463_v8 }
 0x21c   : > { %3916 = vmatprep.mubr.bf16.mxu1 %v5474_v47 }
 0x223   : > { %3917 = vmatmul.mubr.bf16.gmra.mrb[140].mxu1 %v5474_v47 }
 0x224   : > { %3918 = vmatprep.mubr.bf16.mxu1 %v5485_v13 }
 0x22b   : > { %3919 = vmatmul.mubr.bf16.gmra.mrb[144].mxu1 %v5485_v13 }
 0x22c   : > { %3920 = vmatprep.mubr.bf16.mxu1 %v5496_v50 }
 0x233   : > { %3921 = vmatmul.mubr.bf16.gmra.mrb[148].mxu1 %v5496_v50 }
 0x234   : > { %3922 = vmatprep.mubr.bf16.mxu1 %v5507_v10 }
 0x23b   : > { %3923 = vmatmul.mubr.bf16.gmra.mrb[152].mxu1 %v5507_v10 }
 0x23c   : > { %3924 = vmatprep.mubr.bf16.mxu1 %v5518_v5 }
 0x243   : > { %3925 = vmatmul.mubr.bf16.gmra.mrb[156].mxu1 %v5518_v5 }
 0x25d   : > { %v5587_v18 = vpop.f32.mrb[64].mxu0 }
 0x25e   : > { %7686 = vst [vmem:[#allocation19_spill] sm:$0xff] %v5587_v18  ;;  %v5589_v33 = vpop.f32.mrb[65].mxu0 }
 0x25f   : > { %7687 = vst [vmem:[#allocation20_spill] sm:$0xff] %v5589_v33  ;;  %v5591_v55 = vpop.f32.mrb[66].mxu0  ;;  %v1454_v52 = vmax.f32 %v5587_v18, %v5589_v33 }
 0x260   : > { %7688 = vst [vmem:[#allocation21_spill] sm:$0xff] %v5591_v55  ;;  %v5595_v63 = vpop.f32.mrb[67].mxu0 }
 0x261   : > { %7689 = vst [vmem:[#allocation22_spill] sm:$0xff] %v5595_v63  ;;  %1455 = vmax.xlane.f32.xlu0 %v1454_v52  ;;  %v1457_v27 = vmax.f32 %v5591_v55, %v5595_v63 }
 0x263   : > { %1458 = vmax.xlane.f32.xlu1 %v1457_v27 }
 0x265   : > { %v5599_v43 = vpop.f32.mrb[68].mxu0 }
 0x266   : > { %7690 = vst [vmem:[#allocation23_spill] sm:$0xff] %v5599_v43  ;;  %v5601_v20 = vpop.f32.mrb[69].mxu0 }
 0x267   : > { %7691 = vst [vmem:[#allocation24_spill] sm:$0xff] %v5601_v20  ;;  %v5603_v23 = vpop.f32.mrb[70].mxu0  ;;  %v1460_v24 = vmax.f32 %v5599_v43, %v5601_v20 }
 0x268   : > { %7692 = vst [vmem:[#allocation25_spill] sm:$0xff] %v5603_v23  ;;  %v5607_v35 = vpop.f32.mrb[71].mxu0 }
 0x269   : > { %7693 = vst [vmem:[#allocation26_spill] sm:$0xff] %v5607_v35  ;;  %1461 = vmax.xlane.f32.xlu0 %v1460_v24  ;;  %v1463_v8 = vmax.f32 %v5603_v23, %v5607_v35 }
 0x26b   : > { %1464 = vmax.xlane.f32.xlu1 %v1463_v8 }
 0x26d   : > { %v5611_v47 = vpop.f32.mrb[72].mxu0 }
 0x26e   : > { %7694 = vst [vmem:[#allocation27_spill] sm:$0xff] %v5611_v47  ;;  %v5613_v13 = vpop.f32.mrb[73].mxu0 }
 0x26f   : > { %7695 = vst [vmem:[#allocation28_spill] sm:$0xff] %v5613_v13  ;;  %v5615_v11 = vpop.f32.mrb[74].mxu0  ;;  %v1466_v14 = vmax.f32 %v5611_v47, %v5613_v13 }
 0x270   : > { %7696 = vst [vmem:[#allocation29_spill] sm:$0xff] %v5615_v11  ;;  %v5619_v26 = vpop.f32.mrb[75].mxu0 }
 0x271   : > { %7697 = vst [vmem:[#allocation30_spill] sm:$0xff] %v5619_v26  ;;  %1467 = vmax.xlane.f32.xlu0 %v1466_v14  ;;  %v1469_v31 = vmax.f32 %v5615_v11, %v5619_v26 }
 0x273   : > { %1470 = vmax.xlane.f32.xlu1 %v1469_v31 }
 0x275   : > { %v5623_v7 = vpop.f32.mrb[76].mxu0 }
 0x276   : > { %7698 = vst [vmem:[#allocation31_spill] sm:$0xff] %v5623_v7  ;;  %v5625_v21 = vpop.f32.mrb[77].mxu0 }
 0x277   : > { %7699 = vst [vmem:[#allocation32_spill] sm:$0xff] %v5625_v21  ;;  %v5627_v50 = vpop.f32.mrb[78].mxu0  ;;  %v1472_v16 = vmax.f32 %v5623_v7, %v5625_v21 }
 0x278   : > { %7700 = vst [vmem:[#allocation33_spill] sm:$0xff] %v5627_v50  ;;  %v5631_v56 = vpop.f32.mrb[79].mxu0 }
 0x279   : > { %7701 = vst [vmem:[#allocation34_spill] sm:$0xff] %v5631_v56  ;;  %1473 = vmax.xlane.f32.xlu0 %v1472_v16  ;;  %v1475_v40 = vmax.f32 %v5627_v50, %v5631_v56 }
 0x27b   : > { %1476 = vmax.xlane.f32.xlu1 %v1475_v40 }
 0x27d   : > { %v5635_v36 = vpop.f32.mrb[80].mxu0 }
 0x27e   : > { %7702 = vst [vmem:[#allocation35_spill] sm:$0xff] %v5635_v36  ;;  %v5637_v30 = vpop.f32.mrb[81].mxu0 }
 0x27f   : > { %7703 = vst [vmem:[#allocation36_spill] sm:$0xff] %v5637_v30  ;;  %v5639_v22 = vpop.f32.mrb[82].mxu0  ;;  %v1478_v48 = vmax.f32 %v5635_v36, %v5637_v30 }
 0x280   : > { %7704 = vst [vmem:[#allocation37_spill] sm:$0xff] %v5639_v22  ;;  %v5643_v12 = vpop.f32.mrb[83].mxu0 }
 0x281   : > { %7705 = vst [vmem:[#allocation38_spill] sm:$0xff] %v5643_v12  ;;  %1479 = vmax.xlane.f32.xlu0 %v1478_v48  ;;  %v1481_v29 = vmax.f32 %v5639_v22, %v5643_v12 }
 0x283   : > { %1482 = vmax.xlane.f32.xlu1 %v1481_v29 }
 0x285   : > { %v5647_v51 = vpop.f32.mrb[84].mxu0 }
 0x286   : > { %7706 = vst [vmem:[#allocation39_spill] sm:$0xff] %v5647_v51  ;;  %v5649_v10 = vpop.f32.mrb[85].mxu0 }
 0x287   : > { %7707 = vst [vmem:[#allocation40_spill] sm:$0xff] %v5649_v10  ;;  %v5651_v58 = vpop.f32.mrb[86].mxu0  ;;  %v1484_v3 = vmax.f32 %v5647_v51, %v5649_v10 }
 0x288   : > { %7708 = vst [vmem:[#allocation41_spill] sm:$0xff] %v5651_v58  ;;  %v5655_v19 = vpop.f32.mrb[87].mxu0 }
 0x289   : > { %7709 = vst [vmem:[#allocation42_spill] sm:$0xff] %v5655_v19  ;;  %v1487_v1 = vmax.f32 %v5651_v58, %v5655_v19 }
 0x28b   : > { %1488 = vmax.xlane.f32.xlu1 %v1487_v1 }
 0x28d   : > { %v5659_v4 = vpop.f32.mrb[88].mxu0 }
 0x28e   : > { %v5661_v9 = vpop.f32.mrb[89].mxu0 }
 0x28f   : > { %7710 = vst [vmem:[#allocation43_spill] sm:$0xff] %v5661_v9  ;;  %v5663_v44 = vpop.f32.mrb[90].mxu0 }
 0x290   : > { %v5667_v61 = vpop.f32.mrb[91].mxu0 }
 0x291   : > { %7711 = vst [vmem:[#allocation44_spill] sm:$0xff] %v5667_v61 }
 0x295   : > { %v5671_v5 = vpop.f32.mrb[92].mxu0 }
 0x296   : > { %v5673_v45 = vpop.f32.mrb[93].mxu0 }
 0x297   : > { %7712 = vst [vmem:[#allocation45_spill] sm:$0xff] %v5673_v45  ;;  %v5675_v28 = vpop.f32.mrb[94].mxu0 }
 0x298   : > { %v5679_v2 = vpop.f32.mrb[95].mxu0 }
 0x299   : > { %7713 = vst [vmem:[#allocation46_spill] sm:$0xff] %v5679_v2 }
 0x29d   : > { %v5683_v52 = vpop.f32.mrb[96].mxu0 }
 0x29e   : > { %v5685_v27 = vpop.f32.mrb[96].mxu1  ;;  %v5687_v24 = vpop.f32.mrb[97].mxu0 }
 0x29f   : > { %7714 = vst [vmem:[#allocation47_spill] sm:$0xff] %v5687_v24  ;;  %v5689_v8 = vpop.f32.mrb[97].mxu1  ;;  %v5691_v14 = vpop.f32.mrb[98].mxu0 }
 0x2a0   : > { %7715 = vst [vmem:[#allocation48_spill] sm:$0xff] %v5691_v14  ;;  %v5693_v31 = vpop.f32.mrb[98].mxu1  ;;  %v2159_v16 = vmax.f32 %v5685_v27, %v5689_v8  ;;  %v5699_v48 = vpop.f32.mrb[99].mxu0 }
 0x2a1   : > { %7716 = vst [vmem:[#allocation49_spill] sm:$0xff] %v5699_v48  ;;  %v5701_v29 = vpop.f32.mrb[99].mxu1 }
 0x2a2   : > { %2160 = vmax.xlane.f32.xlu0 %v2159_v16  ;;  %v2162_v1 = vmax.f32 %v5693_v31, %v5701_v29 }
 0x2a5   : > { %v5709_v54 = vpop.f32.mrb[100].mxu0 }
 0x2a6   : > { %v5707_v38 = vpop.f32.mrb[100].mxu1  ;;  %2163 = vmax.xlane.f32.xlu0 %v2162_v1  ;;  %7717 = vst [vmem:[#allocation50_spill] sm:$0xff] %v5709_v54  ;;  %v5711_v49 = vpop.f32.mrb[101].mxu0 }
 0x2a7   : > { %7718 = vst [vmem:[#allocation51_spill] sm:$0xff] %v5711_v49  ;;  %v5713_v34 = vpop.f32.mrb[101].mxu1  ;;  %v5715_v40 = vpop.f32.mrb[102].mxu0 }
 0x2a8   : > { %v5717_v59 = vpop.f32.mrb[102].mxu1  ;;  %v2165_v16 = vmax.f32 %v5707_v38, %v5713_v34  ;;  %v5723_v37 = vpop.f32.mrb[103].mxu0 }
 0x2a9   : > { %7719 = vst [vmem:[#allocation52_spill] sm:$0xff] %v5723_v37  ;;  %v5725_v32 = vpop.f32.mrb[103].mxu1 }
 0x2aa   : > { %1485 = vmax.xlane.f32.xlu0 %v1484_v3  ;;  %2166 = vmax.xlane.f32.xlu1 %v2165_v16  ;;  %v2168_v1 = vmax.f32 %v5717_v59, %v5725_v32 }
 0x2ad   : > { %v5733_v6 = vpop.f32.mrb[104].mxu0 }
 0x2ae   : > { %v5731_v25 = vpop.f32.mrb[104].mxu1  ;;  %2169 = vmax.xlane.f32.xlu1 %v2168_v1  ;;  %v5735_v46 = vpop.f32.mrb[105].mxu0 }
 0x2af   : > { %7720 = vst [vmem:[#allocation53_spill] sm:$0xff] %v5735_v46  ;;  %v5737_v42 = vpop.f32.mrb[105].mxu1  ;;  %v5739_v60 = vpop.f32.mrb[106].mxu0 }
 0x2b0   : > { %v5741_v57 = vpop.f32.mrb[106].mxu1  ;;  %v2171_v3 = vmax.f32 %v5731_v25, %v5737_v42  ;;  %v5747_v53 = vpop.f32.mrb[107].mxu0 }
 0x2b1   : > { %v5749_v62 = vpop.f32.mrb[107].mxu1 }
 0x2b2   : > { %2172 = vmax.xlane.f32.xlu0 %v2171_v3  ;;  %v2174_v1 = vmax.f32 %v5741_v57, %v5749_v62 }
 0x2b4   : > { %2175 = vmax.xlane.f32.xlu1 %v2174_v1 }
 0x2b5   : > { %v5755_v39 = vpop.f32.mrb[108].mxu0 }
 0x2b6   : > { %7721 = vst [vmem:[#allocation54_spill] sm:$0xff] %v5755_v39  ;;  %v5757_v15 = vpop.f32.mrb[108].mxu1  ;;  %v5759_v41 = vpop.f32.mrb[109].mxu0 }
 0x2b7   : > { %7722 = vst [vmem:[#allocation55_spill] sm:$0xff] %v5759_v41  ;;  %v5761_v17 = vpop.f32.mrb[109].mxu1  ;;  %v5763_v16 = vpop.f32.mrb[110].mxu0 }
 0x2b8   : > { %v5765_v10 = vpop.f32.mrb[110].mxu1  ;;  %v2177_v3 = vmax.f32 %v5757_v15, %v5761_v17  ;;  %v5771_v0 = vpop.f32.mrb[111].mxu0 }
 0x2b9   : > { %v5773_v1 = vpop.f32.mrb[111].mxu1 }
 0x2ba   : > { %2178 = vmax.xlane.f32.xlu0 %v2177_v3  ;;  %v2180_v19 = vmax.f32 %v5765_v10, %v5773_v1 }
 0x2bc   : > { %2181 = vmax.xlane.f32.xlu1 %v2180_v19 }
 0x2bd   : > { %v5779_v12 = vpop.f32.mrb[112].mxu0 }
 0x2be   : > { %7723 = vst [vmem:[#allocation56_spill] sm:$0xff] %v5779_v12  ;;  %v5781_v22 = vpop.f32.mrb[112].mxu1  ;;  %v5783_v30 = vpop.f32.mrb[113].mxu0 }
 0x2bf   : > { %7724 = vst [vmem:[#allocation57_spill] sm:$0xff] %v5783_v30  ;;  %v5785_v36 = vpop.f32.mrb[113].mxu1  ;;  %v5787_v51 = vpop.f32.mrb[114].mxu0 }
 0x2c0   : > { %7725 = vst [vmem:[#allocation58_spill] sm:$0xff] %v5787_v51  ;;  %v5789_v56 = vpop.f32.mrb[114].mxu1  ;;  %v2183_v3 = vmax.f32 %v5781_v22, %v5785_v36  ;;  %v5795_v58 = vpop.f32.mrb[115].mxu0 }
 0x2c1   : > { %7726 = vst [vmem:[#allocation59_spill] sm:$0xff] %v5795_v58  ;;  %v5797_v19 = vpop.f32.mrb[115].mxu1 }
 0x2c2   : > { %2184 = vmax.xlane.f32.xlu0 %v2183_v3  ;;  %v2186_v21 = vmax.f32 %v5789_v56, %v5797_v19 }
 0x2c4   : > { %2187 = vmax.xlane.f32.xlu1 %v2186_v21 }
 0x2c5   : > { %v5803_v26 = vpop.f32.mrb[116].mxu0 }
 0x2c6   : > { %7727 = vst [vmem:[#allocation60_spill] sm:$0xff] %v5803_v26  ;;  %v5805_v11 = vpop.f32.mrb[116].mxu1  ;;  %v5807_v13 = vpop.f32.mrb[117].mxu0 }
 0x2c7   : > { %7728 = vst [vmem:[#allocation61_spill] sm:$0xff] %v5807_v13  ;;  %v5809_v47 = vpop.f32.mrb[117].mxu1  ;;  %v5811_v50 = vpop.f32.mrb[118].mxu0 }
 0x2c8   : > { %7729 = vst [vmem:[#allocation62_spill] sm:$0xff] %v5811_v50  ;;  %v5813_v30 = vpop.f32.mrb[118].mxu1  ;;  %v2189_v3 = vmax.f32 %v5805_v11, %v5809_v47  ;;  %v5819_v7 = vpop.f32.mrb[119].mxu0 }
 0x2c9   : > { %7730 = vst [vmem:[#allocation63_spill] sm:$0xff] %v5819_v7  ;;  %v5821_v21 = vpop.f32.mrb[119].mxu1 }
 0x2ca   : > { %2190 = vmax.xlane.f32.xlu0 %v2189_v3  ;;  %v2192_v58 = vmax.f32 %v5813_v30, %v5821_v21 }
 0x2cc   : > { %2193 = vmax.xlane.f32.xlu1 %v2192_v58 }
 0x2cd   : > { %v5827_v35 = vpop.f32.mrb[120].mxu0 }
 0x2ce   : > { %7731 = vst [vmem:[#allocation64_spill] sm:$0xff] %v5827_v35  ;;  %v5829_v23 = vpop.f32.mrb[120].mxu1  ;;  %v5831_v20 = vpop.f32.mrb[121].mxu0 }
 0x2cf   : > { %7732 = vst [vmem:[#allocation65_spill] sm:$0xff] %v5831_v20  ;;  %v5833_v43 = vpop.f32.mrb[121].mxu1  ;;  %v5837_v13 = vpop.f32.mrb[122].mxu0 }
 0x2d0   : > { %7733 = vst [vmem:[#allocation66_spill] sm:$0xff] %v5837_v13  ;;  %v5839_v3 = vpop.f32.mrb[122].mxu1  ;;  %v2195_v26 = vmax.f32 %v5829_v23, %v5833_v43  ;;  %v5843_v51 = vpop.f32.mrb[123].mxu0 }
 0x2d1   : > { %7734 = vst [vmem:[#allocation67_spill] sm:$0xff] %v5843_v51  ;;  %v5845_v58 = vpop.f32.mrb[123].mxu1 }
 0x2d2   : > { %7735 = vst [vmem:[#allocation68_spill] sm:$0xff] %v5845_v58  ;;  %2196 = vmax.xlane.f32.xlu0 %v2195_v26  ;;  %v2198_v50 = vmax.f32 %v5839_v3, %v5845_v58 }
 0x2d4   : > { %2199 = vmax.xlane.f32.xlu1 %v2198_v50 }
 0x2d5   : > { %v5853_v20 = vpop.f32.mrb[124].mxu0 }
 0x2d6   : > { %v5851_v12 = vpop.f32.mrb[124].mxu1  ;;  %7736 = vst [vmem:[#allocation69_spill] sm:$0xff] %v5853_v20  ;;  %v5857_v63 = vpop.f32.mrb[125].mxu0 }
 0x2d7   : > { %v5855_v35 = vpop.f32.mrb[125].mxu1  ;;  %7738 = vst [vmem:[#allocation71_spill] sm:$0xff] %v5857_v63  ;;  %v5865_v7 = vpop.f32.mrb[126].mxu0 }
 0x2d8   : > { %7737 = vst [vmem:[#allocation70_spill] sm:$0xff] %v5855_v35  ;;  %v5859_v55 = vpop.f32.mrb[126].mxu1  ;;  %v2201_v26 = vmax.f32 %v5851_v12, %v5855_v35  ;;  %7739 = vst [vmem:[#allocation72_spill] sm:$0xff] %v5865_v7  ;;  %v5869_v50 = vpop.f32.mrb[127].mxu0 }
 0x2d9   : > { %v5867_v51 = vpop.f32.mrb[127].mxu1  ;;  %7741 = vst [vmem:[#allocation74_spill] sm:$0xff] %v5869_v50 }
 0x2da   : > { %7740 = vst [vmem:[#allocation73_spill] sm:$0xff] %v5867_v51  ;;  %2202 = vmax.xlane.f32.xlu0 %v2201_v26  ;;  %v2204_v18 = vmax.f32 %v5859_v55, %v5867_v51 }
 0x2dc   : > { %2205 = vmax.xlane.f32.xlu1 %v2204_v18 }
 0x2de   : > { %v5875_v58 = vpop.f32.mrb[128].mxu1 }
 0x2df   : > { %7742 = vst [vmem:[#allocation75_spill] sm:$0xff] %v5875_v58  ;;  %v5877_v33 = vpop.f32.mrb[129].mxu1 }
 0x2e0   : > { %7743 = vst [vmem:[#allocation76_spill] sm:$0xff] %v5877_v33  ;;  %v5879_v63 = vpop.f32.mrb[130].mxu1  ;;  %v2207_v20 = vmax.f32 %v5875_v58, %v5877_v33 }
 0x2e1   : > { %7744 = vst [vmem:[#allocation77_spill] sm:$0xff] %v5879_v63  ;;  %v5883_v35 = vpop.f32.mrb[131].mxu1 }
 0x2e2   : > { %7745 = vst [vmem:[#allocation78_spill] sm:$0xff] %v5883_v35  ;;  %2208 = vmax.xlane.f32.xlu0 %v2207_v20  ;;  %v2210_v26 = vmax.f32 %v5879_v63, %v5883_v35 }
 0x2e4   : > { %2211 = vmax.xlane.f32.xlu1 %v2210_v26 }
 0x2e6   : > { %v5887_v13 = vpop.f32.mrb[132].mxu1 }
 0x2e7   : > { %7746 = vst [vmem:[#allocation79_spill] sm:$0xff] %v5887_v13  ;;  %v5889_v50 = vpop.f32.mrb[133].mxu1 }
 0x2e8   : > { %7747 = vst [vmem:[#allocation80_spill] sm:$0xff] %v5889_v50  ;;  %v5891_v18 = vpop.f32.mrb[134].mxu1  ;;  %v2213_v7 = vmax.f32 %v5887_v13, %v5889_v50 }
 0x2e9   : > { %7748 = vst [vmem:[#allocation81_spill] sm:$0xff] %v5891_v18  ;;  %v5895_v51 = vpop.f32.mrb[135].mxu1 }
 0x2ea   : > { %7749 = vst [vmem:[#allocation82_spill] sm:$0xff] %v5895_v51  ;;  %2214 = vmax.xlane.f32.xlu0 %v2213_v7  ;;  %v2216_v33 = vmax.f32 %v5891_v18, %v5895_v51 }
 0x2ec   : > { %2217 = vmax.xlane.f32.xlu1 %v2216_v33 }
 0x2ee   : > { %v5899_v20 = vpop.f32.mrb[136].mxu1 }
 0x2ef   : > { %7750 = vst [vmem:[#allocation83_spill] sm:$0xff] %v5899_v20  ;;  %v5901_v35 = vpop.f32.mrb[137].mxu1 }
 0x2f0   : > { %7751 = vst [vmem:[#allocation84_spill] sm:$0xff] %v5901_v35  ;;  %v5903_v26 = vpop.f32.mrb[138].mxu1  ;;  %v2219_v63 = vmax.f32 %v5899_v20, %v5901_v35 }
 0x2f1   : > { %7752 = vst [vmem:[#allocation85_spill] sm:$0xff] %v5903_v26  ;;  %v5907_v58 = vpop.f32.mrb[139].mxu1 }
 0x2f2   : > { %7753 = vst [vmem:[#allocation86_spill] sm:$0xff] %v5907_v58  ;;  %2220 = vmax.xlane.f32.xlu0 %v2219_v63  ;;  %v2222_v50 = vmax.f32 %v5903_v26, %v5907_v58 }
 0x2f4   : > { %2223 = vmax.xlane.f32.xlu1 %v2222_v50 }
 0x2f6   : > { %v5911_v7 = vpop.f32.mrb[140].mxu1 }
 0x2f7   : > { %7754 = vst [vmem:[#allocation87_spill] sm:$0xff] %v5911_v7  ;;  %v5913_v51 = vpop.f32.mrb[141].mxu1 }
 0x2f8   : > { %7755 = vst [vmem:[#allocation88_spill] sm:$0xff] %v5913_v51  ;;  %v5915_v33 = vpop.f32.mrb[142].mxu1  ;;  %v2225_v18 = vmax.f32 %v5911_v7, %v5913_v51 }
 0x2f9   : > { %7756 = vst [vmem:[#allocation89_spill] sm:$0xff] %v5915_v33  ;;  %v5919_v13 = vpop.f32.mrb[143].mxu1 }
 0x2fa   : > { %7757 = vst [vmem:[#allocation90_spill] sm:$0xff] %v5919_v13  ;;  %2226 = vmax.xlane.f32.xlu0 %v2225_v18  ;;  %v2228_v35 = vmax.f32 %v5915_v33, %v5919_v13 }
 0x2fc   : > { %2229 = vmax.xlane.f32.xlu1 %v2228_v35 }
 0x2fe   : > { %v5923_v63 = vpop.f32.mrb[144].mxu1 }
 0x2ff   : > { %7758 = vst [vmem:[#allocation91_spill] sm:$0xff] %v5923_v63  ;;  %v5925_v58 = vpop.f32.mrb[145].mxu1 }
 0x300   : > { %7759 = vst [vmem:[#allocation92_spill] sm:$0xff] %v5925_v58  ;;  %v5927_v50 = vpop.f32.mrb[146].mxu1  ;;  %v2231_v26 = vmax.f32 %v5923_v63, %v5925_v58 }
 0x301   : > { %7760 = vst [vmem:[#allocation93_spill] sm:$0xff] %v5927_v50  ;;  %v5931_v20 = vpop.f32.mrb[147].mxu1 }
 0x302   : > { %7761 = vst [vmem:[#allocation94_spill] sm:$0xff] %v5931_v20  ;;  %2232 = vmax.xlane.f32.xlu0 %v2231_v26  ;;  %v2234_v51 = vmax.f32 %v5927_v50, %v5931_v20 }
 0x304   : > { %2235 = vmax.xlane.f32.xlu1 %v2234_v51 }
 0x306   : > { %v5935_v18 = vpop.f32.mrb[148].mxu1 }
 0x307   : > { %7762 = vst [vmem:[#allocation95_spill] sm:$0xff] %v5935_v18  ;;  %v5937_v13 = vpop.f32.mrb[149].mxu1 }
 0x308   : > { %7763 = vst [vmem:[#allocation96_spill] sm:$0xff] %v5937_v13  ;;  %v5939_v35 = vpop.f32.mrb[150].mxu1  ;;  %v2237_v33 = vmax.f32 %v5935_v18, %v5937_v13 }
 0x309   : > { %7764 = vst [vmem:[#allocation97_spill] sm:$0xff] %v5939_v35  ;;  %v5943_v7 = vpop.f32.mrb[151].mxu1 }
 0x30a   : > { %7765 = vst [vmem:[#allocation98_spill] sm:$0xff] %v5943_v7  ;;  %2238 = vmax.xlane.f32.xlu0 %v2237_v33  ;;  %v2240_v58 = vmax.f32 %v5939_v35, %v5943_v7 }
 0x30c   : > { %2241 = vmax.xlane.f32.xlu1 %v2240_v58 }
 0x30e   : > { %v5947_v26 = vpop.f32.mrb[152].mxu1 }
 0x30f   : > { %v5949_v20 = vpop.f32.mrb[153].mxu1 }
 0x310   : > { %7766 = vst [vmem:[#allocation99_spill] sm:$0xff] %v5949_v20  ;;  %v5951_v51 = vpop.f32.mrb[154].mxu1  ;;  %v2243_v50 = vmax.f32 %v5947_v26, %v5949_v20 }
 0x311   : > { %7767 = vst [vmem:[#allocation100_spill] sm:$0xff] %v5951_v51  ;;  %v5955_v63 = vpop.f32.mrb[155].mxu1 }
 0x312   : > { %7768 = vst [vmem:[#allocation101_spill] sm:$0xff] %v5955_v63  ;;  %2244 = vmax.xlane.f32.xlu0 %v2243_v50  ;;  %v2246_v13 = vmax.f32 %v5951_v51, %v5955_v63  ;;  %v5971_v50 = vpop.xlane.xlu0 %1455  ;;  %v5976_v63 = vpop.xlane.xlu1 %1458 }
 0x314   : > { %2247 = vmax.xlane.f32.xlu1 %v2246_v13  ;;  %v7772_v13 = vmax.f32 %v5659_v4, %v5661_v9 }
 0x316   : > { %v5959_v33 = vpop.f32.mrb[156].mxu1  ;;  %v5978_v51 = vpop.xlane.xlu0 %1461 }
 0x317   : > { %v5961_v7 = vpop.f32.mrb[157].mxu1 }
 0x318   : > { %7769 = vst [vmem:[#allocation102_spill] sm:$0xff] %v5961_v7  ;;  %v5963_v58 = vpop.f32.mrb[158].mxu1  ;;  %v2249_v35 = vmax.f32 %v5959_v33, %v5961_v7  ;;  %v7773_v7 = vmax.f32 %v5663_v44, %v5667_v61 }
 0x319   : > { %7770 = vst [vmem:[#allocation103_spill] sm:$0xff] %v5963_v58  ;;  %v5967_v18 = vpop.f32.mrb[159].mxu1 }
 0x31a   : > { %7771 = vst [vmem:[#allocation104_spill] sm:$0xff] %v5967_v18  ;;  %2250 = vmax.xlane.f32.xlu0 %v2249_v35  ;;  %v2252_v20 = vmax.f32 %v5963_v58, %v5967_v18  ;;  %v7774_v35 = vmax.f32 %v5671_v5, %v5673_v45  ;;  %v5986_v18 = vpop.xlane.xlu1 %1464  ;;  %v5988_v58 = vpop.xlane.xlu0 %1467 }
 0x31c   : > { %2253 = vmax.xlane.f32.xlu1 %v2252_v20  ;;  %v7775_v20 = vmax.f32 %v5675_v28, %v5679_v2 }
 0x31e   : > { %1491 = vmax.xlane.f32.xlu0 %v7772_v13  ;;  %v7776_v13 = vmax.f32 %v5683_v52, %v5687_v24  ;;  %v5996_v9 = vpop.xlane.xlu1 %1470  ;;  %v5998_v61 = vpop.xlane.xlu0 %1473 }
 0x320   : > { %1494 = vmax.xlane.f32.xlu1 %v7773_v7  ;;  %v7777_v7 = vmax.f32 %v5691_v14, %v5699_v48 }
 0x322   : > { %1497 = vmax.xlane.f32.xlu0 %v7774_v35  ;;  %v7778_v35 = vmax.f32 %v5709_v54, %v5711_v49  ;;  %v6006_v45 = vpop.xlane.xlu1 %1476  ;;  %v6008_v2 = vpop.xlane.xlu0 %1479 }
 0x324   : > { %1500 = vmax.xlane.f32.xlu1 %v7775_v20  ;;  %v7779_v20 = vmax.f32 %v5715_v40, %v5723_v37 }
 0x326   : > { %1503 = vmax.xlane.f32.xlu0 %v7776_v13  ;;  %v7780_v13 = vmax.f32 %v5733_v6, %v5735_v46  ;;  %v6016_v24 = vpop.xlane.xlu1 %1482 }
 0x328   : > { %1506 = vmax.xlane.f32.xlu1 %v7777_v7 }
 0x32a   : > { %1509 = vmax.xlane.f32.xlu0 %v7778_v35  ;;  %v7781_v35 = vmax.f32 %v5739_v60, %v5747_v53  ;;  %v6026_v37 = vpop.xlane.xlu1 %1488 }
 0x32c   : > { %1512 = vmax.xlane.f32.xlu1 %v7779_v20  ;;  %v7782_v20 = vmax.f32 %v5755_v39, %v5759_v41 }
 0x32e   : > { %1515 = vmax.xlane.f32.xlu0 %v7780_v13 }
 0x32f   : > { %v2161_v48 = vpop.xlane.xlu0 %2160 }
 0x330   : > { %v2255_v7 = vsub.f32 %v5685_v27, %v2161_v48  ;;  %v2256_v49 = vsub.f32 %v5689_v8, %v2161_v48  ;;  %1518 = vmax.xlane.f32.xlu1 %v7781_v35  ;;  %v7783_v8 = vmax.f32 %v5763_v16, %v5771_v0 }
 0x332   : > { %v2319_v54 = vmul.f32 1.442695, %v2255_v7  ;;  %v2321_v14 = vmul.f32 1.442695, %v2256_v49  ;;  %1521 = vmax.xlane.f32.xlu0 %v7782_v20 }
 0x333   : > { %v2164_v13 = vpop.xlane.xlu0 %2163 }
 0x334   : > { %4167 = vpow2.f32 %v2319_v54  ;;  %v2257_v46 = vsub.f32 %v5693_v31, %v2164_v13  ;;  %v2258_v27 = vsub.f32 %v5701_v29, %v2164_v13  ;;  %1524 = vmax.xlane.f32.xlu1 %v7783_v8 }
 0x335   : > { %4169 = vpow2.f32 %v2321_v14 }
 0x336   : > { %v2323_v48 = vmul.f32 1.442695, %v2257_v46  ;;  %v2325_v7 = vmul.f32 1.442695, %v2258_v27 }
 0x337   : > { %v2167_v49 = vpop.xlane.xlu1 %2166  ;;  %v6035_v54 = vpop.xlane.xlu0 %1485 }
 0x338   : > { %4171 = vpow2.f32 %v2323_v48  ;;  %v2259_v35 = vsub.f32 %v5707_v38, %v2167_v49  ;;  %v2260_v20 = vsub.f32 %v5713_v34, %v2167_v49 }
 0x339   : > { %4173 = vpow2.f32 %v2325_v7 }
 0x33a   : > { %v2327_v41 = vmul.f32 1.442695, %v2259_v35  ;;  %v2329_v31 = vmul.f32 1.442695, %v2260_v20 }
 0x33b   : > { %v2170_v39 = vpop.xlane.xlu1 %2169 }
 0x33c   : > { %v2261_v29 = vsub.f32 %v5717_v59, %v2170_v39  ;;  %v2262_v13 = vsub.f32 %v5725_v32, %v2170_v39  ;;  %4175 = vpow2.f32 %v2327_v41 }
 0x33d   : > { %4177 = vpow2.f32 %v2329_v31 }
 0x33e   : > { %v6039_v8 = vpop.eup %4167  ;;  %v2331_v46 = vmul.f32 1.442695, %v2261_v29  ;;  %v2333_v14 = vmul.f32 1.442695, %v2262_v13 }
 0x33f   : > { %v6041_v27 = vpop.eup %4169  ;;  %v2173_v38 = vpop.xlane.xlu0 %2172 }
 0x340   : > { %4179 = vpow2.f32 %v2331_v46  ;;  %v2263_v34 = vsub.f32 %v5731_v25, %v2173_v38  ;;  %v2264_v48 = vsub.f32 %v5737_v42, %v2173_v38  ;;  %v2447_v7 = vadd.f32 %v6041_v27, %v6039_v8 }
 0x341   : > { %4181 = vpow2.f32 %v2333_v14  ;;  %v2176_v59 = vpop.xlane.xlu1 %2175 }
 0x342   : > { %v6047_v39 = vpop.eup %4171  ;;  %v2335_v32 = vmul.f32 1.442695, %v2263_v34  ;;  %v2337_v41 = vmul.f32 1.442695, %v2264_v48  ;;  %v2265_v49 = vsub.f32 %v5741_v57, %v2176_v59  ;;  %v2266_v35 = vsub.f32 %v5749_v62, %v2176_v59  ;;  %2448 = vadd.xlane.f32.xlu0 %v2447_v7 }
 0x343   : > { %v6051_v20 = vpop.eup %4173 }
 0x344   : > { %4183 = vpow2.f32 %v2335_v32  ;;  %v2339_v25 = vmul.f32 1.442695, %v2265_v49  ;;  %v2341_v31 = vmul.f32 1.442695, %v2266_v35  ;;  %v2450_v42 = vadd.f32 %v6051_v20, %v6047_v39 }
 0x345   : > { %4185 = vpow2.f32 %v2337_v41 }
 0x346   : > { %4187 = vpow2.f32 %v2339_v25  ;;  %2451 = vadd.xlane.f32.xlu1 %v2450_v42  ;;  %v6055_v13 = vpop.eup %4175 }
 0x347   : > { %4189 = vpow2.f32 %v2341_v31  ;;  %v2179_v29 = vpop.xlane.xlu0 %2178  ;;  %v6059_v46 = vpop.eup %4177 }
 0x348   : > { %v2267_v57 = vsub.f32 %v5757_v15, %v2179_v29  ;;  %v2268_v62 = vsub.f32 %v5761_v17, %v2179_v29  ;;  %v2453_v41 = vadd.f32 %v6059_v46, %v6055_v13 }
 0x349   : > { %v2182_v14 = vpop.xlane.xlu1 %2181 }
 0x34a   : > { %v6061_v38 = vpop.eup %4179  ;;  %v2343_v34 = vmul.f32 1.442695, %v2267_v57  ;;  %v2345_v48 = vmul.f32 1.442695, %v2268_v62  ;;  %v2269_v7 = vsub.f32 %v5765_v10, %v2182_v14  ;;  %v2270_v59 = vsub.f32 %v5773_v1, %v2182_v14  ;;  %2454 = vadd.xlane.f32.xlu0 %v2453_v41 }
 0x34b   : > { %v6065_v32 = vpop.eup %4181 }
 0x34c   : > { %4191 = vpow2.f32 %v2343_v34  ;;  %v2347_v15 = vmul.f32 1.442695, %v2269_v7  ;;  %v2349_v49 = vmul.f32 1.442695, %v2270_v59  ;;  %v2456_v17 = vadd.f32 %v6065_v32, %v6061_v38 }
 0x34d   : > { %4193 = vpow2.f32 %v2345_v48 }
 0x34e   : > { %v6071_v35 = vpop.eup %4183  ;;  %4195 = vpow2.f32 %v2347_v15  ;;  %2457 = vadd.xlane.f32.xlu1 %v2456_v17 }
 0x34f   : > { %v6073_v10 = vpop.eup %4185  ;;  %4197 = vpow2.f32 %v2349_v49  ;;  %v2185_v1 = vpop.xlane.xlu0 %2184 }
 0x350   : > { %v6075_v25 = vpop.eup %4187  ;;  %v2271_v31 = vsub.f32 %v5781_v22, %v2185_v1  ;;  %v2272_v42 = vsub.f32 %v5785_v36, %v2185_v1  ;;  %v2459_v29 = vadd.f32 %v6073_v10, %v6071_v35 }
 0x351   : > { %v6081_v57 = vpop.eup %4189  ;;  %v2188_v62 = vpop.xlane.xlu1 %2187 }
 0x352   : > { %v2351_v14 = vmul.f32 1.442695, %v2271_v31  ;;  %v2353_v34 = vmul.f32 1.442695, %v2272_v42  ;;  %v2273_v48 = vsub.f32 %v5789_v56, %v2188_v62  ;;  %v2274_v7 = vsub.f32 %v5797_v19, %v2188_v62  ;;  %2460 = vadd.xlane.f32.xlu0 %v2459_v29 }
 0x353   : > { %v2462_v59 = vadd.f32 %v6081_v57, %v6075_v25 }
 0x354   : > { %4199 = vpow2.f32 %v2351_v14  ;;  %v2355_v22 = vmul.f32 1.442695, %v2273_v48  ;;  %v2357_v41 = vmul.f32 1.442695, %v2274_v7 }
 0x355   : > { %4201 = vpow2.f32 %v2353_v34  ;;  %2463 = vadd.xlane.f32.xlu1 %v2462_v59 }
 0x356   : > { %v6087_v36 = vpop.eup %4191  ;;  %4203 = vpow2.f32 %v2355_v22 }
 0x357   : > { %v6089_v15 = vpop.eup %4193  ;;  %4205 = vpow2.f32 %v2357_v41  ;;  %v2191_v49 = vpop.xlane.xlu0 %2190 }
 0x358   : > { %v6091_v17 = vpop.eup %4195  ;;  %v2275_v56 = vsub.f32 %v5805_v11, %v2191_v49  ;;  %v2276_v19 = vsub.f32 %v5809_v47, %v2191_v49  ;;  %v2465_v1 = vadd.f32 %v6089_v15, %v6087_v36 }
 0x359   : > { %v6097_v31 = vpop.eup %4197  ;;  %v2194_v42 = vpop.xlane.xlu1 %2193 }
 0x35a   : > { %v2359_v29 = vmul.f32 1.442695, %v2275_v56  ;;  %v2361_v62 = vmul.f32 1.442695, %v2276_v19  ;;  %v2277_v14 = vsub.f32 %v5813_v30, %v2194_v42  ;;  %v2278_v34 = vsub.f32 %v5821_v21, %v2194_v42  ;;  %2466 = vadd.xlane.f32.xlu0 %v2465_v1 }
 0x35b   : > { %v2468_v48 = vadd.f32 %v6097_v31, %v6091_v17 }
 0x35c   : > { %4207 = vpow2.f32 %v2359_v29  ;;  %v2363_v11 = vmul.f32 1.442695, %v2277_v14  ;;  %v2365_v7 = vmul.f32 1.442695, %v2278_v34 }
 0x35d   : > { %4209 = vpow2.f32 %v2361_v62  ;;  %2469 = vadd.xlane.f32.xlu1 %v2468_v48  ;;  %v7785_v62 = vld [vmem:[#allocation68_spill] sm:$0xff] }
 0x35e   : > { %v6103_v47 = vpop.eup %4199  ;;  %4211 = vpow2.f32 %v2363_v11 }
 0x35f   : > { %v6105_v59 = vpop.eup %4201  ;;  %4213 = vpow2.f32 %v2365_v7  ;;  %v2197_v22 = vpop.xlane.xlu0 %2196 }
 0x360   : > { %v6107_v41 = vpop.eup %4203  ;;  %v2279_v30 = vsub.f32 %v5829_v23, %v2197_v22  ;;  %v2280_v21 = vsub.f32 %v5833_v43, %v2197_v22  ;;  %v2471_v49 = vadd.f32 %v6105_v59, %v6103_v47 }
 0x361   : > { %7784 = vst [vmem:[#allocation105_spill] sm:$0xff] %v6107_v41  ;;  %v6113_v56 = vpop.eup %4205  ;;  %v2200_v19 = vpop.xlane.xlu1 %2199 }
 0x362   : > { %v2367_v1 = vmul.f32 1.442695, %v2279_v30  ;;  %v2369_v42 = vmul.f32 1.442695, %v2280_v21  ;;  %v2281_v29 = vsub.f32 %v5839_v3, %v2200_v19  ;;  %v2282_v14 = vsub.f32 %v7785_v62, %v2200_v19  ;;  %2472 = vadd.xlane.f32.xlu0 %v2471_v49  ;;  %v7789_v30 = vld [vmem:[#allocation70_spill] sm:$0xff] }
 0x363   : > { %v2474_v34 = vadd.f32 %v6113_v56, %v6107_v41 }
 0x364   : > { %4215 = vpow2.f32 %v2367_v1  ;;  %v2371_v23 = vmul.f32 1.442695, %v2281_v29  ;;  %v2373_v48 = vmul.f32 1.442695, %v2282_v14  ;;  %v7791_v14 = vld [vmem:[#allocation73_spill] sm:$0xff] }
 0x365   : > { %4217 = vpow2.f32 %v2369_v42  ;;  %2475 = vadd.xlane.f32.xlu1 %v2474_v34 }
 0x366   : > { %v6119_v43 = vpop.eup %4207  ;;  %4219 = vpow2.f32 %v2371_v23 }
 0x367   : > { %7786 = vst [vmem:[#allocation68_spill] sm:$0xff] %v6119_v43  ;;  %v6121_v11 = vpop.eup %4209  ;;  %4221 = vpow2.f32 %v2373_v48  ;;  %v2203_v7 = vpop.xlane.xlu0 %2202 }
 0x368   : > { %7787 = vst [vmem:[#allocation106_spill] sm:$0xff] %v6121_v11  ;;  %v6123_v22 = vpop.eup %4211  ;;  %v2283_v3 = vsub.f32 %v5851_v12, %v2203_v7  ;;  %v2284_v21 = vsub.f32 %v7789_v30, %v2203_v7  ;;  %v2477_v49 = vadd.f32 %v6121_v11, %v6119_v43  ;;  %v7799_v43 = vld [vmem:[#allocation78_spill] sm:$0xff] }
 0x369   : > { %7788 = vst [vmem:[#allocation107_spill] sm:$0xff] %v6123_v22  ;;  %v6129_v19 = vpop.eup %4213  ;;  %v2206_v1 = vpop.xlane.xlu1 %2205 }
 0x36a   : > { %7790 = vst [vmem:[#allocation70_spill] sm:$0xff] %v6129_v19  ;;  %v2375_v42 = vmul.f32 1.442695, %v2283_v3  ;;  %v2377_v29 = vmul.f32 1.442695, %v2284_v21  ;;  %v2285_v62 = vsub.f32 %v5859_v55, %v2206_v1  ;;  %v2286_v34 = vsub.f32 %v7791_v14, %v2206_v1  ;;  %2478 = vadd.xlane.f32.xlu0 %v2477_v49  ;;  %v7795_v55 = vld [vmem:[#allocation75_spill] sm:$0xff] }
 0x36b   : > { %v2480_v23 = vadd.f32 %v6129_v19, %v6123_v22  ;;  %v7796_v49 = vld [vmem:[#allocation76_spill] sm:$0xff]  ;;  %v7798_v22 = vld [vmem:[#allocation77_spill] sm:$0xff] }
 0x36c   : > { %4223 = vpow2.f32 %v2375_v42  ;;  %v2379_v12 = vmul.f32 1.442695, %v2285_v62  ;;  %v2381_v48 = vmul.f32 1.442695, %v2286_v34 }
 0x36d   : > { %4225 = vpow2.f32 %v2377_v29  ;;  %2481 = vadd.xlane.f32.xlu1 %v2480_v23 }
 0x36e   : > { %v6135_v7 = vpop.eup %4215  ;;  %4227 = vpow2.f32 %v2379_v12 }
 0x36f   : > { %7792 = vst [vmem:[#allocation73_spill] sm:$0xff] %v6135_v7  ;;  %v6137_v30 = vpop.eup %4217  ;;  %4229 = vpow2.f32 %v2381_v48  ;;  %v2209_v3 = vpop.xlane.xlu0 %2208 }
 0x370   : > { %7793 = vst [vmem:[#allocation108_spill] sm:$0xff] %v6137_v30  ;;  %v6139_v21 = vpop.eup %4219  ;;  %v2287_v1 = vsub.f32 %v7795_v55, %v2209_v3  ;;  %v2288_v14 = vsub.f32 %v7796_v49, %v2209_v3  ;;  %v2483_v42 = vadd.f32 %v6137_v30, %v6135_v7  ;;  %v7807_v7 = vld [vmem:[#allocation82_spill] sm:$0xff] }
 0x371   : > { %7794 = vst [vmem:[#allocation109_spill] sm:$0xff] %v6139_v21  ;;  %v6145_v62 = vpop.eup %4221  ;;  %v2212_v29 = vpop.xlane.xlu1 %2211 }
 0x372   : > { %7797 = vst [vmem:[#allocation75_spill] sm:$0xff] %v6145_v62  ;;  %v2383_v34 = vmul.f32 1.442695, %v2287_v1  ;;  %v2385_v23 = vmul.f32 1.442695, %v2288_v14  ;;  %v2289_v12 = vsub.f32 %v7798_v22, %v2212_v29  ;;  %v2290_v19 = vsub.f32 %v7799_v43, %v2212_v29  ;;  %2484 = vadd.xlane.f32.xlu0 %v2483_v42  ;;  %v7803_v22 = vld [vmem:[#allocation79_spill] sm:$0xff] }
 0x373   : > { %v2486_v48 = vadd.f32 %v6145_v62, %v6139_v21  ;;  %v7804_v42 = vld [vmem:[#allocation80_spill] sm:$0xff]  ;;  %v7806_v21 = vld [vmem:[#allocation81_spill] sm:$0xff] }
 0x374   : > { %4231 = vpow2.f32 %v2383_v34  ;;  %v2387_v55 = vmul.f32 1.442695, %v2289_v12  ;;  %v2389_v11 = vmul.f32 1.442695, %v2290_v19 }
 0x375   : > { %4233 = vpow2.f32 %v2385_v23  ;;  %2487 = vadd.xlane.f32.xlu1 %v2486_v48 }
 0x376   : > { %v6151_v3 = vpop.eup %4223  ;;  %4235 = vpow2.f32 %v2387_v55 }
 0x377   : > { %7800 = vst [vmem:[#allocation76_spill] sm:$0xff] %v6151_v3  ;;  %v6153_v49 = vpop.eup %4225  ;;  %4237 = vpow2.f32 %v2389_v11  ;;  %v2215_v1 = vpop.xlane.xlu0 %2214 }
 0x378   : > { %7801 = vst [vmem:[#allocation77_spill] sm:$0xff] %v6153_v49  ;;  %v6155_v14 = vpop.eup %4227  ;;  %v2291_v43 = vsub.f32 %v7803_v22, %v2215_v1  ;;  %v2292_v29 = vsub.f32 %v7804_v42, %v2215_v1  ;;  %v2489_v34 = vadd.f32 %v6153_v49, %v6151_v3  ;;  %v7815_v3 = vld [vmem:[#allocation86_spill] sm:$0xff] }
 0x379   : > { %7802 = vst [vmem:[#allocation78_spill] sm:$0xff] %v6155_v14  ;;  %v6161_v12 = vpop.eup %4229  ;;  %v2218_v19 = vpop.xlane.xlu1 %2217 }
 0x37a   : > { %7805 = vst [vmem:[#allocation79_spill] sm:$0xff] %v6161_v12  ;;  %v2391_v23 = vmul.f32 1.442695, %v2291_v43  ;;  %v2393_v48 = vmul.f32 1.442695, %v2292_v29  ;;  %v2293_v55 = vsub.f32 %v7806_v21, %v2218_v19  ;;  %v2294_v62 = vsub.f32 %v7807_v7, %v2218_v19  ;;  %2490 = vadd.xlane.f32.xlu0 %v2489_v34  ;;  %v7811_v21 = vld [vmem:[#allocation83_spill] sm:$0xff] }
 0x37b   : > { %v2492_v11 = vadd.f32 %v6161_v12, %v6155_v14  ;;  %v7812_v34 = vld [vmem:[#allocation84_spill] sm:$0xff] }
 0x37c   : > { %4239 = vpow2.f32 %v2391_v23  ;;  %v2395_v22 = vmul.f32 1.442695, %v2293_v55  ;;  %v2397_v30 = vmul.f32 1.442695, %v2294_v62 }
 0x37d   : > { %4241 = vpow2.f32 %v2393_v48  ;;  %2493 = vadd.xlane.f32.xlu1 %v2492_v11 }
 0x37e   : > { %v6167_v1 = vpop.eup %4231  ;;  %4243 = vpow2.f32 %v2395_v22 }
 0x37f   : > { %7808 = vst [vmem:[#allocation80_spill] sm:$0xff] %v6167_v1  ;;  %v6169_v42 = vpop.eup %4233  ;;  %4245 = vpow2.f32 %v2397_v30  ;;  %v2221_v43 = vpop.xlane.xlu0 %2220  ;;  %v7814_v30 = vld [vmem:[#allocation85_spill] sm:$0xff] }
 0x380   : > { %7809 = vst [vmem:[#allocation81_spill] sm:$0xff] %v6169_v42  ;;  %v6171_v29 = vpop.eup %4235  ;;  %v2295_v7 = vsub.f32 %v7811_v21, %v2221_v43  ;;  %v2296_v19 = vsub.f32 %v7812_v34, %v2221_v43  ;;  %v2495_v23 = vadd.f32 %v6169_v42, %v6167_v1  ;;  %v7823_v42 = vld [vmem:[#allocation90_spill] sm:$0xff] }
 0x381   : > { %7810 = vst [vmem:[#allocation82_spill] sm:$0xff] %v6171_v29  ;;  %v6177_v55 = vpop.eup %4237  ;;  %v2224_v11 = vpop.xlane.xlu1 %2223 }
 0x382   : > { %7813 = vst [vmem:[#allocation83_spill] sm:$0xff] %v6177_v55  ;;  %v2399_v62 = vmul.f32 1.442695, %v2295_v7  ;;  %v2401_v48 = vmul.f32 1.442695, %v2296_v19  ;;  %2496 = vadd.xlane.f32.xlu0 %v2495_v23  ;;  %v2498_v22 = vadd.f32 %v6177_v55, %v6171_v29  ;;  %v2297_v14 = vsub.f32 %v7814_v30, %v2224_v11  ;;  %v7819_v23 = vld [vmem:[#allocation87_spill] sm:$0xff] }
 0x383   : > { %v2298_v12 = vsub.f32 %v7815_v3, %v2224_v11  ;;  %v7820_v55 = vld [vmem:[#allocation88_spill] sm:$0xff] }
 0x384   : > { %4247 = vpow2.f32 %v2399_v62  ;;  %2499 = vadd.xlane.f32.xlu1 %v2498_v22  ;;  %v2403_v43 = vmul.f32 1.442695, %v2297_v14  ;;  %v7822_v22 = vld [vmem:[#allocation89_spill] sm:$0xff] }
 0x385   : > { %4249 = vpow2.f32 %v2401_v48  ;;  %v2405_v21 = vmul.f32 1.442695, %v2298_v12 }
 0x386   : > { %v6183_v34 = vpop.eup %4239  ;;  %4251 = vpow2.f32 %v2403_v43 }
 0x387   : > { %7816 = vst [vmem:[#allocation84_spill] sm:$0xff] %v6183_v34  ;;  %v6185_v1 = vpop.eup %4241  ;;  %v2227_v7 = vpop.xlane.xlu0 %2226  ;;  %4253 = vpow2.f32 %v2405_v21 }
 0x388   : > { %7817 = vst [vmem:[#allocation85_spill] sm:$0xff] %v6185_v1  ;;  %v6187_v19 = vpop.eup %4243  ;;  %v2299_v29 = vsub.f32 %v7819_v23, %v2227_v7  ;;  %v2300_v30 = vsub.f32 %v7820_v55, %v2227_v7  ;;  %v2501_v3 = vadd.f32 %v6185_v1, %v6183_v34  ;;  %v7827_v1 = vld [vmem:[#allocation92_spill] sm:$0xff] }
 0x389   : > { %7818 = vst [vmem:[#allocation86_spill] sm:$0xff] %v6187_v19  ;;  %v6193_v62 = vpop.eup %4245  ;;  %v2230_v48 = vpop.xlane.xlu1 %2229 }
 0x38a   : > { %7821 = vst [vmem:[#allocation87_spill] sm:$0xff] %v6193_v62  ;;  %v2407_v14 = vmul.f32 1.442695, %v2299_v29  ;;  %v2409_v12 = vmul.f32 1.442695, %v2300_v30  ;;  %2502 = vadd.xlane.f32.xlu0 %v2501_v3  ;;  %v2504_v11 = vadd.f32 %v6193_v62, %v6187_v19  ;;  %v2301_v43 = vsub.f32 %v7822_v22, %v2230_v48  ;;  %v7826_v30 = vld [vmem:[#allocation91_spill] sm:$0xff] }
 0x38b   : > { %v2302_v21 = vsub.f32 %v7823_v42, %v2230_v48 }
 0x38c   : > { %4255 = vpow2.f32 %v2407_v14  ;;  %2505 = vadd.xlane.f32.xlu1 %v2504_v11  ;;  %v2411_v55 = vmul.f32 1.442695, %v2301_v43  ;;  %v7830_v43 = vld [vmem:[#allocation93_spill] sm:$0xff] }
 0x38d   : > { %4257 = vpow2.f32 %v2409_v12  ;;  %v2413_v7 = vmul.f32 1.442695, %v2302_v21 }
 0x38e   : > { %v6199_v23 = vpop.eup %4247  ;;  %4259 = vpow2.f32 %v2411_v55  ;;  %v7831_v55 = vld [vmem:[#allocation94_spill] sm:$0xff] }
 0x38f   : > { %7824 = vst [vmem:[#allocation88_spill] sm:$0xff] %v6199_v23  ;;  %v6201_v34 = vpop.eup %4249  ;;  %v2233_v29 = vpop.xlane.xlu0 %2232  ;;  %4261 = vpow2.f32 %v2413_v7 }
 0x390   : > { %7825 = vst [vmem:[#allocation89_spill] sm:$0xff] %v6201_v34  ;;  %v2303_v3 = vsub.f32 %v7826_v30, %v2233_v29  ;;  %v2304_v19 = vsub.f32 %v7827_v1, %v2233_v29  ;;  %v2507_v22 = vadd.f32 %v6201_v34, %v6199_v23  ;;  %v6207_v42 = vpop.eup %4251 }
 0x391   : > { %7828 = vst [vmem:[#allocation90_spill] sm:$0xff] %v6207_v42  ;;  %v6209_v14 = vpop.eup %4253  ;;  %v2236_v11 = vpop.xlane.xlu1 %2235 }
 0x392   : > { %7829 = vst [vmem:[#allocation91_spill] sm:$0xff] %v6209_v14  ;;  %v2415_v12 = vmul.f32 1.442695, %v2303_v3  ;;  %v2417_v48 = vmul.f32 1.442695, %v2304_v19  ;;  %2508 = vadd.xlane.f32.xlu0 %v2507_v22  ;;  %v2305_v21 = vsub.f32 %v7830_v43, %v2236_v11  ;;  %v2306_v62 = vsub.f32 %v7831_v55, %v2236_v11  ;;  %v7834_v3 = vld [vmem:[#allocation95_spill] sm:$0xff] }
 0x393   : > { %v2510_v7 = vadd.f32 %v6209_v14, %v6207_v42  ;;  %v7835_v43 = vld [vmem:[#allocation96_spill] sm:$0xff] }
 0x394   : > { %4263 = vpow2.f32 %v2415_v12  ;;  %v2419_v1 = vmul.f32 1.442695, %v2305_v21  ;;  %v2421_v29 = vmul.f32 1.442695, %v2306_v62 }
 0x395   : > { %4265 = vpow2.f32 %v2417_v48  ;;  %2511 = vadd.xlane.f32.xlu1 %v2510_v7  ;;  %v7838_v7 = vld [vmem:[#allocation97_spill] sm:$0xff] }
 0x396   : > { %v6215_v30 = vpop.eup %4255  ;;  %4267 = vpow2.f32 %v2419_v1  ;;  %v7839_v1 = vld [vmem:[#allocation98_spill] sm:$0xff] }
 0x397   : > { %7832 = vst [vmem:[#allocation92_spill] sm:$0xff] %v6215_v30  ;;  %v6217_v23 = vpop.eup %4257  ;;  %v2239_v19 = vpop.xlane.xlu0 %2238  ;;  %4269 = vpow2.f32 %v2421_v29 }
 0x398   : > { %7833 = vst [vmem:[#allocation93_spill] sm:$0xff] %v6217_v23  ;;  %v2307_v22 = vsub.f32 %v7834_v3, %v2239_v19  ;;  %v2308_v34 = vsub.f32 %v7835_v43, %v2239_v19  ;;  %v2513_v11 = vadd.f32 %v6217_v23, %v6215_v30  ;;  %v6223_v55 = vpop.eup %4259  ;;  %v7857_v23 = vld [vmem:[#allocation104_spill] sm:$0xff] }
 0x399   : > { %7836 = vst [vmem:[#allocation94_spill] sm:$0xff] %v6223_v55  ;;  %v6225_v12 = vpop.eup %4261  ;;  %v2242_v21 = vpop.xlane.xlu1 %2241 }
 0x39a   : > { %7837 = vst [vmem:[#allocation95_spill] sm:$0xff] %v6225_v12  ;;  %v2423_v62 = vmul.f32 1.442695, %v2307_v22  ;;  %v2425_v48 = vmul.f32 1.442695, %v2308_v34  ;;  %2514 = vadd.xlane.f32.xlu0 %v2513_v11  ;;  %v2309_v42 = vsub.f32 %v7838_v7, %v2242_v21  ;;  %v2310_v14 = vsub.f32 %v7839_v1, %v2242_v21  ;;  %v7842_v11 = vld [vmem:[#allocation99_spill] sm:$0xff] }
 0x39b   : > { %v2516_v29 = vadd.f32 %v6225_v12, %v6223_v55  ;;  %v7846_v55 = vld [vmem:[#allocation100_spill] sm:$0xff]  ;;  %v7847_v12 = vld [vmem:[#allocation101_spill] sm:$0xff] }
 0x39c   : > { %4271 = vpow2.f32 %v2423_v62  ;;  %v2427_v19 = vmul.f32 1.442695, %v2309_v42  ;;  %v2429_v3 = vmul.f32 1.442695, %v2310_v14 }
 0x39d   : > { %4273 = vpow2.f32 %v2425_v48  ;;  %2517 = vadd.xlane.f32.xlu1 %v2516_v29  ;;  %v7845_v29 = vld [vmem:[#allocation19_spill] sm:$0xff] }
 0x39e   : > { %v6231_v43 = vpop.eup %4263  ;;  %4275 = vpow2.f32 %v2427_v19  ;;  %v1550_v19 = vsub.f32 %v7845_v29, %v5971_v50 }
 0x39f   : > { %7840 = vst [vmem:[#allocation96_spill] sm:$0xff] %v6231_v43  ;;  %v6233_v30 = vpop.eup %4265  ;;  %v2245_v34 = vpop.xlane.xlu0 %2244  ;;  %4277 = vpow2.f32 %v2429_v3 }
 0x3a0   : > { %7841 = vst [vmem:[#allocation97_spill] sm:$0xff] %v6233_v30  ;;  %v2311_v22 = vsub.f32 %v5947_v26, %v2245_v34  ;;  %v2312_v7 = vsub.f32 %v7842_v11, %v2245_v34  ;;  %v2519_v21 = vadd.f32 %v6233_v30, %v6231_v43  ;;  %v6239_v1 = vpop.eup %4267  ;;  %v1614_v29 = vmul.f32 1.442695, %v1550_v19 }
 0x3a1   : > { %7843 = vst [vmem:[#allocation98_spill] sm:$0xff] %v6239_v1  ;;  %v6241_v62 = vpop.eup %4269  ;;  %v2248_v48 = vpop.xlane.xlu1 %2247 }
 0x3a2   : > { %7844 = vst [vmem:[#allocation99_spill] sm:$0xff] %v6241_v62  ;;  %v2431_v42 = vmul.f32 1.442695, %v2311_v22  ;;  %v2433_v14 = vmul.f32 1.442695, %v2312_v7  ;;  %2520 = vadd.xlane.f32.xlu0 %v2519_v21  ;;  %v2313_v3 = vsub.f32 %v7846_v55, %v2248_v48  ;;  %v2314_v26 = vsub.f32 %v7847_v12, %v2248_v48  ;;  %v7850_v7 = vld [vmem:[#allocation20_spill] sm:$0xff] }
 0x3a3   : > { %v2522_v34 = vadd.f32 %v6241_v62, %v6239_v1  ;;  %v1551_v21 = vsub.f32 %v7850_v7, %v5971_v50  ;;  %v7851_v48 = vld [vmem:[#allocation102_spill] sm:$0xff]  ;;  %v7856_v7 = vld [vmem:[#allocation103_spill] sm:$0xff] }
 0x3a4   : > { %4279 = vpow2.f32 %v2431_v42  ;;  %v2435_v11 = vmul.f32 1.442695, %v2313_v3  ;;  %v2437_v43 = vmul.f32 1.442695, %v2314_v26  ;;  %v7853_v3 = vld [vmem:[#allocation21_spill] sm:$0xff] }
 0x3a5   : > { %4281 = vpow2.f32 %v2433_v14  ;;  %2523 = vadd.xlane.f32.xlu1 %v2522_v34  ;;  %v1552_v26 = vsub.f32 %v7853_v3, %v5976_v63  ;;  %v7854_v34 = vld [vmem:[#allocation22_spill] sm:$0xff] }
 0x3a6   : > { %v6249_v30 = vpop.eup %4271  ;;  %4283 = vpow2.f32 %v2435_v11  ;;  %v1553_v62 = vsub.f32 %v7854_v34, %v5976_v63 }
 0x3a7   : > { %7848 = vst [vmem:[#allocation19_spill] sm:$0xff] %v6249_v30  ;;  %v6251_v22 = vpop.eup %4273  ;;  %v2251_v55 = vpop.xlane.xlu0 %2250  ;;  %4285 = vpow2.f32 %v2437_v43  ;;  %v1618_v49 = vmul.f32 1.442695, %v1552_v26  ;;  %v7863_v26 = vld [vmem:[#allocation25_spill] sm:$0xff] }
 0x3a8   : > { %7849 = vst [vmem:[#allocation100_spill] sm:$0xff] %v6251_v22  ;;  %v2315_v12 = vsub.f32 %v5959_v33, %v2251_v55  ;;  %v2316_v1 = vsub.f32 %v7851_v48, %v2251_v55  ;;  %v2525_v42 = vadd.f32 %v6251_v22, %v6249_v30  ;;  %v6259_v14 = vpop.eup %4275  ;;  %4287 = vpow2.f32 %v1614_v29 }
 0x3a9   : > { %7852 = vst [vmem:[#allocation101_spill] sm:$0xff] %v6259_v14  ;;  %v2254_v50 = vpop.xlane.xlu1 %2253  ;;  %v6265_v19 = vpop.eup %4277  ;;  %v1616_v30 = vmul.f32 1.442695, %v1551_v21  ;;  %v7861_v21 = vld [vmem:[#allocation24_spill] sm:$0xff] }
 0x3aa   : > { %7855 = vst [vmem:[#allocation20_spill] sm:$0xff] %v6265_v19  ;;  %v2439_v11 = vmul.f32 1.442695, %v2315_v12  ;;  %v2441_v43 = vmul.f32 1.442695, %v2316_v1  ;;  %v2317_v33 = vsub.f32 %v7856_v7, %v2254_v50  ;;  %v2318_v55 = vsub.f32 %v7857_v23, %v2254_v50  ;;  %2526 = vadd.xlane.f32.xlu0 %v2525_v42  ;;  %v7860_v23 = vld [vmem:[#allocation23_spill] sm:$0xff] }
 0x3ab   : > { %v2528_v48 = vadd.f32 %v6265_v19, %v6259_v14  ;;  %v6271_v63 = vpop.xlane.xlu0 %1491  ;;  %v1620_v1 = vmul.f32 1.442695, %v1553_v62  ;;  %v1554_v29 = vsub.f32 %v7860_v23, %v5978_v51  ;;  %v1555_v42 = vsub.f32 %v7861_v21, %v5978_v51 }
 0x3ac   : > { %4289 = vpow2.f32 %v2439_v11  ;;  %v2443_v3 = vmul.f32 1.442695, %v2317_v33  ;;  %v2445_v22 = vmul.f32 1.442695, %v2318_v55  ;;  %v1556_v11 = vsub.f32 %v7863_v26, %v5986_v18  ;;  %v7868_v26 = vld [vmem:[#allocation28_spill] sm:$0xff] }
 0x3ad   : > { %4291 = vpow2.f32 %v2441_v43  ;;  %2529 = vadd.xlane.f32.xlu1 %v2528_v48  ;;  %v6285_v43 = vpop.xlane.xlu1 %1494  ;;  %v1622_v33 = vmul.f32 1.442695, %v1554_v29  ;;  %v7866_v48 = vld [vmem:[#allocation27_spill] sm:$0xff]  ;;  %v7870_v29 = vld [vmem:[#allocation29_spill] sm:$0xff] }
 0x3ae   : > { %v6273_v12 = vpop.eup %4279  ;;  %4293 = vpow2.f32 %v2443_v3  ;;  %v1558_v3 = vsub.f32 %v7866_v48, %v5988_v58  ;;  %v1626_v21 = vmul.f32 1.442695, %v1556_v11 }
 0x3af   : > { %7858 = vst [vmem:[#allocation102_spill] sm:$0xff] %v6273_v12  ;;  %v6275_v34 = vpop.eup %4281  ;;  %4295 = vpow2.f32 %v2445_v22  ;;  %v7865_v22 = vld [vmem:[#allocation26_spill] sm:$0xff]  ;;  %v6293_v55 = vpop.xlane.xlu0 %1497 }
 0x3b0   : > { %7859 = vst [vmem:[#allocation21_spill] sm:$0xff] %v6275_v34  ;;  %4297 = vpow2.f32 %v1616_v30  ;;  %v6281_v50 = vpop.eup %4283  ;;  %v2531_v62 = vadd.f32 %v6275_v34, %v6273_v12  ;;  %v1557_v30 = vsub.f32 %v7865_v22, %v5986_v18  ;;  %v1630_v11 = vmul.f32 1.442695, %v1558_v3  ;;  %v7878_v3 = vld [vmem:[#allocation33_spill] sm:$0xff] }
 0x3b1   : > { %7862 = vst [vmem:[#allocation22_spill] sm:$0xff] %v6281_v50  ;;  %4299 = vpow2.f32 %v1618_v49  ;;  %v6289_v7 = vpop.eup %4285  ;;  %v1624_v49 = vmul.f32 1.442695, %v1555_v42  ;;  %v7872_v42 = vld [vmem:[#allocation30_spill] sm:$0xff]  ;;  %v6311_v48 = vpop.xlane.xlu1 %1500  ;;  %v1564_v14 = vsub.f32 %v7878_v3, %v6006_v45  ;;  %v7883_v3 = vld [vmem:[#allocation36_spill] sm:$0xff] }
 0x3b2   : > { %7864 = vst [vmem:[#allocation103_spill] sm:$0xff] %v6289_v7  ;;  %4301 = vpow2.f32 %v1620_v1  ;;  %2532 = vadd.xlane.f32.xlu0 %v2531_v62  ;;  %v2534_v51 = vadd.f32 %v6289_v7, %v6281_v50  ;;  %v6299_v23 = vpop.eup %4287  ;;  %v1559_v1 = vsub.f32 %v7868_v26, %v5988_v58  ;;  %v1628_v18 = vmul.f32 1.442695, %v1557_v30  ;;  %v7874_v58 = vld [vmem:[#allocation31_spill] sm:$0xff] }
 0x3b3   : > { %7867 = vst [vmem:[#allocation104_spill] sm:$0xff] %v6299_v23  ;;  %v1560_v62 = vsub.f32 %v7870_v29, %v5996_v9  ;;  %4303 = vpow2.f32 %v1622_v33  ;;  %v1561_v50 = vsub.f32 %v7872_v42, %v5996_v9  ;;  %v7876_v29 = vld [vmem:[#allocation32_spill] sm:$0xff]  ;;  %v6321_v33 = vpop.xlane.xlu0 %1503  ;;  %v1567_v41 = vsub.f32 %v7883_v3, %v6008_v2  ;;  %v7886_v3 = vld [vmem:[#allocation41_spill] sm:$0xff] }
 0x3b4   : > { %2535 = vadd.xlane.f32.xlu1 %v2534_v51  ;;  %4305 = vpow2.f32 %v1624_v49  ;;  %v1562_v51 = vsub.f32 %v7874_v58, %v5998_v61  ;;  %v1632_v30 = vmul.f32 1.442695, %v1559_v1  ;;  %v1563_v34 = vsub.f32 %v7876_v29, %v5998_v61 }
 0x3b5   : > { %4307 = vpow2.f32 %v1626_v21  ;;  %v1634_v49 = vmul.f32 1.442695, %v1560_v62  ;;  %v1636_v19 = vmul.f32 1.442695, %v1561_v50  ;;  %v7880_v21 = vld [vmem:[#allocation34_spill] sm:$0xff]  ;;  %v6341_v50 = vpop.xlane.xlu1 %1506 }
 0x3b6   : > { %v6303_v12 = vpop.eup %4289  ;;  %4309 = vpow2.f32 %v1628_v18  ;;  %v1565_v1 = vsub.f32 %v7880_v21, %v6006_v45  ;;  %v7882_v18 = vld [vmem:[#allocation35_spill] sm:$0xff]  ;;  %v7884_v21 = vld [vmem:[#allocation37_spill] sm:$0xff] }
 0x3b7   : > { %7869 = vst [vmem:[#allocation23_spill] sm:$0xff] %v6303_v12  ;;  %v6307_v22 = vpop.eup %4291  ;;  %4311 = vpow2.f32 %v1630_v11  ;;  %v1566_v62 = vsub.f32 %v7882_v18, %v6008_v2  ;;  %v1568_v11 = vsub.f32 %v7884_v21, %v6016_v24  ;;  %v7885_v18 = vld [vmem:[#allocation38_spill] sm:$0xff]  ;;  %v1648_v21 = vmul.f32 1.442695, %v1567_v41  ;;  %v7893_v41 = vld [vmem:[#allocation56_spill] sm:$0xff] }
 0x3b8   : > { %7871 = vst [vmem:[#allocation24_spill] sm:$0xff] %v6307_v22  ;;  %v6313_v7 = vpop.eup %4293  ;;  %v2537_v9 = vadd.f32 %v6307_v22, %v6303_v12  ;;  %v1638_v12 = vmul.f32 1.442695, %v1562_v51  ;;  %4313 = vpow2.f32 %v1632_v30  ;;  %v1640_v22 = vmul.f32 1.442695, %v1563_v34  ;;  %v6349_v34 = vpop.xlane.xlu0 %1509 }
 0x3b9   : > { %7873 = vst [vmem:[#allocation25_spill] sm:$0xff] %v6313_v7  ;;  %v6317_v26 = vpop.eup %4295  ;;  %4315 = vpow2.f32 %v1634_v49  ;;  %v1644_v51 = vmul.f32 1.442695, %v1565_v1  ;;  %v1569_v30 = vsub.f32 %v7885_v18, %v6016_v24  ;;  %v1572_v49 = vsub.f32 %v7886_v3, %v6026_v37  ;;  %v7890_v18 = vld [vmem:[#allocation39_spill] sm:$0xff]  ;;  %v7892_v3 = vld [vmem:[#allocation40_spill] sm:$0xff] }
 0x3ba   : > { %7875 = vst [vmem:[#allocation26_spill] sm:$0xff] %v6317_v26  ;;  %v6325_v42 = vpop.eup %4297  ;;  %2538 = vadd.xlane.f32.xlu0 %v2537_v9  ;;  %v2540_v61 = vadd.f32 %v6317_v26, %v6313_v7  ;;  %v1642_v9 = vmul.f32 1.442695, %v1564_v14  ;;  %4317 = vpow2.f32 %v1636_v19  ;;  %v7888_v19 = vld [vmem:[#allocation42_spill] sm:$0xff] }
 0x3bb   : > { %7877 = vst [vmem:[#allocation27_spill] sm:$0xff] %v6325_v42  ;;  %v6329_v58 = vpop.eup %4299  ;;  %v1742_v45 = vadd.f32 %v6325_v42, %v6299_v23  ;;  %4319 = vpow2.f32 %v1638_v12  ;;  %v1573_v1 = vsub.f32 %v7888_v19, %v6026_v37  ;;  %v1571_v42 = vsub.f32 %v7892_v3, %v6035_v54  ;;  %v7899_v3 = vld [vmem:[#allocation59_spill] sm:$0xff] }
 0x3bc   : > { %7879 = vst [vmem:[#allocation28_spill] sm:$0xff] %v6329_v58  ;;  %v6335_v29 = vpop.eup %4301  ;;  %2541 = vadd.xlane.f32.xlu1 %v2540_v61  ;;  %v1646_v61 = vmul.f32 1.442695, %v1566_v62  ;;  %4321 = vpow2.f32 %v1640_v22  ;;  %v1652_v62 = vmul.f32 1.442695, %v1569_v30  ;;  %v6367_v22 = vpop.xlane.xlu1 %1512 }
 0x3bd   : > { %7881 = vst [vmem:[#allocation29_spill] sm:$0xff] %v6335_v29  ;;  %v1745_v2 = vadd.f32 %v6335_v29, %v6329_v58  ;;  %v6355_v14 = vpop.eup %4303  ;;  %4323 = vpow2.f32 %v1642_v9  ;;  %v1570_v29 = vsub.f32 %v7890_v18, %v6035_v54  ;;  %v7894_v58 = vld [vmem:[#allocation57_spill] sm:$0xff]  ;;  %v1658_v9 = vmul.f32 1.442695, %v1572_v49  ;;  %v6378_v18 = vpop.xlane.xlu0 %1515  ;;  %v7898_v54 = vld [vmem:[#allocation58_spill] sm:$0xff] }
 0x3be   : > { %1743 = vadd.xlane.f32.xlu0 %v1742_v45  ;;  %7887 = vst [vmem:[#allocation30_spill] sm:$0xff] %v6355_v14  ;;  %v6359_v24 = vpop.eup %4305  ;;  %v1650_v45 = vmul.f32 1.442695, %v1568_v11  ;;  %4325 = vpow2.f32 %v1644_v51  ;;  %v7895_v37 = vmax.f32 %v7893_v41, %v7894_v58  ;;  %v1574_v11 = vsub.f32 %v5659_v4, %v6271_v63  ;;  %v7897_v51 = vld [vmem:[#allocation43_spill] sm:$0xff] }
 0x3bf   : > { %7889 = vst [vmem:[#allocation31_spill] sm:$0xff] %v6359_v24  ;;  %v6363_v12 = vpop.eup %4307  ;;  %4327 = vpow2.f32 %v1646_v61  ;;  %v1660_v19 = vmul.f32 1.442695, %v1573_v1  ;;  %v1575_v30 = vsub.f32 %v7897_v51, %v6271_v63  ;;  %v7900_v23 = vmax.f32 %v7898_v54, %v7899_v3  ;;  %v7930_v3 = vld [vmem:[#allocation67_spill] sm:$0xff] }
 0x3c0   : > { %1746 = vadd.xlane.f32.xlu1 %v1745_v2  ;;  %7891 = vst [vmem:[#allocation32_spill] sm:$0xff] %v6363_v12  ;;  %v6372_v2 = vpop.eup %4309  ;;  %4329 = vpow2.f32 %v1648_v21  ;;  %v1654_v61 = vmul.f32 1.442695, %v1570_v29  ;;  %v1576_v4 = vsub.f32 %v5663_v44, %v6285_v43  ;;  %v1656_v63 = vmul.f32 1.442695, %v1571_v42  ;;  %v7903_v21 = vld [vmem:[#allocation44_spill] sm:$0xff] }
 0x3c1   : > { %7896 = vst [vmem:[#allocation33_spill] sm:$0xff] %v6372_v2  ;;  %v6385_v7 = vpop.eup %4311  ;;  %4331 = vpow2.f32 %v1650_v45  ;;  %v1577_v1 = vsub.f32 %v7903_v21, %v6285_v43  ;;  %v1578_v29 = vsub.f32 %v5671_v5, %v6293_v55  ;;  %v1664_v44 = vmul.f32 1.442695, %v1575_v30  ;;  %v7906_v42 = vld [vmem:[#allocation45_spill] sm:$0xff] }
 0x3c2   : > { %1527 = vmax.xlane.f32.xlu0 %v7895_v37  ;;  %v1748_v37 = vadd.f32 %v6359_v24, %v6355_v14  ;;  %7901 = vst [vmem:[#allocation34_spill] sm:$0xff] %v6385_v7  ;;  %v6389_v49 = vpop.eup %4313  ;;  %4333 = vpow2.f32 %v1652_v62  ;;  %v1662_v14 = vmul.f32 1.442695, %v1574_v11  ;;  %v1579_v62 = vsub.f32 %v7906_v42, %v6293_v55  ;;  %v6403_v24 = vpop.xlane.xlu1 %1518  ;;  %v7910_v30 = vld [vmem:[#allocation61_spill] sm:$0xff] }
 0x3c3   : > { %7902 = vst [vmem:[#allocation35_spill] sm:$0xff] %v6389_v49  ;;  %v6395_v51 = vpop.eup %4315  ;;  %4335 = vpow2.f32 %v1658_v9  ;;  %v1668_v9 = vmul.f32 1.442695, %v1577_v1  ;;  %v1580_v5 = vsub.f32 %v5675_v28, %v6311_v48  ;;  %v6411_v11 = vpop.xlane.xlu0 %1521  ;;  %v7915_v1 = vld [vmem:[#allocation62_spill] sm:$0xff]  ;;  %v1754_v26 = vadd.f32 %v6389_v49, %v6385_v7 }
 0x3c4   : > { %1530 = vmax.xlane.f32.xlu1 %v7900_v23  ;;  %v1751_v23 = vadd.f32 %v6372_v2, %v6363_v12  ;;  %7904 = vst [vmem:[#allocation36_spill] sm:$0xff] %v6395_v51  ;;  %v6399_v45 = vpop.eup %4317  ;;  %4337 = vpow2.f32 %v1660_v19  ;;  %v7909_v19 = vld [vmem:[#allocation60_spill] sm:$0xff]  ;;  %v7916_v2 = vld [vmem:[#allocation63_spill] sm:$0xff] }
 0x3c5   : > { %7905 = vst [vmem:[#allocation37_spill] sm:$0xff] %v6399_v45  ;;  %v6405_v43 = vpop.eup %4319  ;;  %4339 = vpow2.f32 %v1654_v61  ;;  %v7911_v12 = vmax.f32 %v7909_v19, %v7910_v30  ;;  %v1672_v61 = vmul.f32 1.442695, %v1579_v62  ;;  %v7917_v28 = vmax.f32 %v7915_v1, %v7916_v2  ;;  %v7924_v2 = vld [vmem:[#allocation50_spill] sm:$0xff]  ;;  %v7926_v1 = vld [vmem:[#allocation65_spill] sm:$0xff] }
 0x3c6   : > { %1749 = vadd.xlane.f32.xlu0 %v1748_v37  ;;  %7907 = vst [vmem:[#allocation38_spill] sm:$0xff] %v6405_v43  ;;  %v1666_v37 = vmul.f32 1.442695, %v1576_v4  ;;  %v6407_v21 = vpop.eup %4321  ;;  %4341 = vpow2.f32 %v1656_v63  ;;  %v7914_v4 = vld [vmem:[#allocation46_spill] sm:$0xff]  ;;  %v6435_v62 = vpop.xlane.xlu1 %1524 }
 0x3c7   : > { %7908 = vst [vmem:[#allocation41_spill] sm:$0xff] %v6407_v21  ;;  %v6416_v55 = vpop.eup %4323  ;;  %4343 = vpow2.f32 %v1662_v14  ;;  %v1581_v63 = vsub.f32 %v7914_v4, %v6311_v48  ;;  %v1582_v14 = vsub.f32 %v5683_v52, %v6321_v33 }
 0x3c8   : > { %1752 = vadd.xlane.f32.xlu1 %v1751_v23  ;;  %7912 = vst [vmem:[#allocation42_spill] sm:$0xff] %v6416_v55  ;;  %v1670_v23 = vmul.f32 1.442695, %v1578_v29  ;;  %v6418_v42 = vpop.eup %4325  ;;  %4345 = vpow2.f32 %v1664_v44  ;;  %v1674_v29 = vmul.f32 1.442695, %v1580_v5  ;;  %v7919_v44 = vld [vmem:[#allocation47_spill] sm:$0xff] }
 0x3c9   : > { %7913 = vst [vmem:[#allocation39_spill] sm:$0xff] %v6418_v42  ;;  %v6427_v30 = vpop.eup %4327  ;;  %4347 = vpow2.f32 %v1666_v37  ;;  %v1583_v48 = vsub.f32 %v7919_v44, %v6321_v33  ;;  %v7921_v37 = vld [vmem:[#allocation48_spill] sm:$0xff]  ;;  %v7923_v5 = vld [vmem:[#allocation49_spill] sm:$0xff] }
 0x3ca   : > { %1533 = vmax.xlane.f32.xlu0 %v7911_v12  ;;  %7918 = vst [vmem:[#allocation40_spill] sm:$0xff] %v6427_v30  ;;  %v6431_v12 = vpop.eup %4329  ;;  %4349 = vpow2.f32 %v1668_v9  ;;  %v1584_v52 = vsub.f32 %v7921_v37, %v6341_v50  ;;  %v1676_v9 = vmul.f32 1.442695, %v1581_v63  ;;  %v1585_v33 = vsub.f32 %v7923_v5, %v6341_v50  ;;  %v7925_v37 = vld [vmem:[#allocation64_spill] sm:$0xff]  ;;  %v7929_v5 = vld [vmem:[#allocation66_spill] sm:$0xff] }
 0x3cb   : > { %v6439_v7 = vpop.eup %4331  ;;  %4351 = vpow2.f32 %v1670_v23  ;;  %v1680_v23 = vmul.f32 1.442695, %v1583_v48  ;;  %v7927_v19 = vmax.f32 %v7925_v37, %v7926_v1  ;;  %v1760_v48 = vadd.f32 %v6407_v21, %v6405_v43  ;;  %v7934_v43 = vld [vmem:[#allocation71_spill] sm:$0xff]  ;;  %v7938_v21 = vld [vmem:[#allocation74_spill] sm:$0xff] }
 0x3cc   : > { %1536 = vmax.xlane.f32.xlu1 %v7917_v28  ;;  %v1757_v28 = vadd.f32 %v6399_v45, %v6395_v51  ;;  %7920 = vst [vmem:[#allocation56_spill] sm:$0xff] %v6439_v7  ;;  %v6443_v49 = vpop.eup %4333  ;;  %4353 = vpow2.f32 %v1672_v61  ;;  %v1586_v51 = vsub.f32 %v7924_v2, %v6349_v34  ;;  %v1682_v50 = vmul.f32 1.442695, %v1584_v52  ;;  %v7928_v2 = vld [vmem:[#allocation51_spill] sm:$0xff] }
 0x3cd   : > { %7922 = vst [vmem:[#allocation57_spill] sm:$0xff] %v6443_v49  ;;  %v6447_v44 = vpop.eup %4335  ;;  %v1588_v52 = vsub.f32 %v5715_v40, %v6367_v22 }
 0x3ce   : > { %1755 = vadd.xlane.f32.xlu0 %v1754_v26  ;;  %v1678_v26 = vmul.f32 1.442695, %v1582_v14  ;;  %v6451_v45 = vpop.eup %4337  ;;  %v1684_v14 = vmul.f32 1.442695, %v1585_v33  ;;  %v1686_v1 = vmul.f32 1.442695, %v1586_v51 }
 0x3cf   : > { %v2449_v4 = vpop.xlane.xlu0 %2448  ;;  %v6456_v63 = vpop.eup %4339  ;;  %v7932_v33 = vld [vmem:[#allocation52_spill] sm:$0xff]  ;;  %v1690_v40 = vmul.f32 1.442695, %v1588_v52 }
 0x3d0   : > { %1758 = vadd.xlane.f32.xlu1 %v1757_v28  ;;  %4355 = vrcp.f32 %v2449_v4  ;;  %v6458_v28 = vpop.eup %4341  ;;  %v1587_v4 = vsub.f32 %v7928_v2, %v6349_v34  ;;  %v1763_v34 = vadd.f32 %v6418_v42, %v6416_v55  ;;  %v1589_v2 = vsub.f32 %v7932_v33, %v6367_v22  ;;  %v7937_v52 = vld [vmem:[#allocation72_spill] sm:$0xff] }
 0x3d1   : > { %4357 = vpow2.f32 %v1674_v29  ;;  %v7931_v29 = vmax.f32 %v7929_v5, %v7930_v3 }
 0x3d2   : > { %1539 = vmax.xlane.f32.xlu0 %v7927_v19  ;;  %v6467_v19 = vpop.eup %4343  ;;  %v1688_v51 = vmul.f32 1.442695, %v1587_v4  ;;  %v7936_v4 = vld [vmem:[#allocation53_spill] sm:$0xff] }
 0x3d3   : > { %v2452_v61 = vpop.xlane.xlu1 %2451 }
 0x3d4   : > { %4359 = vrcp.f32 %v2452_v61  ;;  %1542 = vmax.xlane.f32.xlu1 %v7931_v29  ;;  %v6471_v61 = vpop.eup %4345 }
 0x3d5   : > { %4361 = vpow2.f32 %v1676_v9  ;;  %v6475_v9 = vpop.eup %4347 }
 0x3d6   : > { %4363 = vpow2.f32 %v1678_v26  ;;  %1761 = vadd.xlane.f32.xlu0 %v1760_v48  ;;  %v6479_v29 = vpop.eup %4349 }
 0x3d7   : > { %4365 = vpow2.f32 %v1680_v23  ;;  %v6481_v26 = vpop.eup %4351  ;;  %v1590_v23 = vsub.f32 %v5733_v6, %v6378_v18  ;;  %v2455_v48 = vpop.xlane.xlu0 %2454  ;;  %v1592_v6 = vsub.f32 %v5739_v60, %v6403_v24 }
 0x3d8   : > { %4367 = vpow2.f32 %v1682_v50  ;;  %1764 = vadd.xlane.f32.xlu1 %v1763_v34  ;;  %v6485_v55 = vpop.eup %4353  ;;  %v7933_v50 = vld [vmem:[#allocation69_spill] sm:$0xff]  ;;  %v1591_v34 = vsub.f32 %v7936_v4, %v6378_v18  ;;  %v1593_v18 = vsub.f32 %v5747_v53, %v6403_v24  ;;  %v7940_v53 = vld [vmem:[#allocation54_spill] sm:$0xff] }
 0x3d9   : > { %4369 = vpow2.f32 %v1684_v14  ;;  %v7935_v42 = vmax.f32 %v7933_v50, %v7934_v43  ;;  %v1692_v14 = vmul.f32 1.442695, %v1589_v2  ;;  %v1694_v2 = vmul.f32 1.442695, %v1590_v23 }
 0x3da   : > { %4371 = vpow2.f32 %v1686_v1  ;;  %v4356_v33 = vpop.eup %4355  ;;  %v1696_v23 = vmul.f32 1.442695, %v1591_v34  ;;  %v1594_v24 = vsub.f32 %v7940_v53, %v6411_v11 }
 0x3db   : > { %4373 = vrcp.f32 %v2455_v48  ;;  %1545 = vmax.xlane.f32.xlu0 %v7935_v42  ;;  %v2458_v22 = vpop.xlane.xlu1 %2457  ;;  %v6492_v1 = vpop.eup %4357  ;;  %v7939_v48 = vmax.f32 %v7937_v52, %v7938_v21  ;;  %v1766_v42 = vadd.f32 %v6431_v12, %v6427_v30  ;;  %v2576_v4 = vmul.f32 %v4356_v33, %v6041_v27 }
 0x3dc   : > { %4375 = vrcp.f32 %v2458_v22  ;;  %v1769_v22 = vadd.f32 %v6443_v49, %v6439_v7  ;;  %v2575_v21 = vmul.f32 %v4356_v33, %v6039_v8  ;;  %v1772_v7 = vadd.f32 %v6458_v28, %v6456_v63 }
 0x3dd   : > { %4377 = vpow2.f32 %v1688_v51  ;;  %1548 = vmax.xlane.f32.xlu1 %v7939_v48  ;;  %v1698_v49 = vmul.f32 1.442695, %v1592_v6  ;;  %v1775_v6 = vadd.f32 %v6451_v45, %v6447_v44 }
 0x3de   : > { %v4360_v43 = vpop.eup %4359  ;;  %4379 = vpow2.f32 %v1690_v40 }
 0x3df   : > { %v6505_v51 = vpop.eup %4361  ;;  %1767 = vadd.xlane.f32.xlu0 %v1766_v42  ;;  %v2461_v60 = vpop.xlane.xlu0 %2460  ;;  %v2578_v48 = vmul.f32 %v4360_v43, %v6051_v20  ;;  %v2577_v30 = vmul.f32 %v4360_v43, %v6047_v39  ;;  %4381 = vpow2.f32 %v1692_v14  ;;  %v1700_v39 = vmul.f32 1.442695, %v1593_v18  ;;  %v7941_v43 = vld [vmem:[#allocation55_spill] sm:$0xff] }
 0x3e0   : > { %v6511_v40 = vpop.eup %4363  ;;  %4383 = vrcp.f32 %v2461_v60  ;;  %v1595_v33 = vsub.f32 %v7941_v43, %v6411_v11  ;;  %v1597_v11 = vsub.f32 %v5771_v0, %v6435_v62 }
 0x3e1   : > { %v6517_v42 = vpop.eup %4365  ;;  %1770 = vadd.xlane.f32.xlu1 %v1769_v22  ;;  %v2672_v27 = vpack.c.bf16 %v2578_v48, %v2576_v4  ;;  %v2671_v20 = vpack.c.bf16 %v2577_v30, %v2575_v21  ;;  %4385 = vpow2.f32 %v1694_v2  ;;  %v1702_v21 = vmul.f32 1.442695, %v1594_v24 }
 0x3e2   : > { %v6519_v8 = vpop.eup %4367  ;;  %v2464_v14 = vpop.xlane.xlu1 %2463  ;;  %v1596_v30 = vsub.f32 %v5763_v16, %v6435_v62  ;;  %v1704_v22 = vmul.f32 1.442695, %v1595_v33  ;;  %v1781_v4 = vadd.f32 %v6479_v29, %v6475_v9 }
 0x3e3   : > { %v6523_v34 = vpop.eup %4369  ;;  %4387 = vrcp.f32 %v2464_v14  ;;  %1773 = vadd.xlane.f32.xlu0 %v1772_v7  ;;  %2703 = vmatprep.subr.bf16.mxu0 %v2672_v27  ;;  %v1778_v7 = vadd.f32 %v6471_v61, %v6467_v19  ;;  %v1784_v27 = vadd.f32 %v6485_v55, %v6481_v26 }
 0x3e4   : > { %v6527_v60 = vpop.eup %4371  ;;  %4389 = vpow2.f32 %v1696_v23  ;;  %2704 = vmatpush1.bf16.msra.mxu0 %v2671_v20  ;;  %v1706_v24 = vmul.f32 1.442695, %v1596_v30  ;;  %v1708_v20 = vmul.f32 1.442695, %v1597_v11 }
 0x3e5   : > { %v4374_v2 = vpop.eup %4373  ;;  %4391 = vpow2.f32 %v1698_v49  ;;  %1776 = vadd.xlane.f32.xlu1 %v1775_v6  ;;  %v1790_v6 = vadd.f32 %v6517_v42, %v6511_v40 }
 0x3e6   : > { %v4376_v18 = vpop.eup %4375  ;;  %4393 = vpow2.f32 %v1700_v39  ;;  %v2580_v23 = vmul.f32 %v4374_v2, %v6059_v46  ;;  %v2579_v0 = vmul.f32 %v4374_v2, %v6055_v13  ;;  %v1787_v13 = vadd.f32 %v6505_v51, %v6492_v1 }
 0x3e7   : > { %v6537_v48 = vpop.eup %4377  ;;  %1779 = vadd.xlane.f32.xlu0 %v1778_v7  ;;  %v2467_v16 = vpop.xlane.xlu0 %2466  ;;  %v2582_v49 = vmul.f32 %v4376_v18, %v6065_v32  ;;  %v2581_v62 = vmul.f32 %v4376_v18, %v6061_v38  ;;  %4395 = vpow2.f32 %v1702_v21 }
 0x3e8   : > { %v6543_v53 = vpop.eup %4379  ;;  %4397 = vrcp.f32 %v2467_v16 }
 0x3e9   : > { %1782 = vadd.xlane.f32.xlu1 %v1781_v4  ;;  %v2674_v39 = vpack.c.bf16 %v2582_v49, %v2580_v23  ;;  %v2673_v43 = vpack.c.bf16 %v2581_v62, %v2579_v0  ;;  %v6547_v33 = vpop.eup %4381  ;;  %4399 = vpow2.f32 %v1704_v22  ;;  %v1793_v4 = vadd.f32 %v6523_v34, %v6519_v8 }
 0x3ea   : > { %v2470_v46 = vpop.xlane.xlu1 %2469  ;;  %v4384_v32 = vpop.eup %4383  ;;  %v1799_v0 = vadd.f32 %v6547_v33, %v6543_v53 }
 0x3eb   : > { %4401 = vrcp.f32 %v2470_v46  ;;  %1785 = vadd.xlane.f32.xlu0 %v1784_v27  ;;  %2705 = vmatprep.subr.bf16.mxu0 %v2674_v39  ;;  %v6551_v38 = vpop.eup %4385  ;;  %v2584_v30 = vmul.f32 %v4384_v32, %v6073_v10  ;;  %v2583_v11 = vmul.f32 %v4384_v32, %v6071_v35  ;;  %v1796_v10 = vadd.f32 %v6537_v48, %v6527_v60 }
 0x3ec   : > { %4403 = vpow2.f32 %v1706_v24  ;;  %2706 = vmatpush1.bf16.msra.mxu0 %v2673_v43 }
 0x3ed   : > { %v4388_v14 = vpop.eup %4387  ;;  %4405 = vpow2.f32 %v1708_v20  ;;  %1788 = vadd.xlane.f32.xlu1 %v1787_v13 }
 0x3ee   : > { %v6555_v21 = vpop.eup %4389  ;;  %v2586_v2 = vmul.f32 %v4388_v14, %v6081_v57  ;;  %v2585_v7 = vmul.f32 %v4388_v14, %v6075_v25 }
 0x3ef   : > { %v6561_v18 = vpop.eup %4391  ;;  %1791 = vadd.xlane.f32.xlu0 %v1790_v6  ;;  %v2473_v22 = vpop.xlane.xlu0 %2472  ;;  %v1802_v27 = vadd.f32 %v6555_v21, %v6551_v38 }
 0x3f0   : > { %v6565_v16 = vpop.eup %4393  ;;  %v2676_v23 = vpack.c.bf16 %v2586_v2, %v2584_v30  ;;  %v2675_v49 = vpack.c.bf16 %v2585_v7, %v2583_v11  ;;  %4407 = vrcp.f32 %v2473_v22 }
 0x3f1   : > { %1794 = vadd.xlane.f32.xlu1 %v1793_v4  ;;  %v6569_v57 = vpop.eup %4395  ;;  %v1805_v6 = vadd.f32 %v6565_v16, %v6561_v18 }
 0x3f2   : > { %2707 = vmatprep.subr.bf16.mxu0 %v2676_v23  ;;  %v2476_v35 = vpop.xlane.xlu1 %2475  ;;  %v4398_v25 = vpop.eup %4397  ;;  %v7942_v23 = vld [vmem:[#allocation105_spill] sm:$0xff] }
 0x3f3   : > { %4409 = vrcp.f32 %v2476_v35  ;;  %2708 = vmatpush1.bf16.msra.mxu0 %v2675_v49  ;;  %1797 = vadd.xlane.f32.xlu0 %v1796_v10  ;;  %v6573_v62 = vpop.eup %4399  ;;  %v2588_v39 = vmul.f32 %v4398_v25, %v6089_v15  ;;  %v2587_v46 = vmul.f32 %v4398_v25, %v6087_v36 }
 0x3f4   : > { %v1808_v15 = vadd.f32 %v6573_v62, %v6569_v57 }
 0x3f5   : > { %v4402_v24 = vpop.eup %4401  ;;  %1800 = vadd.xlane.f32.xlu1 %v1799_v0 }
 0x3f6   : > { %v6577_v20 = vpop.eup %4403  ;;  %v2590_v43 = vmul.f32 %v4402_v24, %v6097_v31  ;;  %v2589_v32 = vmul.f32 %v4402_v24, %v6091_v17 }
 0x3f7   : > { %v6583_v13 = vpop.eup %4405  ;;  %1803 = vadd.xlane.f32.xlu0 %v1802_v27  ;;  %v2479_v14 = vpop.xlane.xlu0 %2478 }
 0x3f8   : > { %v2678_v30 = vpack.c.bf16 %v2590_v43, %v2588_v39  ;;  %v2677_v2 = vpack.c.bf16 %v2589_v32, %v2587_v46  ;;  %4411 = vrcp.f32 %v2479_v14  ;;  %v1811_v36 = vadd.f32 %v6583_v13, %v6577_v20  ;;  %v7943_v39 = vld [vmem:[#allocation106_spill] sm:$0xff]  ;;  %v7945_v32 = vld [vmem:[#allocation68_spill] sm:$0xff]  ;;  %v7946_v14 = vld [vmem:[#allocation107_spill] sm:$0xff] }
 0x3f9   : > { %1806 = vadd.xlane.f32.xlu1 %v1805_v6  ;;  %v7944_v46 = vld [vmem:[#allocation70_spill] sm:$0xff] }
 0x3fa   : > { %2709 = vmatprep.subr.bf16.mxu0 %v2678_v30  ;;  %v2482_v31 = vpop.xlane.xlu1 %2481  ;;  %v4408_v11 = vpop.eup %4407 }
 0x3fb   : > { %4413 = vrcp.f32 %v2482_v31  ;;  %2710 = vmatpush1.bf16.msra.mxu0 %v2677_v2  ;;  %1809 = vadd.xlane.f32.xlu0 %v1808_v15  ;;  %v2592_v7 = vmul.f32 %v4408_v11, %v6105_v59  ;;  %v2591_v4 = vmul.f32 %v4408_v11, %v6103_v47 }
 0x3fd   : > { %v4410_v17 = vpop.eup %4409  ;;  %1812 = vadd.xlane.f32.xlu1 %v1811_v36  ;;  %v7947_v36 = vld [vmem:[#allocation108_spill] sm:$0xff] }
 0x3fe   : > { %v2594_v22 = vmul.f32 %v4410_v17, %v6113_v56  ;;  %v2593_v49 = vmul.f32 %v4410_v17, %v7942_v23 }
 0x3ff   : > { %v2485_v10 = vpop.xlane.xlu0 %2484 }
 0x400   : > { %v2680_v35 = vpack.c.bf16 %v2594_v22, %v2592_v7  ;;  %v2679_v25 = vpack.c.bf16 %v2593_v49, %v2591_v4  ;;  %4415 = vrcp.f32 %v2485_v10  ;;  %v7948_v7 = vld [vmem:[#allocation75_spill] sm:$0xff]  ;;  %v7949_v4 = vld [vmem:[#allocation73_spill] sm:$0xff] }
 0x401   : > { %v7950_v49 = vld [vmem:[#allocation109_spill] sm:$0xff] }
 0x402   : > { %2711 = vmatprep.subr.bf16.mxu0 %v2680_v35  ;;  %v2488_v0 = vpop.xlane.xlu1 %2487  ;;  %v4412_v24 = vpop.eup %4411 }
 0x403   : > { %4417 = vrcp.f32 %v2488_v0  ;;  %2712 = vmatpush1.bf16.msra.mxu0 %v2679_v25  ;;  %v2596_v43 = vmul.f32 %v4412_v24, %v7943_v39  ;;  %v2595_v56 = vmul.f32 %v4412_v24, %v7945_v32 }
 0x405   : > { %v4414_v27 = vpop.eup %4413 }
 0x406   : > { %v2598_v59 = vmul.f32 %v4414_v27, %v7944_v46  ;;  %v2597_v47 = vmul.f32 %v4414_v27, %v7946_v14 }
 0x407   : > { %v2491_v6 = vpop.xlane.xlu0 %2490 }
 0x408   : > { %v2682_v30 = vpack.c.bf16 %v2598_v59, %v2596_v43  ;;  %v2681_v2 = vpack.c.bf16 %v2597_v47, %v2595_v56  ;;  %4419 = vrcp.f32 %v2491_v6  ;;  %v7951_v43 = vld [vmem:[#allocation77_spill] sm:$0xff]  ;;  %v7952_v59 = vld [vmem:[#allocation79_spill] sm:$0xff]  ;;  %v7953_v56 = vld [vmem:[#allocation76_spill] sm:$0xff] }
 0x409   : > { %v7954_v47 = vld [vmem:[#allocation78_spill] sm:$0xff] }
 0x40a   : > { %2713 = vmatprep.subr.bf16.mxu0 %v2682_v30  ;;  %v2494_v15 = vpop.xlane.xlu1 %2493  ;;  %v4416_v31 = vpop.eup %4415 }
 0x40b   : > { %4421 = vrcp.f32 %v2494_v15  ;;  %2714 = vmatpush1.bf16.msra.mxu0 %v2681_v2  ;;  %v2600_v17 = vmul.f32 %v4416_v31, %v7947_v36  ;;  %v2599_v23 = vmul.f32 %v4416_v31, %v7949_v4 }
 0x40d   : > { %v4418_v11 = vpop.eup %4417 }
 0x40e   : > { %v2602_v22 = vmul.f32 %v4418_v11, %v7948_v7  ;;  %v2601_v10 = vmul.f32 %v4418_v11, %v7950_v49 }
 0x40f   : > { %v2497_v35 = vpop.xlane.xlu0 %2496 }
 0x410   : > { %4423 = vrcp.f32 %v2497_v35  ;;  %v2684_v25 = vpack.c.bf16 %v2602_v22, %v2600_v17  ;;  %v2683_v0 = vpack.c.bf16 %v2601_v10, %v2599_v23  ;;  %v7955_v17 = vld [vmem:[#allocation81_spill] sm:$0xff]  ;;  %v7956_v22 = vld [vmem:[#allocation83_spill] sm:$0xff]  ;;  %v7957_v23 = vld [vmem:[#allocation80_spill] sm:$0xff] }
 0x411   : > { %v2500_v24 = vpop.xlane.xlu1 %2499  ;;  %v7958_v10 = vld [vmem:[#allocation82_spill] sm:$0xff] }
 0x412   : > { %2715 = vmatprep.subr.bf16.mxu0 %v2684_v25  ;;  %4425 = vrcp.f32 %v2500_v24  ;;  %v4420_v27 = vpop.eup %4419 }
 0x413   : > { %2716 = vmatpush1.bf16.msra.mxu0 %v2683_v0  ;;  %v2604_v46 = vmul.f32 %v4420_v27, %v7951_v43  ;;  %v2603_v14 = vmul.f32 %v4420_v27, %v7953_v56 }
 0x415   : > { %v4422_v39 = vpop.eup %4421 }
 0x416   : > { %v2606_v32 = vmul.f32 %v4422_v39, %v7952_v59  ;;  %v2605_v6 = vmul.f32 %v4422_v39, %v7954_v47 }
 0x417   : > { %v2503_v30 = vpop.xlane.xlu0 %2502 }
 0x418   : > { %4427 = vrcp.f32 %v2503_v30  ;;  %v2686_v2 = vpack.c.bf16 %v2606_v32, %v2604_v46  ;;  %v2685_v15 = vpack.c.bf16 %v2605_v6, %v2603_v14  ;;  %v7959_v46 = vld [vmem:[#allocation85_spill] sm:$0xff]  ;;  %v7960_v32 = vld [vmem:[#allocation87_spill] sm:$0xff]  ;;  %v7961_v14 = vld [vmem:[#allocation84_spill] sm:$0xff] }
 0x419   : > { %v2506_v31 = vpop.xlane.xlu1 %2505  ;;  %v7962_v6 = vld [vmem:[#allocation86_spill] sm:$0xff] }
 0x41a   : > { %v4424_v11 = vpop.eup %4423  ;;  %2717 = vmatprep.subr.bf16.mxu0 %v2686_v2  ;;  %4429 = vrcp.f32 %v2506_v31 }
 0x41b   : > { %2718 = vmatpush1.bf16.msra.mxu0 %v2685_v15  ;;  %v2608_v7 = vmul.f32 %v4424_v11, %v7955_v17  ;;  %v2607_v49 = vmul.f32 %v4424_v11, %v7957_v23 }
 0x41c   : > { %v4426_v36 = vpop.eup %4425 }
 0x41d   : > { %v2610_v4 = vmul.f32 %v4426_v36, %v7956_v22  ;;  %v2609_v35 = vmul.f32 %v4426_v36, %v7958_v10 }
 0x41f   : > { %v2509_v25 = vpop.xlane.xlu0 %2508  ;;  %v2688_v0 = vpack.c.bf16 %v2610_v4, %v2608_v7  ;;  %v2687_v24 = vpack.c.bf16 %v2609_v35, %v2607_v49  ;;  %v7963_v7 = vld [vmem:[#allocation89_spill] sm:$0xff]  ;;  %v7964_v4 = vld [vmem:[#allocation91_spill] sm:$0xff]  ;;  %v7965_v49 = vld [vmem:[#allocation88_spill] sm:$0xff] }
 0x420   : > { %4431 = vrcp.f32 %v2509_v25  ;;  %v7966_v35 = vld [vmem:[#allocation90_spill] sm:$0xff] }
 0x421   : > { %2719 = vmatprep.subr.bf16.mxu0 %v2688_v0 }
 0x422   : > { %v4428_v27 = vpop.eup %4427  ;;  %v2512_v39 = vpop.xlane.xlu1 %2511  ;;  %2720 = vmatpush1.bf16.msra.mxu0 %v2687_v24 }
 0x423   : > { %4433 = vrcp.f32 %v2512_v39  ;;  %v2612_v59 = vmul.f32 %v4428_v27, %v7959_v46  ;;  %v2611_v47 = vmul.f32 %v4428_v27, %v7961_v14 }
 0x424   : > { %v4430_v43 = vpop.eup %4429 }
 0x425   : > { %v2614_v56 = vmul.f32 %v4430_v43, %v7960_v32  ;;  %v2613_v30 = vmul.f32 %v4430_v43, %v7962_v6 }
 0x427   : > { %v2515_v2 = vpop.xlane.xlu0 %2514  ;;  %v2690_v15 = vpack.c.bf16 %v2614_v56, %v2612_v59  ;;  %v2689_v31 = vpack.c.bf16 %v2613_v30, %v2611_v47  ;;  %v7967_v59 = vld [vmem:[#allocation93_spill] sm:$0xff]  ;;  %v7968_v56 = vld [vmem:[#allocation95_spill] sm:$0xff]  ;;  %v7969_v47 = vld [vmem:[#allocation92_spill] sm:$0xff] }
 0x428   : > { %4435 = vrcp.f32 %v2515_v2  ;;  %v7970_v30 = vld [vmem:[#allocation94_spill] sm:$0xff] }
 0x429   : > { %2721 = vmatprep.subr.bf16.mxu0 %v2690_v15 }
 0x42a   : > { %v2518_v11 = vpop.xlane.xlu1 %2517  ;;  %2722 = vmatpush1.bf16.msra.mxu0 %v2689_v31  ;;  %v4432_v36 = vpop.eup %4431 }
 0x42b   : > { %4437 = vrcp.f32 %v2518_v11  ;;  %v2616_v22 = vmul.f32 %v4432_v36, %v7963_v7  ;;  %v2615_v10 = vmul.f32 %v4432_v36, %v7965_v49 }
 0x42d   : > { %v4434_v17 = vpop.eup %4433 }
 0x42e   : > { %v2618_v23 = vmul.f32 %v4434_v17, %v7964_v4  ;;  %v2617_v25 = vmul.f32 %v4434_v17, %v7966_v35 }
 0x42f   : > { %v2521_v0 = vpop.xlane.xlu0 %2520 }
 0x430   : > { %v2692_v24 = vpack.c.bf16 %v2618_v23, %v2616_v22  ;;  %v2691_v27 = vpack.c.bf16 %v2617_v25, %v2615_v10  ;;  %4439 = vrcp.f32 %v2521_v0  ;;  %v7971_v22 = vld [vmem:[#allocation97_spill] sm:$0xff]  ;;  %v7972_v23 = vld [vmem:[#allocation99_spill] sm:$0xff]  ;;  %v7973_v10 = vld [vmem:[#allocation96_spill] sm:$0xff] }
 0x431   : > { %v7974_v25 = vld [vmem:[#allocation98_spill] sm:$0xff] }
 0x432   : > { %2723 = vmatprep.subr.bf16.mxu0 %v2692_v24  ;;  %v2524_v39 = vpop.xlane.xlu1 %2523  ;;  %v4436_v43 = vpop.eup %4435 }
 0x433   : > { %4441 = vrcp.f32 %v2524_v39  ;;  %2724 = vmatpush1.bf16.msra.mxu0 %v2691_v27  ;;  %v2620_v32 = vmul.f32 %v4436_v43, %v7967_v59  ;;  %v2619_v6 = vmul.f32 %v4436_v43, %v7969_v47 }
 0x435   : > { %v4438_v46 = vpop.eup %4437 }
 0x436   : > { %v2622_v14 = vmul.f32 %v4438_v46, %v7968_v56  ;;  %v2621_v2 = vmul.f32 %v4438_v46, %v7970_v30 }
 0x437   : > { %v2527_v15 = vpop.xlane.xlu0 %2526 }
 0x438   : > { %v2694_v31 = vpack.c.bf16 %v2622_v14, %v2620_v32  ;;  %v2693_v11 = vpack.c.bf16 %v2621_v2, %v2619_v6  ;;  %4443 = vrcp.f32 %v2527_v15  ;;  %v7975_v32 = vld [vmem:[#allocation100_spill] sm:$0xff]  ;;  %v7977_v6 = vld [vmem:[#allocation19_spill] sm:$0xff]  ;;  %v7978_v2 = vld [vmem:[#allocation101_spill] sm:$0xff] }
 0x439   : > { %v7976_v14 = vld [vmem:[#allocation20_spill] sm:$0xff] }
 0x43a   : > { %2725 = vmatprep.subr.bf16.mxu0 %v2694_v31  ;;  %v2530_v36 = vpop.xlane.xlu1 %2529  ;;  %v4440_v17 = vpop.eup %4439 }
 0x43b   : > { %4445 = vrcp.f32 %v2530_v36  ;;  %2726 = vmatpush1.bf16.msra.mxu0 %v2693_v11  ;;  %v2624_v4 = vmul.f32 %v4440_v17, %v7971_v22  ;;  %v2623_v35 = vmul.f32 %v4440_v17, %v7973_v10 }
 0x43d   : > { %v4442_v7 = vpop.eup %4441 }
 0x43e   : > { %v2626_v49 = vmul.f32 %v4442_v7, %v7972_v23  ;;  %v2625_v0 = vmul.f32 %v4442_v7, %v7974_v25 }
 0x43f   : > { %v2533_v24 = vpop.xlane.xlu0 %2532 }
 0x440   : > { %v2696_v27 = vpack.c.bf16 %v2626_v49, %v2624_v4  ;;  %v2695_v39 = vpack.c.bf16 %v2625_v0, %v2623_v35  ;;  %4447 = vrcp.f32 %v2533_v24  ;;  %v7979_v49 = vld [vmem:[#allocation21_spill] sm:$0xff]  ;;  %v7980_v35 = vld [vmem:[#allocation103_spill] sm:$0xff]  ;;  %v7981_v0 = vld [vmem:[#allocation102_spill] sm:$0xff] }
 0x441   : > { %v2536_v43 = vpop.xlane.xlu1 %2535 }
 0x442   : > { %2727 = vmatprep.subr.bf16.mxu0 %v2696_v27  ;;  %v4444_v46 = vpop.eup %4443  ;;  %4449 = vrcp.f32 %v2536_v43  ;;  %v7982_v27 = vld [vmem:[#allocation22_spill] sm:$0xff] }
 0x443   : > { %2728 = vmatpush1.bf16.msra.mxu0 %v2695_v39  ;;  %v2628_v56 = vmul.f32 %v4444_v46, %v7975_v32  ;;  %v2627_v30 = vmul.f32 %v4444_v46, %v7977_v6 }
 0x445   : > { %v4446_v59 = vpop.eup %4445 }
 0x446   : > { %v2630_v47 = vmul.f32 %v4446_v59, %v7976_v14  ;;  %v2629_v15 = vmul.f32 %v4446_v59, %v7978_v2 }
 0x447   : > { %v2539_v31 = vpop.xlane.xlu0 %2538 }
 0x448   : > { %v2698_v11 = vpack.c.bf16 %v2630_v47, %v2628_v56  ;;  %v2697_v36 = vpack.c.bf16 %v2629_v15, %v2627_v30  ;;  %4451 = vrcp.f32 %v2539_v31  ;;  %v7983_v15 = vld [vmem:[#allocation59_spill] sm:$0xff] }
 0x449   : > { %v2542_v17 = vpop.xlane.xlu1 %2541 }
 0x44a   : > { %2729 = vmatprep.subr.bf16.mxu0 %v2698_v11  ;;  %v4448_v7 = vpop.eup %4447  ;;  %4453 = vrcp.f32 %v2542_v17 }
 0x44b   : > { %2730 = vmatpush1.bf16.msra.mxu0 %v2697_v36  ;;  %v1744_v22 = vpop.xlane.xlu0 %1743  ;;  %v2632_v10 = vmul.f32 %v4448_v7, %v7979_v49  ;;  %v2631_v24 = vmul.f32 %v4448_v7, %v7981_v0  ;;  %v7986_v49 = vld [vmem:[#allocation23_spill] sm:$0xff] }
 0x44c   : > { %v4450_v4 = vpop.eup %4449  ;;  %4455 = vrcp.f32 %v1744_v22  ;;  %v7984_v22 = vld [vmem:[#allocation24_spill] sm:$0xff] }
 0x44d   : > { %v1747_v23 = vpop.xlane.xlu1 %1746  ;;  %v2634_v25 = vmul.f32 %v4450_v4, %v7980_v35  ;;  %v2633_v39 = vmul.f32 %v4450_v4, %v7982_v27  ;;  %v7987_v35 = vld [vmem:[#allocation25_spill] sm:$0xff] }
 0x44e   : > { %4457 = vrcp.f32 %v1747_v23 }
 0x44f   : > { %v1528_v43 = vpop.xlane.xlu0 %1527  ;;  %v2700_v46 = vpack.c.bf16 %v2634_v25, %v2632_v10  ;;  %v2699_v59 = vpack.c.bf16 %v2633_v39, %v2631_v24 }
 0x450   : > { %v1598_v32 = vsub.f32 %v7893_v41, %v1528_v43  ;;  %v1599_v56 = vsub.f32 %v7894_v58, %v1528_v43  ;;  %v7985_v58 = vld [vmem:[#allocation26_spill] sm:$0xff]  ;;  %v7988_v43 = vld [vmem:[#allocation104_spill] sm:$0xff] }
 0x451   : > { %2731 = vmatprep.subr.bf16.mxu0 %v2700_v46  ;;  %v1531_v14 = vpop.xlane.xlu1 %1530 }
 0x452   : > { %v4452_v47 = vpop.eup %4451  ;;  %v1710_v6 = vmul.f32 1.442695, %v1598_v32  ;;  %v1712_v30 = vmul.f32 1.442695, %v1599_v56  ;;  %v1600_v2 = vsub.f32 %v7898_v54, %v1531_v14  ;;  %v1601_v31 = vsub.f32 %v7983_v15, %v1531_v14  ;;  %2732 = vmatpush1.bf16.msra.mxu0 %v2699_v59  ;;  %v7989_v59 = vld [vmem:[#allocation60_spill] sm:$0xff]  ;;  %v7990_v56 = vld [vmem:[#allocation61_spill] sm:$0xff] }
 0x453   : > { %v1750_v11 = vpop.xlane.xlu0 %1749  ;;  %v2636_v4 = vmul.f32 %v4452_v47, %v7984_v22  ;;  %v2635_v10 = vmul.f32 %v4452_v47, %v7986_v49  ;;  %v7994_v22 = vld [vmem:[#allocation62_spill] sm:$0xff] }
 0x454   : > { %v4454_v36 = vpop.eup %4453  ;;  %4459 = vpow2.f32 %v1710_v6  ;;  %v1714_v17 = vmul.f32 1.442695, %v1600_v2  ;;  %v1716_v7 = vmul.f32 1.442695, %v1601_v31  ;;  %v7991_v6 = vld [vmem:[#allocation28_spill] sm:$0xff]  ;;  %v7992_v2 = vld [vmem:[#allocation27_spill] sm:$0xff] }
 0x455   : > { %4461 = vpow2.f32 %v1712_v30  ;;  %v1753_v41 = vpop.xlane.xlu1 %1752  ;;  %v2638_v23 = vmul.f32 %v4454_v36, %v7985_v58  ;;  %v2637_v25 = vmul.f32 %v4454_v36, %v7987_v35  ;;  %v7993_v31 = vld [vmem:[#allocation29_spill] sm:$0xff]  ;;  %v7995_v58 = vld [vmem:[#allocation63_spill] sm:$0xff] }
 0x456   : > { %v4456_v0 = vpop.eup %4455  ;;  %4463 = vpow2.f32 %v1714_v17 }
 0x457   : > { %4465 = vpow2.f32 %v1716_v7  ;;  %v1534_v54 = vpop.xlane.xlu0 %1533  ;;  %v2702_v24 = vpack.c.bf16 %v2638_v23, %v2636_v4  ;;  %v2701_v27 = vpack.c.bf16 %v2637_v25, %v2635_v10  ;;  %v1870_v46 = vmul.f32 %v4456_v0, %v7988_v43 }
 0x458   : > { %v4458_v39 = vpop.eup %4457  ;;  %4467 = vrcp.f32 %v1750_v11  ;;  %v1602_v32 = vsub.f32 %v7989_v59, %v1534_v54  ;;  %v1603_v14 = vsub.f32 %v7990_v56, %v1534_v54  ;;  %v1871_v15 = vmul.f32 %v4456_v0, %v7992_v2  ;;  %v7996_v11 = vld [vmem:[#allocation12_spill] sm:$0xff] }
 0x459   : > { %v1872_v30 = vmul.f32 %v4458_v39, %v7991_v6  ;;  %4469 = vrcp.f32 %v1753_v41  ;;  %2733 = vmatprep.subr.bf16.mxu0 %v2702_v24  ;;  %v1537_v47 = vpop.xlane.xlu1 %1536  ;;  %v1873_v36 = vmul.f32 %v4458_v39, %v7993_v31  ;;  %v7997_v39 = vld [vmem:[#allocation4_spill] sm:$0xff] }
 0x45a   : > { %v1718_v17 = vmul.f32 1.442695, %v1602_v32  ;;  %v1720_v7 = vmul.f32 1.442695, %v1603_v14  ;;  %v1604_v4 = vsub.f32 %v7994_v22, %v1537_v47  ;;  %v1605_v23 = vsub.f32 %v7995_v58, %v1537_v47  ;;  %2734 = vmatpush1.bf16.msra.mxu0 %v2701_v27  ;;  %v7999_v32 = vld [vmem:[#allocation65_spill] sm:$0xff] }
 0x45b   : > { %3926 = vmatprep.subr.bf16.mxu0 %v7996_v11  ;;  %v1756_v49 = vpop.xlane.xlu0 %1755  ;;  %v2640_v10 = vpack.c.bf16 %v1873_v36, %v1871_v15  ;;  %v2639_v35 = vpack.c.bf16 %v1872_v30, %v1870_v46  ;;  %v7998_v46 = vld [vmem:[#allocation11_spill] sm:$0xff] }
 0x45c   : > { %4471 = vpow2.f32 %v1718_v17  ;;  %v1722_v41 = vmul.f32 1.442695, %v1604_v4  ;;  %v1724_v25 = vmul.f32 1.442695, %v1605_v23  ;;  %v8001_v4 = vld [vmem:[#allocation31_spill] sm:$0xff] }
 0x45d   : > { %4473 = vpow2.f32 %v1720_v7  ;;  %2735 = vmatprep.mubr.bf16.mxu0 %v2640_v10  ;;  %v1759_v0 = vpop.xlane.xlu1 %1758  ;;  %v8000_v7 = vld [vmem:[#allocation3_spill] sm:$0xff]  ;;  %v8003_v10 = vld [vmem:[#allocation33_spill] sm:$0xff] }
 0x45e   : > { %v6652_v54 = vpop.eup %4459  ;;  %4475 = vpow2.f32 %v1722_v41  ;;  %2736 = vmatmul.mubr.bf16.vlgmr.msra.gmra.mrb[128].mxu0 %v2639_v35 }
 0x45f   : > { %v6654_v24 = vpop.eup %4461  ;;  %4477 = vpow2.f32 %v1724_v25  ;;  %3927 = vmatpush3.bf16.msra.mxu0 %v7997_v39  ;;  %v1540_v27 = vpop.xlane.xlu0 %1539  ;;  %v8005_v25 = vld [vmem:[#allocation32_spill] sm:$0xff] }
 0x460   : > { %v6657_v43 = vpop.eup %4463  ;;  %4479 = vrcp.f32 %v1756_v49  ;;  %3928 = vmatprep.subr.bf16.mxu0 %v7998_v46  ;;  %v1606_v59 = vsub.f32 %v7925_v37, %v1540_v27  ;;  %v1607_v56 = vsub.f32 %v7999_v32, %v1540_v27  ;;  %v1814_v14 = vadd.f32 %v6654_v24, %v6652_v54  ;;  %v8002_v49 = vld [vmem:[#allocation14_spill] sm:$0xff] }
 0x461   : > { %v6664_v6 = vpop.eup %4465  ;;  %4481 = vrcp.f32 %v1759_v0  ;;  %v1543_v30 = vpop.xlane.xlu1 %1542  ;;  %v8006_v32 = vld [vmem:[#allocation6_spill] sm:$0xff] }
 0x462   : > { %v4468_v47 = vpop.eup %4467  ;;  %v1726_v2 = vmul.f32 1.442695, %v1606_v59  ;;  %v1728_v15 = vmul.f32 1.442695, %v1607_v56  ;;  %v1608_v31 = vsub.f32 %v7929_v5, %v1543_v30  ;;  %v1609_v36 = vsub.f32 %v7930_v3, %v1543_v30  ;;  %1815 = vadd.xlane.f32.xlu0 %v1814_v14  ;;  %v8004_v5 = vld [vmem:[#allocation30_spill] sm:$0xff]  ;;  %v8007_v30 = vld [vmem:[#allocation13_spill] sm:$0xff] }
 0x463   : > { %v4470_v17 = vpop.eup %4469  ;;  %3929 = vmatpush3.bf16.msra.mxu0 %v8000_v7  ;;  %v1762_v37 = vpop.xlane.xlu0 %1761  ;;  %v1817_v22 = vadd.f32 %v6664_v6, %v6657_v43  ;;  %v1875_v58 = vmul.f32 %v4468_v47, %v8001_v4  ;;  %v1874_v41 = vmul.f32 %v4468_v47, %v8004_v5 }
 0x464   : > { %4483 = vpow2.f32 %v1726_v2  ;;  %v1730_v23 = vmul.f32 1.442695, %v1608_v31  ;;  %v1732_v11 = vmul.f32 1.442695, %v1609_v36  ;;  %3930 = vmatprep.subr.bf16.mxu0 %v8002_v49  ;;  %v1877_v35 = vmul.f32 %v4470_v17, %v8003_v10  ;;  %v8008_v2 = vld [vmem:[#allocation71_spill] sm:$0xff] }
 0x465   : > { %4485 = vpow2.f32 %v1728_v15  ;;  %1818 = vadd.xlane.f32.xlu1 %v1817_v22  ;;  %v1765_v3 = vpop.xlane.xlu1 %1764  ;;  %v1876_v0 = vmul.f32 %v4470_v17, %v8005_v25  ;;  %v8012_v25 = vld [vmem:[#allocation16_spill] sm:$0xff] }
 0x466   : > { %v6676_v39 = vpop.eup %4471  ;;  %4487 = vpow2.f32 %v1730_v23  ;;  %v2642_v27 = vpack.c.bf16 %v1877_v35, %v1875_v58  ;;  %v8009_v58 = vld [vmem:[#allocation74_spill] sm:$0xff]  ;;  %v8011_v35 = vld [vmem:[#allocation35_spill] sm:$0xff] }
 0x467   : > { %v6678_v46 = vpop.eup %4473  ;;  %4489 = vpow2.f32 %v1732_v11  ;;  %v2641_v59 = vpack.c.bf16 %v1876_v0, %v1874_v41  ;;  %3931 = vmatpush3.bf16.msra.mxu0 %v8006_v32  ;;  %v8013_v0 = vld [vmem:[#allocation37_spill] sm:$0xff] }
 0x468   : > { %v1546_v56 = vpop.xlane.xlu0 %1545  ;;  %v6681_v14 = vpop.eup %4475  ;;  %4491 = vrcp.f32 %v1762_v37  ;;  %2745 = vmatprep.mubr.bf16.mxu0 %v2642_v27  ;;  %3932 = vmatprep.subr.bf16.mxu0 %v8007_v30  ;;  %v1820_v31 = vadd.f32 %v6678_v46, %v6676_v39 }
 0x469   : > { %v1610_v47 = vsub.f32 %v7933_v50, %v1546_v56  ;;  %v1611_v15 = vsub.f32 %v8008_v2, %v1546_v56  ;;  %v6688_v36 = vpop.eup %4477  ;;  %4493 = vrcp.f32 %v1765_v3  ;;  %2746 = vmatmul.mubr.bf16.gmra.mrb[132].mxu0 %v2641_v59  ;;  %v8010_v50 = vld [vmem:[#allocation5_spill] sm:$0xff]  ;;  %v8014_v59 = vld [vmem:[#allocation34_spill] sm:$0xff]  ;;  %v8015_v56 = vld [vmem:[#allocation36_spill] sm:$0xff] }
 0x46a   : > { %v1549_v17 = vpop.xlane.xlu1 %1548  ;;  %v4480_v7 = vpop.eup %4479  ;;  %1821 = vadd.xlane.f32.xlu0 %v1820_v31  ;;  %v1823_v10 = vadd.f32 %v6688_v36, %v6681_v14 }
 0x46b   : > { %v1734_v22 = vmul.f32 1.442695, %v1610_v47  ;;  %v1736_v4 = vmul.f32 1.442695, %v1611_v15  ;;  %v1612_v37 = vsub.f32 %v7937_v52, %v1549_v17  ;;  %v1613_v23 = vsub.f32 %v8009_v58, %v1549_v17  ;;  %v4482_v11 = vpop.eup %4481  ;;  %3933 = vmatpush3.bf16.msra.mxu0 %v8010_v50  ;;  %v8016_v17 = vld [vmem:[#allocation8_spill] sm:$0xff] }
 0x46c   : > { %v1768_v49 = vpop.xlane.xlu0 %1767  ;;  %v1879_v5 = vmul.f32 %v4480_v7, %v8011_v35  ;;  %3934 = vmatprep.subr.bf16.mxu0 %v8012_v25  ;;  %v1881_v27 = vmul.f32 %v4482_v11, %v8013_v0  ;;  %1824 = vadd.xlane.f32.xlu1 %v1823_v10  ;;  %v1878_v32 = vmul.f32 %v4480_v7, %v8014_v59  ;;  %v8019_v35 = vld [vmem:[#allocation41_spill] sm:$0xff]  ;;  %v8022_v0 = vld [vmem:[#allocation38_spill] sm:$0xff] }
 0x46d   : > { %4495 = vpow2.f32 %v1734_v22  ;;  %v1738_v3 = vmul.f32 1.442695, %v1612_v37  ;;  %v1740_v41 = vmul.f32 1.442695, %v1613_v23  ;;  %v1880_v30 = vmul.f32 %v4482_v11, %v8015_v56 }
 0x46e   : > { %4497 = vpow2.f32 %v1736_v4  ;;  %v1771_v52 = vpop.xlane.xlu1 %1770  ;;  %v6700_v47 = vpop.eup %4483  ;;  %v2644_v2 = vpack.c.bf16 %v1881_v27, %v1879_v5  ;;  %v8017_v4 = vld [vmem:[#allocation15_spill] sm:$0xff] }
 0x46f   : > { %4499 = vpow2.f32 %v1738_v3  ;;  %v6702_v15 = vpop.eup %4485  ;;  %v2643_v31 = vpack.c.bf16 %v1880_v30, %v1878_v32  ;;  %3935 = vmatpush3.bf16.msra.mxu0 %v8016_v17  ;;  %v8020_v3 = vld [vmem:[#allocation18_spill] sm:$0xff] }
 0x470   : > { %4501 = vpow2.f32 %v1740_v41  ;;  %v1774_v22 = vpop.xlane.xlu0 %1773  ;;  %v6705_v37 = vpop.eup %4487  ;;  %2755 = vmatprep.mubr.bf16.mxu0 %v2644_v2  ;;  %3936 = vmatprep.subr.bf16.mxu0 %v8017_v4  ;;  %v1826_v7 = vadd.f32 %v6702_v15, %v6700_v47  ;;  %v8021_v41 = vld [vmem:[#allocation39_spill] sm:$0xff] }
 0x471   : > { %4503 = vrcp.f32 %v1768_v49  ;;  %v6710_v58 = vpop.eup %4489  ;;  %2756 = vmatmul.mubr.bf16.gmra.mrb[136].mxu0 %v2643_v31  ;;  %v8018_v49 = vld [vmem:[#allocation7_spill] sm:$0xff] }
 0x472   : > { %4505 = vrcp.f32 %v1771_v52  ;;  %v1777_v23 = vpop.xlane.xlu1 %1776  ;;  %v4492_v11 = vpop.eup %4491  ;;  %1827 = vadd.xlane.f32.xlu0 %v1826_v7  ;;  %v1829_v50 = vadd.f32 %v6710_v58, %v6705_v37  ;;  %v8023_v52 = vld [vmem:[#allocation42_spill] sm:$0xff]  ;;  %v8025_v7 = vld [vmem:[#allocation17_spill] sm:$0xff] }
 0x473   : > { %4507 = vrcp.f32 %v1774_v22  ;;  %v4494_v10 = vpop.eup %4493  ;;  %3937 = vmatpush3.bf16.msra.mxu0 %v8018_v49  ;;  %v1883_v5 = vmul.f32 %v4492_v11, %v8019_v35  ;;  %v1882_v27 = vmul.f32 %v4492_v11, %v8022_v0  ;;  %v8024_v22 = vld [vmem:[#allocation10_spill] sm:$0xff]  ;;  %v8026_v35 = vld [vmem:[#allocation9_spill] sm:$0xff] }
 0x474   : > { %4509 = vrcp.f32 %v1777_v23  ;;  %3938 = vmatprep.subr.bf16.mxu0 %v8020_v3  ;;  %1830 = vadd.xlane.f32.xlu1 %v1829_v50  ;;  %v1885_v25 = vmul.f32 %v4494_v10, %v8021_v41  ;;  %v1884_v59 = vmul.f32 %v4494_v10, %v8023_v52  ;;  %v1780_v30 = vpop.xlane.xlu0 %1779 }
 0x476   : > { %v1783_v32 = vpop.xlane.xlu1 %1782  ;;  %v2646_v2 = vpack.c.bf16 %v1885_v25, %v1883_v5  ;;  %v2645_v31 = vpack.c.bf16 %v1884_v59, %v1882_v27  ;;  %v8027_v25 = vld [vmem:[#allocation57_spill] sm:$0xff]  ;;  %v8028_v27 = vld [vmem:[#allocation40_spill] sm:$0xff] }
 0x477   : > { %v6720_v56 = vpop.eup %4495  ;;  %4511 = vrcp.f32 %v1783_v32  ;;  %3939 = vmatpush3.bf16.msra.mxu0 %v8024_v22  ;;  %v8029_v59 = vld [vmem:[#allocation56_spill] sm:$0xff] }
 0x478   : > { %v6722_v17 = vpop.eup %4497  ;;  %2765 = vmatprep.mubr.bf16.mxu0 %v2646_v2  ;;  %3940 = vmatprep.subr.bf16.mxu0 %v8025_v7  ;;  %4513 = vrcp.f32 %v1780_v30  ;;  %v1786_v2 = vpop.xlane.xlu0 %1785 }
 0x479   : > { %v6725_v4 = vpop.eup %4499  ;;  %v1832_v23 = vadd.f32 %v6722_v17, %v6720_v56  ;;  %2766 = vmatmul.mubr.bf16.gmra.mrb[140].mxu0 %v2645_v31 }
 0x47a   : > { %v6730_v11 = vpop.eup %4501  ;;  %v1789_v3 = vpop.xlane.xlu1 %1788 }
 0x47b   : > { %v4504_v50 = vpop.eup %4503  ;;  %1833 = vadd.xlane.f32.xlu0 %v1832_v23  ;;  %v1835_v10 = vadd.f32 %v6730_v11, %v6725_v4  ;;  %3941 = vmatpush3.bf16.msra.mxu0 %v8026_v35  ;;  %4515 = vrcp.f32 %v1789_v3 }
 0x47c   : > { %v4506_v49 = vpop.eup %4505  ;;  %v1887_v41 = vmul.f32 %v4504_v50, %v6431_v12  ;;  %v1886_v52 = vmul.f32 %v4504_v50, %v8028_v27  ;;  %4517 = vrcp.f32 %v1786_v2 }
 0x47d   : > { %v4508_v5 = vpop.eup %4507  ;;  %1836 = vadd.xlane.f32.xlu1 %v1835_v10  ;;  %v1889_v0 = vmul.f32 %v4506_v49, %v8027_v25  ;;  %v1888_v32 = vmul.f32 %v4506_v49, %v8029_v59 }
 0x47e   : > { %v4510_v30 = vpop.eup %4509  ;;  %v1891_v7 = vmul.f32 %v4508_v5, %v6458_v28  ;;  %v1795_v25 = vpop.xlane.xlu1 %1794 }
 0x47f   : > { %v2648_v31 = vpack.c.bf16 %v1889_v0, %v1887_v41  ;;  %v2647_v22 = vpack.c.bf16 %v1888_v32, %v1886_v52  ;;  %v1893_v23 = vmul.f32 %v4510_v30, %v6451_v45  ;;  %v1892_v50 = vmul.f32 %v4510_v30, %v6447_v44  ;;  %v1792_v0 = vpop.xlane.xlu0 %1791 }
 0x480   : > { %v1890_v41 = vmul.f32 %v4508_v5, %v6456_v63  ;;  %4519 = vrcp.f32 %v1795_v25 }
 0x481   : > { %2775 = vmatprep.mubr.bf16.mxu0 %v2648_v31  ;;  %v2650_v35 = vpack.c.bf16 %v1893_v23, %v1891_v7  ;;  %v4512_v10 = vpop.eup %4511  ;;  %4521 = vrcp.f32 %v1792_v0 }
 0x482   : > { %2776 = vmatmul.mubr.bf16.gmra.mrb[144].mxu0 %v2647_v22  ;;  %v4514_v12 = vpop.eup %4513  ;;  %v1897_v49 = vmul.f32 %v4512_v10, %v6479_v29  ;;  %v2649_v45 = vpack.c.bf16 %v1892_v50, %v1890_v41  ;;  %v1896_v59 = vmul.f32 %v4512_v10, %v6475_v9  ;;  %v1801_v32 = vpop.xlane.xlu1 %1800 }
 0x483   : > { %2785 = vmatprep.mubr.bf16.mxu0 %v2650_v35  ;;  %v1895_v28 = vmul.f32 %v4514_v12, %v6471_v61  ;;  %v1894_v29 = vmul.f32 %v4514_v12, %v6467_v19  ;;  %v1798_v30 = vpop.xlane.xlu0 %1797  ;;  %4523 = vrcp.f32 %v1801_v32 }
 0x484   : > { %4525 = vrcp.f32 %v1798_v30 }
 0x485   : > { %v2652_v3 = vpack.c.bf16 %v1897_v49, %v1895_v28  ;;  %v4516_v27 = vpop.eup %4515  ;;  %v2651_v61 = vpack.c.bf16 %v1896_v59, %v1894_v29 }
 0x486   : > { %v4518_v52 = vpop.eup %4517  ;;  %v1901_v44 = vmul.f32 %v4516_v27, %v6505_v51  ;;  %v1900_v22 = vmul.f32 %v4516_v27, %v6492_v1  ;;  %v1807_v7 = vpop.xlane.xlu1 %1806 }
 0x487   : > { %v1899_v63 = vmul.f32 %v4518_v52, %v6485_v55  ;;  %v1898_v51 = vmul.f32 %v4518_v52, %v6481_v26  ;;  %v1804_v23 = vpop.xlane.xlu0 %1803  ;;  %4527 = vrcp.f32 %v1807_v7 }
 0x488   : > { %4529 = vrcp.f32 %v1804_v23 }
 0x489   : > { %v2654_v5 = vpack.c.bf16 %v1901_v44, %v1899_v63  ;;  %v2653_v55 = vpack.c.bf16 %v1900_v22, %v1898_v51 }
 0x48a   : > { %2786 = vmatmul.mubr.bf16.gmra.mrb[148].mxu0 %v2649_v45  ;;  %v4520_v2 = vpop.eup %4519  ;;  %v1813_v25 = vpop.xlane.xlu1 %1812 }
 0x48b   : > { %2795 = vmatprep.mubr.bf16.mxu0 %v2652_v3  ;;  %v4522_v31 = vpop.eup %4521  ;;  %v1905_v9 = vmul.f32 %v4520_v2, %v6523_v34  ;;  %v1904_v50 = vmul.f32 %v4520_v2, %v6519_v8  ;;  %v1810_v49 = vpop.xlane.xlu0 %1809  ;;  %4531 = vrcp.f32 %v1813_v25 }
 0x48c   : > { %v1903_v19 = vmul.f32 %v4522_v31, %v6517_v42  ;;  %v1902_v34 = vmul.f32 %v4522_v31, %v6511_v40  ;;  %4533 = vrcp.f32 %v1810_v49 }
 0x48d   : > { %v4524_v10 = vpop.eup %4523 }
 0x48e   : > { %v2656_v35 = vpack.c.bf16 %v1905_v9, %v1903_v19  ;;  %v4526_v12 = vpop.eup %4525  ;;  %v1909_v1 = vmul.f32 %v4524_v10, %v6547_v33  ;;  %v2655_v42 = vpack.c.bf16 %v1904_v50, %v1902_v34  ;;  %v1908_v45 = vmul.f32 %v4524_v10, %v6543_v53 }
 0x48f   : > { %v1907_v26 = vmul.f32 %v4526_v12, %v6537_v48  ;;  %v1906_v3 = vmul.f32 %v4526_v12, %v6527_v60 }
 0x491   : > { %v2658_v41 = vpack.c.bf16 %v1909_v1, %v1907_v26  ;;  %v4528_v0 = vpop.eup %4527  ;;  %v2657_v40 = vpack.c.bf16 %v1908_v45, %v1906_v3 }
 0x492   : > { %2796 = vmatmul.mubr.bf16.gmra.mrb[152].mxu0 %v2651_v61  ;;  %v4530_v28 = vpop.eup %4529  ;;  %v1913_v8 = vmul.f32 %v4528_v0, %v6565_v16  ;;  %v1912_v59 = vmul.f32 %v4528_v0, %v6561_v18 }
 0x493   : > { %2805 = vmatprep.mubr.bf16.mxu0 %v2654_v5  ;;  %v1911_v33 = vmul.f32 %v4530_v28, %v6555_v21  ;;  %v1910_v44 = vmul.f32 %v4530_v28, %v6551_v38 }
 0x495   : > { %v2660_v27 = vpack.c.bf16 %v1913_v8, %v1911_v33  ;;  %v4532_v52 = vpop.eup %4531  ;;  %v2659_v29 = vpack.c.bf16 %v1912_v59, %v1910_v44 }
 0x496   : > { %v4534_v48 = vpop.eup %4533  ;;  %v1917_v32 = vmul.f32 %v4532_v52, %v6583_v13  ;;  %v1916_v60 = vmul.f32 %v4532_v52, %v6577_v20 }
 0x497   : > { %v1915_v53 = vmul.f32 %v4534_v48, %v6573_v62  ;;  %v1914_v21 = vmul.f32 %v4534_v48, %v6569_v57 }
 0x499   : > { %v2662_v16 = vpack.c.bf16 %v1917_v32, %v1915_v53  ;;  %v2661_v30 = vpack.c.bf16 %v1916_v60, %v1914_v21 }
 0x49a   : > { %2806 = vmatmul.mubr.bf16.gmra.mrb[156].mxu0 %v2653_v55 }
 0x49b   : > { %2815 = vmatprep.mubr.bf16.mxu0 %v2656_v35 }
 0x4a2   : > { %2816 = vmatmul.mubr.bf16.gmra.mrb[160].mxu0 %v2655_v42 }
 0x4a3   : > { %2825 = vmatprep.mubr.bf16.mxu0 %v2658_v41 }
 0x4aa   : > { %2826 = vmatmul.mubr.bf16.gmra.mrb[164].mxu0 %v2657_v40 }
 0x4ab   : > { %2835 = vmatprep.mubr.bf16.mxu0 %v2660_v27 }
 0x4b2   : > { %2836 = vmatmul.mubr.bf16.gmra.mrb[168].mxu0 %v2659_v29 }
 0x4b3   : > { %2845 = vmatprep.mubr.bf16.mxu0 %v2662_v16 }
 0x4ba   : > { %2846 = vmatmul.mubr.bf16.gmra.mrb[172].mxu0 %v2661_v30 }
 0x4ef   : > { %v1816_v63 = vpop.xlane.xlu0 %1815 }
 0x4f0   : > { %4535 = vrcp.f32 %v1816_v63 }
 0x4f2   : > { %v1819_v61 = vpop.xlane.xlu1 %1818 }
 0x4f3   : > { %4537 = vrcp.f32 %v1819_v61 }
 0x4f7   : > { %v1822_v18 = vpop.xlane.xlu0 %1821 }
 0x4f8   : > { %4539 = vrcp.f32 %v1822_v18 }
 0x4f9   : > { %v1825_v13 = vpop.xlane.xlu1 %1824 }
 0x4fa   : > { %v4536_v38 = vpop.eup %4535  ;;  %4541 = vrcp.f32 %v1825_v13 }
 0x4fb   : > { %v1919_v5 = vmul.f32 %v4536_v38, %v6654_v24  ;;  %v1918_v20 = vmul.f32 %v4536_v38, %v6652_v54 }
 0x4fd   : > { %v4538_v62 = vpop.eup %4537 }
 0x4fe   : > { %v1921_v2 = vmul.f32 %v4538_v62, %v6664_v6  ;;  %v1920_v57 = vmul.f32 %v4538_v62, %v6657_v43 }
 0x4ff   : > { %v1828_v31 = vpop.xlane.xlu0 %1827 }
 0x500   : > { %4543 = vrcp.f32 %v1828_v31  ;;  %v2664_v22 = vpack.c.bf16 %v1921_v2, %v1919_v5  ;;  %v2663_v7 = vpack.c.bf16 %v1920_v57, %v1918_v20 }
 0x501   : > { %v1831_v9 = vpop.xlane.xlu1 %1830 }
 0x502   : > { %2855 = vmatprep.mubr.bf16.mxu0 %v2664_v22  ;;  %4545 = vrcp.f32 %v1831_v9  ;;  %v4540_v51 = vpop.eup %4539 }
 0x503   : > { %2856 = vmatmul.mubr.bf16.gmra.mrb[176].mxu0 %v2663_v7  ;;  %v1923_v19 = vmul.f32 %v4540_v51, %v6678_v46  ;;  %v1922_v6 = vmul.f32 %v4540_v51, %v6676_v39 }
 0x504   : > { %v4542_v23 = vpop.eup %4541 }
 0x505   : > { %v1925_v24 = vmul.f32 %v4542_v23, %v6688_v36  ;;  %v1924_v54 = vmul.f32 %v4542_v23, %v6681_v14 }
 0x507   : > { %v2666_v43 = vpack.c.bf16 %v1925_v24, %v1923_v19  ;;  %v2665_v35 = vpack.c.bf16 %v1924_v54, %v1922_v6 }
 0x508   : > { %v1834_v55 = vpop.xlane.xlu0 %1833 }
 0x509   : > { %4547 = vrcp.f32 %v1834_v55  ;;  %2865 = vmatprep.mubr.bf16.mxu0 %v2666_v43 }
 0x50a   : > { %v1837_v10 = vpop.xlane.xlu1 %1836  ;;  %v4544_v12 = vpop.eup %4543 }
 0x50b   : > { %4549 = vrcp.f32 %v1837_v10  ;;  %2866 = vmatmul.mubr.bf16.gmra.mrb[180].mxu0 %v2665_v35  ;;  %v1927_v25 = vmul.f32 %v4544_v12, %v6702_v15  ;;  %v1926_v36 = vmul.f32 %v4544_v12, %v6700_v47 }
 0x50c   : > { %v4546_v50 = vpop.eup %4545 }
 0x50d   : > { %v1929_v46 = vmul.f32 %v4546_v50, %v6710_v58  ;;  %v1928_v39 = vmul.f32 %v4546_v50, %v6705_v37 }
 0x50f   : > { %v2668_v1 = vpack.c.bf16 %v1929_v46, %v1927_v25  ;;  %v2667_v14 = vpack.c.bf16 %v1928_v39, %v1926_v36 }
 0x511   : > { %2875 = vmatprep.mubr.bf16.mxu0 %v2668_v1 }
 0x513   : > { %v4548_v34 = vpop.eup %4547  ;;  %2876 = vmatmul.mubr.bf16.gmra.mrb[184].mxu0 %v2667_v14 }
 0x514   : > { %v1931_v26 = vmul.f32 %v4548_v34, %v6722_v17  ;;  %v1930_v41 = vmul.f32 %v4548_v34, %v6720_v56 }
 0x515   : > { %v4550_v49 = vpop.eup %4549 }
 0x516   : > { %v1933_v42 = vmul.f32 %v4550_v49, %v6730_v11  ;;  %v1932_v15 = vmul.f32 %v4550_v49, %v6725_v4 }
 0x518   : > { %v2670_v0 = vpack.c.bf16 %v1933_v42, %v1931_v26  ;;  %v2669_v58 = vpack.c.bf16 %v1932_v15, %v1930_v41 }
 0x51a   : > { %2885 = vmatprep.mubr.bf16.mxu0 %v2670_v0 }
 0x51b   : > { %2886 = vmatmul.mubr.bf16.gmra.mrb[188].mxu0 %v2669_v58 }
 0x531   : > { %v6783_v47 = vpop.f32.mrb[128].mxu0 }
 0x532   : > { %v6785_v37 = vpop.f32.mrb[129].mxu0 }
 0x533   : > { %v2896_v28 = vmax.f32 %v6783_v47, %v6785_v37  ;;  %v6789_v45 = vpop.f32.mrb[130].mxu0 }
 0x534   : > { %v6791_v17 = vpop.f32.mrb[131].mxu0 }
 0x535   : > { %v2899_v56 = vmax.f32 %v6789_v45, %v6791_v17 }
 0x53c   : > { %v6795_v11 = vpop.f32.mrb[132].mxu0 }
 0x53d   : > { %v6797_v4 = vpop.f32.mrb[133].mxu0 }
 0x53e   : > { %v2902_v8 = vmax.f32 %v6795_v11, %v6797_v4  ;;  %v6801_v3 = vpop.f32.mrb[134].mxu0 }
 0x53f   : > { %v6803_v33 = vpop.f32.mrb[135].mxu0 }
 0x540   : > { %8030 = vst [vmem:[#allocation43_spill] sm:$0xff] %v6803_v33  ;;  %v2905_v40 = vmax.f32 %v6801_v3, %v6803_v33 }
 0x544   : > { %v6807_v27 = vpop.f32.mrb[136].mxu0 }
 0x545   : > { %v6809_v52 = vpop.f32.mrb[137].mxu0 }
 0x546   : > { %8031 = vst [vmem:[#allocation58_spill] sm:$0xff] %v6809_v52  ;;  %v2908_v48 = vmax.f32 %v6807_v27, %v6809_v52  ;;  %v6813_v59 = vpop.f32.mrb[138].mxu0 }
 0x547   : > { %v6815_v32 = vpop.f32.mrb[139].mxu0 }
 0x54c   : > { %v6819_v53 = vpop.f32.mrb[140].mxu0 }
 0x54d   : > { %v6821_v29 = vpop.f32.mrb[141].mxu0 }
 0x54e   : > { %v6825_v60 = vpop.f32.mrb[142].mxu0 }
 0x54f   : > { %v6827_v21 = vpop.f32.mrb[143].mxu0 }
 0x555   : > { %v6831_v63 = vpop.f32.mrb[144].mxu0 }
 0x556   : > { %v6833_v61 = vpop.f32.mrb[145].mxu0 }
 0x557   : > { %v2920_v18 = vmax.f32 %v6831_v63, %v6833_v61  ;;  %v6837_v13 = vpop.f32.mrb[146].mxu0 }
 0x558   : > { %v6839_v38 = vpop.f32.mrb[147].mxu0 }
 0x559   : > { %v2923_v62 = vmax.f32 %v6837_v13, %v6839_v38  ;;  %2921 = vmax.xlane.f32.xlu0 %v2920_v18 }
 0x55b   : > { %2924 = vmax.xlane.f32.xlu1 %v2923_v62 }
 0x55d   : > { %v6843_v5 = vpop.f32.mrb[148].mxu0 }
 0x55e   : > { %v6845_v2 = vpop.f32.mrb[149].mxu0 }
 0x55f   : > { %v2926_v20 = vmax.f32 %v6843_v5, %v6845_v2  ;;  %v6849_v57 = vpop.f32.mrb[150].mxu0 }
 0x560   : > { %v6851_v31 = vpop.f32.mrb[151].mxu0 }
 0x561   : > { %v2929_v22 = vmax.f32 %v6849_v57, %v6851_v31  ;;  %2927 = vmax.xlane.f32.xlu0 %v2926_v20 }
 0x563   : > { %2930 = vmax.xlane.f32.xlu1 %v2929_v22 }
 0x565   : > { %v6855_v7 = vpop.f32.mrb[152].mxu0 }
 0x566   : > { %v6857_v9 = vpop.f32.mrb[153].mxu0 }
 0x567   : > { %v2932_v51 = vmax.f32 %v6855_v7, %v6857_v9  ;;  %v6861_v23 = vpop.f32.mrb[154].mxu0 }
 0x568   : > { %v6863_v19 = vpop.f32.mrb[155].mxu0 }
 0x569   : > { %v2935_v24 = vmax.f32 %v6861_v23, %v6863_v19  ;;  %2933 = vmax.xlane.f32.xlu0 %v2932_v51 }
 0x56b   : > { %2936 = vmax.xlane.f32.xlu1 %v2935_v24 }
 0x56d   : > { %v6867_v6 = vpop.f32.mrb[156].mxu0 }
 0x56e   : > { %v6869_v54 = vpop.f32.mrb[157].mxu0 }
 0x56f   : > { %v2938_v55 = vmax.f32 %v6867_v6, %v6869_v54  ;;  %v6873_v43 = vpop.f32.mrb[158].mxu0 }
 0x570   : > { %v6875_v35 = vpop.f32.mrb[159].mxu0 }
 0x571   : > { %v2941_v10 = vmax.f32 %v6873_v43, %v6875_v35  ;;  %2939 = vmax.xlane.f32.xlu0 %v2938_v55 }
 0x573   : > { %2942 = vmax.xlane.f32.xlu1 %v2941_v10 }
 0x575   : > { %v6879_v12 = vpop.f32.mrb[160].mxu0 }
 0x576   : > { %v6881_v50 = vpop.f32.mrb[161].mxu0 }
 0x577   : > { %v2944_v25 = vmax.f32 %v6879_v12, %v6881_v50  ;;  %v6885_v46 = vpop.f32.mrb[162].mxu0 }
 0x578   : > { %v6887_v36 = vpop.f32.mrb[163].mxu0 }
 0x579   : > { %v2947_v39 = vmax.f32 %v6885_v46, %v6887_v36  ;;  %2945 = vmax.xlane.f32.xlu0 %v2944_v25 }
 0x57b   : > { %2948 = vmax.xlane.f32.xlu1 %v2947_v39 }
 0x57d   : > { %v6891_v1 = vpop.f32.mrb[164].mxu0 }
 0x57e   : > { %v6893_v14 = vpop.f32.mrb[165].mxu0 }
 0x57f   : > { %v2950_v34 = vmax.f32 %v6891_v1, %v6893_v14  ;;  %v6897_v49 = vpop.f32.mrb[166].mxu0 }
 0x580   : > { %v6899_v26 = vpop.f32.mrb[167].mxu0 }
 0x581   : > { %v2953_v42 = vmax.f32 %v6897_v49, %v6899_v26  ;;  %2951 = vmax.xlane.f32.xlu0 %v2950_v34 }
 0x583   : > { %2954 = vmax.xlane.f32.xlu1 %v2953_v42 }
 0x585   : > { %v6903_v41 = vpop.f32.mrb[168].mxu0 }
 0x586   : > { %v6905_v15 = vpop.f32.mrb[169].mxu0 }
 0x587   : > { %v2956_v0 = vmax.f32 %v6903_v41, %v6905_v15  ;;  %v6909_v58 = vpop.f32.mrb[170].mxu0 }
 0x588   : > { %v6911_v18 = vpop.f32.mrb[171].mxu0 }
 0x589   : > { %v2959_v62 = vmax.f32 %v6909_v58, %v6911_v18  ;;  %2957 = vmax.xlane.f32.xlu0 %v2956_v0 }
 0x58b   : > { %2960 = vmax.xlane.f32.xlu1 %v2959_v62 }
 0x58d   : > { %v6915_v20 = vpop.f32.mrb[172].mxu0 }
 0x58e   : > { %v6917_v22 = vpop.f32.mrb[173].mxu0 }
 0x58f   : > { %v2962_v51 = vmax.f32 %v6915_v20, %v6917_v22  ;;  %v6921_v24 = vpop.f32.mrb[174].mxu0 }
 0x590   : > { %v6923_v55 = vpop.f32.mrb[175].mxu0 }
 0x591   : > { %v2965_v10 = vmax.f32 %v6921_v24, %v6923_v55  ;;  %2963 = vmax.xlane.f32.xlu0 %v2962_v51 }
 0x593   : > { %2966 = vmax.xlane.f32.xlu1 %v2965_v10 }
 0x595   : > { %2897 = vmax.xlane.f32.xlu0 %v2896_v28 }
 0x597   : > { %2900 = vmax.xlane.f32.xlu1 %v2899_v56 }
 0x5d6   : > { %v6933_v25 = vpop.f32.mrb[176].mxu0 }
 0x5d7   : > { %v6935_v39 = vpop.f32.mrb[177].mxu0 }
 0x5d8   : > { %v2968_v34 = vmax.f32 %v6933_v25, %v6935_v39  ;;  %v6939_v42 = vpop.f32.mrb[178].mxu0 }
 0x5d9   : > { %v6941_v0 = vpop.f32.mrb[179].mxu0 }
 0x5da   : > { %v2971_v62 = vmax.f32 %v6939_v42, %v6941_v0  ;;  %2969 = vmax.xlane.f32.xlu0 %v2968_v34 }
 0x5dc   : > { %2972 = vmax.xlane.f32.xlu1 %v2971_v62 }
 0x5de   : > { %2903 = vmax.xlane.f32.xlu0 %v2902_v8  ;;  %v6948_v28 = vpop.f32.mrb[180].mxu0 }
 0x5df   : > { %8032 = vst [vmem:[#allocation44_spill] sm:$0xff] %v6948_v28  ;;  %v6950_v56 = vpop.f32.mrb[181].mxu0 }
 0x5e0   : > { %8033 = vst [vmem:[#allocation45_spill] sm:$0xff] %v6950_v56  ;;  %v2974_v51 = vmax.f32 %v6948_v28, %v6950_v56  ;;  %2906 = vmax.xlane.f32.xlu1 %v2905_v40  ;;  %v6957_v10 = vpop.f32.mrb[182].mxu0 }
 0x5e1   : > { %v6959_v30 = vpop.f32.mrb[183].mxu0 }
 0x5e2   : > { %8034 = vst [vmem:[#allocation46_spill] sm:$0xff] %v6959_v30  ;;  %v2977_v34 = vmax.f32 %v6957_v10, %v6959_v30  ;;  %2975 = vmax.xlane.f32.xlu0 %v2974_v51 }
 0x5e4   : > { %2978 = vmax.xlane.f32.xlu1 %v2977_v34 }
 0x5e6   : > { %v2922_v8 = vpop.xlane.xlu0 %2921  ;;  %2909 = vmax.xlane.f32.xlu0 %v2908_v48  ;;  %v6968_v44 = vpop.f32.mrb[184].mxu0 }
 0x5e7   : > { %v3008_v62 = vsub.f32 %v6831_v63, %v2922_v8  ;;  %v3009_v16 = vsub.f32 %v6833_v61, %v2922_v8  ;;  %v6970_v56 = vpop.f32.mrb[185].mxu0  ;;  %v8035_v63 = vmax.f32 %v6813_v59, %v6815_v32 }
 0x5e8   : > { %v2925_v40 = vpop.xlane.xlu1 %2924  ;;  %v6977_v61 = vpop.f32.mrb[186].mxu0  ;;  %v2980_v48 = vmax.f32 %v6968_v44, %v6970_v56 }
 0x5e9   : > { %v3088_v28 = vmul.f32 1.442695, %v3008_v62  ;;  %v3090_v33 = vmul.f32 1.442695, %v3009_v16  ;;  %v3010_v30 = vsub.f32 %v6837_v13, %v2925_v40  ;;  %v3011_v51 = vsub.f32 %v6839_v38, %v2925_v40  ;;  %2912 = vmax.xlane.f32.xlu1 %v8035_v63  ;;  %v6981_v34 = vpop.f32.mrb[187].mxu0 }
 0x5ea   : > { %v2983_v16 = vmax.f32 %v6977_v61, %v6981_v34  ;;  %2981 = vmax.xlane.f32.xlu0 %v2980_v48 }
 0x5eb   : > { %4551 = vpow2.f32 %v3088_v28  ;;  %v3092_v8 = vmul.f32 1.442695, %v3010_v30  ;;  %v3094_v52 = vmul.f32 1.442695, %v3011_v51  ;;  %v8036_v28 = vmax.f32 %v6819_v53, %v6821_v29 }
 0x5ec   : > { %4553 = vpow2.f32 %v3090_v33 }
 0x5ed   : > { %4555 = vpow2.f32 %v3092_v8  ;;  %2984 = vmax.xlane.f32.xlu1 %v2983_v16 }
 0x5ee   : > { %4557 = vpow2.f32 %v3094_v52  ;;  %v2928_v13 = vpop.xlane.xlu0 %2927  ;;  %v6987_v40 = vpop.f32.mrb[188].mxu0  ;;  %2915 = vmax.xlane.f32.xlu0 %v8036_v28 }
 0x5ef   : > { %v3012_v38 = vsub.f32 %v6843_v5, %v2928_v13  ;;  %v3013_v62 = vsub.f32 %v6845_v2, %v2928_v13  ;;  %v6992_v51 = vpop.f32.mrb[189].mxu0  ;;  %v8037_v5 = vmax.f32 %v6825_v60, %v6827_v21 }
 0x5f0   : > { %v2931_v30 = vpop.xlane.xlu1 %2930  ;;  %v6999_v2 = vpop.f32.mrb[190].mxu0  ;;  %v2986_v8 = vmax.f32 %v6987_v40, %v6992_v51 }
 0x5f1   : > { %v3096_v63 = vmul.f32 1.442695, %v3012_v38  ;;  %v3098_v33 = vmul.f32 1.442695, %v3013_v62  ;;  %v3014_v48 = vsub.f32 %v6849_v57, %v2931_v30  ;;  %v3015_v52 = vsub.f32 %v6851_v31, %v2931_v30  ;;  %2918 = vmax.xlane.f32.xlu1 %v8037_v5  ;;  %8038 = vst [vmem:[#allocation47_spill] sm:$0xff] %v6999_v2  ;;  %v7003_v16 = vpop.f32.mrb[191].mxu0 }
 0x5f2   : > { %8039 = vst [vmem:[#allocation48_spill] sm:$0xff] %v7003_v16  ;;  %v2989_v38 = vmax.f32 %v6999_v2, %v7003_v16  ;;  %2987 = vmax.xlane.f32.xlu0 %v2986_v8 }
 0x5f3   : > { %4559 = vpow2.f32 %v3096_v63  ;;  %v3100_v13 = vmul.f32 1.442695, %v3014_v48  ;;  %v3102_v28 = vmul.f32 1.442695, %v3015_v52 }
 0x5f4   : > { %4561 = vpow2.f32 %v3098_v33 }
 0x5f5   : > { %v7007_v57 = vpop.eup %4551  ;;  %4563 = vpow2.f32 %v3100_v13  ;;  %2990 = vmax.xlane.f32.xlu1 %v2989_v38 }
 0x5f6   : > { %v7009_v31 = vpop.eup %4553  ;;  %4565 = vpow2.f32 %v3102_v28  ;;  %v2934_v62 = vpop.xlane.xlu0 %2933 }
 0x5f7   : > { %v7011_v30 = vpop.eup %4555  ;;  %v3016_v5 = vsub.f32 %v6855_v7, %v2934_v62  ;;  %v3017_v63 = vsub.f32 %v6857_v9, %v2934_v62  ;;  %v3208_v48 = vadd.f32 %v7009_v31, %v7007_v57 }
 0x5f8   : > { %v7017_v52 = vpop.eup %4557  ;;  %v2937_v33 = vpop.xlane.xlu1 %2936 }
 0x5f9   : > { %v3104_v8 = vmul.f32 1.442695, %v3016_v5  ;;  %v3106_v16 = vmul.f32 1.442695, %v3017_v63  ;;  %3209 = vadd.xlane.f32.xlu0 %v3208_v48  ;;  %v3018_v13 = vsub.f32 %v6861_v23, %v2937_v33  ;;  %v3019_v28 = vsub.f32 %v6863_v19, %v2937_v33 }
 0x5fa   : > { %v3211_v38 = vadd.f32 %v7017_v52, %v7011_v30 }
 0x5fb   : > { %4567 = vpow2.f32 %v3104_v8  ;;  %v3108_v7 = vmul.f32 1.442695, %v3018_v13  ;;  %v3110_v2 = vmul.f32 1.442695, %v3019_v28 }
 0x5fc   : > { %4569 = vpow2.f32 %v3106_v16  ;;  %3212 = vadd.xlane.f32.xlu1 %v3211_v38 }
 0x5fd   : > { %v7023_v9 = vpop.eup %4559  ;;  %4571 = vpow2.f32 %v3108_v7 }
 0x5fe   : > { %v7025_v62 = vpop.eup %4561  ;;  %4573 = vpow2.f32 %v3110_v2  ;;  %v2940_v5 = vpop.xlane.xlu0 %2939 }
 0x5ff   : > { %v7027_v63 = vpop.eup %4563  ;;  %v3020_v23 = vsub.f32 %v6867_v6, %v2940_v5  ;;  %v3021_v19 = vsub.f32 %v6869_v54, %v2940_v5  ;;  %v3214_v48 = vadd.f32 %v7025_v62, %v7023_v9 }
 0x600   : > { %v7033_v33 = vpop.eup %4565  ;;  %v2943_v16 = vpop.xlane.xlu1 %2942 }
 0x601   : > { %v3112_v8 = vmul.f32 1.442695, %v3020_v23  ;;  %v3114_v13 = vmul.f32 1.442695, %v3021_v19  ;;  %3215 = vadd.xlane.f32.xlu0 %v3214_v48  ;;  %v3022_v28 = vsub.f32 %v6873_v43, %v2943_v16  ;;  %v3023_v2 = vsub.f32 %v6875_v35, %v2943_v16 }
 0x602   : > { %v3217_v38 = vadd.f32 %v7033_v33, %v7027_v63 }
 0x603   : > { %4575 = vpow2.f32 %v3112_v8  ;;  %v3116_v6 = vmul.f32 1.442695, %v3022_v28  ;;  %v3118_v7 = vmul.f32 1.442695, %v3023_v2 }
 0x604   : > { %4577 = vpow2.f32 %v3114_v13  ;;  %3218 = vadd.xlane.f32.xlu1 %v3217_v38 }
 0x605   : > { %v7039_v54 = vpop.eup %4567  ;;  %4579 = vpow2.f32 %v3116_v6 }
 0x606   : > { %v7041_v5 = vpop.eup %4569  ;;  %4581 = vpow2.f32 %v3118_v7  ;;  %v2946_v23 = vpop.xlane.xlu0 %2945 }
 0x607   : > { %v7043_v19 = vpop.eup %4571  ;;  %v3024_v43 = vsub.f32 %v6879_v12, %v2946_v23  ;;  %v3025_v35 = vsub.f32 %v6881_v50, %v2946_v23  ;;  %v3220_v48 = vadd.f32 %v7041_v5, %v7039_v54 }
 0x608   : > { %v7049_v16 = vpop.eup %4573  ;;  %v2949_v8 = vpop.xlane.xlu1 %2948 }
 0x609   : > { %v3120_v13 = vmul.f32 1.442695, %v3024_v43  ;;  %v3122_v28 = vmul.f32 1.442695, %v3025_v35  ;;  %3221 = vadd.xlane.f32.xlu0 %v3220_v48  ;;  %v3026_v2 = vsub.f32 %v6885_v46, %v2949_v8  ;;  %v3027_v38 = vsub.f32 %v6887_v36, %v2949_v8 }
 0x60a   : > { %v3223_v6 = vadd.f32 %v7049_v16, %v7043_v19 }
 0x60b   : > { %4583 = vpow2.f32 %v3120_v13  ;;  %v3124_v12 = vmul.f32 1.442695, %v3026_v2  ;;  %v3126_v7 = vmul.f32 1.442695, %v3027_v38 }
 0x60c   : > { %4585 = vpow2.f32 %v3122_v28  ;;  %3224 = vadd.xlane.f32.xlu1 %v3223_v6 }
 0x60d   : > { %v7055_v50 = vpop.eup %4575  ;;  %4587 = vpow2.f32 %v3124_v12 }
 0x60e   : > { %v7057_v23 = vpop.eup %4577  ;;  %4589 = vpow2.f32 %v3126_v7  ;;  %v2952_v43 = vpop.xlane.xlu0 %2951 }
 0x60f   : > { %v7059_v35 = vpop.eup %4579  ;;  %v3028_v46 = vsub.f32 %v6891_v1, %v2952_v43  ;;  %v3029_v36 = vsub.f32 %v6893_v14, %v2952_v43  ;;  %v3226_v48 = vadd.f32 %v7057_v23, %v7055_v50 }
 0x610   : > { %v7065_v8 = vpop.eup %4581  ;;  %v2955_v13 = vpop.xlane.xlu1 %2954 }
 0x611   : > { %v3128_v28 = vmul.f32 1.442695, %v3028_v46  ;;  %v3130_v2 = vmul.f32 1.442695, %v3029_v36  ;;  %3227 = vadd.xlane.f32.xlu0 %v3226_v48  ;;  %v3030_v38 = vsub.f32 %v6897_v49, %v2955_v13  ;;  %v3031_v6 = vsub.f32 %v6899_v26, %v2955_v13 }
 0x612   : > { %v3229_v12 = vadd.f32 %v7065_v8, %v7059_v35 }
 0x613   : > { %4591 = vpow2.f32 %v3128_v28  ;;  %v3132_v1 = vmul.f32 1.442695, %v3030_v38  ;;  %v3134_v7 = vmul.f32 1.442695, %v3031_v6 }
 0x614   : > { %4593 = vpow2.f32 %v3130_v2  ;;  %3230 = vadd.xlane.f32.xlu1 %v3229_v12 }
 0x615   : > { %v7071_v14 = vpop.eup %4583  ;;  %4595 = vpow2.f32 %v3132_v1 }
 0x616   : > { %v7073_v43 = vpop.eup %4585  ;;  %4597 = vpow2.f32 %v3134_v7  ;;  %v2958_v46 = vpop.xlane.xlu0 %2957 }
 0x617   : > { %v7075_v36 = vpop.eup %4587  ;;  %v3032_v49 = vsub.f32 %v6903_v41, %v2958_v46  ;;  %v3033_v26 = vsub.f32 %v6905_v15, %v2958_v46  ;;  %v3232_v48 = vadd.f32 %v7073_v43, %v7071_v14 }
 0x618   : > { %v7081_v13 = vpop.eup %4589  ;;  %v2961_v28 = vpop.xlane.xlu1 %2960 }
 0x619   : > { %v3136_v2 = vmul.f32 1.442695, %v3032_v49  ;;  %v3138_v38 = vmul.f32 1.442695, %v3033_v26  ;;  %3233 = vadd.xlane.f32.xlu0 %v3232_v48  ;;  %v3034_v6 = vsub.f32 %v6909_v58, %v2961_v28  ;;  %v3035_v12 = vsub.f32 %v6911_v18, %v2961_v28 }
 0x61a   : > { %v3235_v1 = vadd.f32 %v7081_v13, %v7075_v36 }
 0x61b   : > { %4599 = vpow2.f32 %v3136_v2  ;;  %v3140_v41 = vmul.f32 1.442695, %v3034_v6  ;;  %v3142_v7 = vmul.f32 1.442695, %v3035_v12 }
 0x61c   : > { %4601 = vpow2.f32 %v3138_v38  ;;  %3236 = vadd.xlane.f32.xlu1 %v3235_v1 }
 0x61d   : > { %v7087_v15 = vpop.eup %4591  ;;  %4603 = vpow2.f32 %v3140_v41 }
 0x61e   : > { %8040 = vst [vmem:[#allocation49_spill] sm:$0xff] %v7087_v15  ;;  %v7089_v46 = vpop.eup %4593  ;;  %4605 = vpow2.f32 %v3142_v7  ;;  %v2964_v49 = vpop.xlane.xlu0 %2963 }
 0x61f   : > { %v7091_v26 = vpop.eup %4595  ;;  %v3036_v58 = vsub.f32 %v6915_v20, %v2964_v49  ;;  %v3037_v18 = vsub.f32 %v6917_v22, %v2964_v49  ;;  %v3238_v48 = vadd.f32 %v7089_v46, %v7087_v15 }
 0x620   : > { %v7097_v28 = vpop.eup %4597  ;;  %v2967_v2 = vpop.xlane.xlu1 %2966 }
 0x621   : > { %v3144_v38 = vmul.f32 1.442695, %v3036_v58  ;;  %v3146_v6 = vmul.f32 1.442695, %v3037_v18  ;;  %3239 = vadd.xlane.f32.xlu0 %v3238_v48  ;;  %v3038_v12 = vsub.f32 %v6921_v24, %v2967_v2  ;;  %v3039_v1 = vsub.f32 %v6923_v55, %v2967_v2 }
 0x622   : > { %v2898_v41 = vpop.xlane.xlu0 %2897  ;;  %v3241_v7 = vadd.f32 %v7097_v28, %v7091_v26 }
 0x623   : > { %4607 = vpow2.f32 %v3144_v38  ;;  %v3148_v20 = vmul.f32 1.442695, %v3038_v12  ;;  %v3150_v22 = vmul.f32 1.442695, %v3039_v1  ;;  %v2992_v49 = vsub.f32 %v6783_v47, %v2898_v41 }
 0x624   : > { %4609 = vpow2.f32 %v3146_v6  ;;  %v2993_v15 = vsub.f32 %v6785_v37, %v2898_v41  ;;  %3242 = vadd.xlane.f32.xlu1 %v3241_v7  ;;  %v2901_v58 = vpop.xlane.xlu1 %2900 }
 0x625   : > { %v7105_v18 = vpop.eup %4599  ;;  %4611 = vpow2.f32 %v3148_v20  ;;  %v3056_v24 = vmul.f32 1.442695, %v2992_v49  ;;  %v2994_v55 = vsub.f32 %v6789_v45, %v2901_v58  ;;  %v2995_v48 = vsub.f32 %v6791_v17, %v2901_v58 }
 0x626   : > { %v7109_v2 = vpop.eup %4601  ;;  %4613 = vpow2.f32 %v3150_v22  ;;  %v3058_v38 = vmul.f32 1.442695, %v2993_v15 }
 0x627   : > { %v7111_v12 = vpop.eup %4603  ;;  %4615 = vpow2.f32 %v3056_v24  ;;  %v3060_v47 = vmul.f32 1.442695, %v2994_v55  ;;  %v3062_v6 = vmul.f32 1.442695, %v2995_v48  ;;  %v3244_v37 = vadd.f32 %v7109_v2, %v7105_v18 }
 0x628   : > { %v7115_v1 = vpop.eup %4605  ;;  %4617 = vpow2.f32 %v3058_v38 }
 0x629   : > { %4619 = vpow2.f32 %v3060_v47  ;;  %3245 = vadd.xlane.f32.xlu0 %v3244_v37  ;;  %v3247_v45 = vadd.f32 %v7115_v1, %v7111_v12 }
 0x62a   : > { %4621 = vpow2.f32 %v3062_v6 }
 0x62b   : > { %3248 = vadd.xlane.f32.xlu1 %v3247_v45 }
 0x62d   : > { %v7119_v17 = vpop.eup %4607 }
 0x62e   : > { %8041 = vst [vmem:[#allocation50_spill] sm:$0xff] %v7119_v17  ;;  %v7121_v15 = vpop.eup %4609 }
 0x62f   : > { %v7123_v41 = vpop.eup %4611  ;;  %v3250_v7 = vadd.f32 %v7121_v15, %v7119_v17 }
 0x630   : > { %8042 = vst [vmem:[#allocation64_spill] sm:$0xff] %v7123_v41  ;;  %v7127_v20 = vpop.eup %4613 }
 0x631   : > { %8043 = vst [vmem:[#allocation51_spill] sm:$0xff] %v7127_v20  ;;  %v7129_v22 = vpop.eup %4615  ;;  %3251 = vadd.xlane.f32.xlu0 %v3250_v7  ;;  %v3253_v49 = vadd.f32 %v7127_v20, %v7123_v41 }
 0x632   : > { %8044 = vst [vmem:[#allocation66_spill] sm:$0xff] %v7129_v22  ;;  %v7133_v58 = vpop.eup %4617 }
 0x633   : > { %8045 = vst [vmem:[#allocation67_spill] sm:$0xff] %v7133_v58  ;;  %v7135_v24 = vpop.eup %4619  ;;  %3254 = vadd.xlane.f32.xlu1 %v3253_v49  ;;  %v3184_v55 = vadd.f32 %v7133_v58, %v7129_v22 }
 0x634   : > { %v7139_v48 = vpop.eup %4621 }
 0x635   : > { %8046 = vst [vmem:[#allocation52_spill] sm:$0xff] %v7139_v48  ;;  %3185 = vadd.xlane.f32.xlu0 %v3184_v55  ;;  %v3187_v38 = vadd.f32 %v7139_v48, %v7135_v24 }
 0x637   : > { %3188 = vadd.xlane.f32.xlu1 %v3187_v38 }
 0x667   : > { %v2970_v47 = vpop.xlane.xlu0 %2969 }
 0x668   : > { %v3040_v6 = vsub.f32 %v6933_v25, %v2970_v47  ;;  %v3041_v37 = vsub.f32 %v6935_v39, %v2970_v47  ;;  %v8047_v47 = vld [vmem:[#allocation43_spill] sm:$0xff] }
 0x669   : > { %v2973_v45 = vpop.xlane.xlu1 %2972 }
 0x66a   : > { %v3152_v7 = vmul.f32 1.442695, %v3040_v6  ;;  %v3154_v17 = vmul.f32 1.442695, %v3041_v37  ;;  %v3042_v49 = vsub.f32 %v6939_v42, %v2973_v45  ;;  %v3043_v41 = vsub.f32 %v6941_v0, %v2973_v45 }
 0x66b   : > { %v2904_v58 = vpop.xlane.xlu0 %2903 }
 0x66c   : > { %4623 = vpow2.f32 %v3152_v7  ;;  %v3156_v22 = vmul.f32 1.442695, %v3042_v49  ;;  %v3158_v55 = vmul.f32 1.442695, %v3043_v41  ;;  %v2996_v20 = vsub.f32 %v6795_v11, %v2904_v58  ;;  %v8048_v7 = vld [vmem:[#allocation44_spill] sm:$0xff]  ;;  %v8049_v11 = vld [vmem:[#allocation45_spill] sm:$0xff] }
 0x66d   : > { %4625 = vpow2.f32 %v3154_v17  ;;  %v2997_v38 = vsub.f32 %v6797_v4, %v2904_v58  ;;  %v2907_v48 = vpop.xlane.xlu1 %2906 }
 0x66e   : > { %4627 = vpow2.f32 %v3156_v22  ;;  %v3064_v25 = vmul.f32 1.442695, %v2996_v20  ;;  %v2998_v39 = vsub.f32 %v6801_v3, %v2907_v48  ;;  %v2999_v6 = vsub.f32 %v8047_v47, %v2907_v48  ;;  %v8050_v22 = vld [vmem:[#allocation46_spill] sm:$0xff] }
 0x66f   : > { %4629 = vpow2.f32 %v3158_v55  ;;  %v3066_v42 = vmul.f32 1.442695, %v2997_v38  ;;  %v2976_v37 = vpop.xlane.xlu0 %2975 }
 0x670   : > { %4631 = vpow2.f32 %v3064_v25  ;;  %v3068_v0 = vmul.f32 1.442695, %v2998_v39  ;;  %v3070_v45 = vmul.f32 1.442695, %v2999_v6  ;;  %v3044_v41 = vsub.f32 %v8048_v7, %v2976_v37  ;;  %v8051_v39 = vld [vmem:[#allocation58_spill] sm:$0xff] }
 0x671   : > { %4633 = vpow2.f32 %v3066_v42  ;;  %v3045_v17 = vsub.f32 %v8049_v11, %v2976_v37  ;;  %v2979_v49 = vpop.xlane.xlu1 %2978 }
 0x672   : > { %4635 = vpow2.f32 %v3068_v0  ;;  %v3160_v4 = vmul.f32 1.442695, %v3044_v41  ;;  %v3046_v20 = vsub.f32 %v6957_v10, %v2979_v49  ;;  %v3047_v3 = vsub.f32 %v8050_v22, %v2979_v49 }
 0x673   : > { %4637 = vpow2.f32 %v3070_v45  ;;  %v3162_v58 = vmul.f32 1.442695, %v3045_v17  ;;  %v2910_v48 = vpop.xlane.xlu0 %2909 }
 0x674   : > { %4639 = vpow2.f32 %v3160_v4  ;;  %v3164_v55 = vmul.f32 1.442695, %v3046_v20  ;;  %v3166_v38 = vmul.f32 1.442695, %v3047_v3  ;;  %v3000_v25 = vsub.f32 %v6807_v27, %v2910_v48 }
 0x675   : > { %4641 = vpow2.f32 %v3162_v58  ;;  %v3001_v47 = vsub.f32 %v8051_v39, %v2910_v48 }
 0x676   : > { %v2913_v6 = vpop.xlane.xlu1 %2912  ;;  %v7157_v42 = vpop.eup %4623  ;;  %4643 = vpow2.f32 %v3164_v55  ;;  %v3072_v37 = vmul.f32 1.442695, %v3000_v25 }
 0x677   : > { %v3002_v10 = vsub.f32 %v6813_v59, %v2913_v6  ;;  %v3003_v0 = vsub.f32 %v6815_v32, %v2913_v6  ;;  %v7161_v45 = vpop.eup %4625  ;;  %4645 = vpow2.f32 %v3166_v38  ;;  %v3074_v7 = vmul.f32 1.442695, %v3001_v47  ;;  %v2982_v17 = vpop.xlane.xlu0 %2981 }
 0x678   : > { %v7163_v41 = vpop.eup %4627  ;;  %4647 = vpow2.f32 %v3072_v37  ;;  %v3256_v49 = vadd.f32 %v7161_v45, %v7157_v42  ;;  %v3048_v59 = vsub.f32 %v6968_v44, %v2982_v17  ;;  %v3049_v32 = vsub.f32 %v6970_v56, %v2982_v17 }
 0x679   : > { %v3076_v27 = vmul.f32 1.442695, %v3002_v10  ;;  %v3078_v11 = vmul.f32 1.442695, %v3003_v0  ;;  %v7167_v4 = vpop.eup %4629  ;;  %4649 = vpow2.f32 %v3074_v7 }
 0x67a   : > { %v2985_v20 = vpop.xlane.xlu1 %2984  ;;  %v7171_v22 = vpop.eup %4631  ;;  %3257 = vadd.xlane.f32.xlu0 %v3256_v49  ;;  %v3259_v48 = vadd.f32 %v7167_v4, %v7163_v41  ;;  %v3168_v38 = vmul.f32 1.442695, %v3048_v59  ;;  %v3170_v25 = vmul.f32 1.442695, %v3049_v32 }
 0x67b   : > { %4651 = vpow2.f32 %v3076_v27  ;;  %v3050_v3 = vsub.f32 %v6977_v61, %v2985_v20  ;;  %v3051_v58 = vsub.f32 %v6981_v34, %v2985_v20  ;;  %v7177_v55 = vpop.eup %4633  ;;  %v2916_v47 = vpop.xlane.xlu0 %2915 }
 0x67c   : > { %4653 = vpow2.f32 %v3078_v11  ;;  %v7179_v44 = vpop.eup %4635  ;;  %3260 = vadd.xlane.f32.xlu1 %v3259_v48  ;;  %v3190_v6 = vadd.f32 %v7177_v55, %v7171_v22  ;;  %v3004_v34 = vsub.f32 %v6819_v53, %v2916_v47  ;;  %v3005_v37 = vsub.f32 %v6821_v29, %v2916_v47 }
 0x67d   : > { %v3172_v56 = vmul.f32 1.442695, %v3050_v3  ;;  %v3174_v39 = vmul.f32 1.442695, %v3051_v58  ;;  %v7183_v61 = vpop.eup %4637  ;;  %4655 = vpow2.f32 %v3168_v38 }
 0x67e   : > { %v2919_v10 = vpop.xlane.xlu1 %2918  ;;  %v7187_v0 = vpop.eup %4639  ;;  %4657 = vpow2.f32 %v3170_v25  ;;  %3191 = vadd.xlane.f32.xlu0 %v3190_v6  ;;  %v3193_v11 = vadd.f32 %v7183_v61, %v7179_v44  ;;  %v3080_v49 = vmul.f32 1.442695, %v3004_v34  ;;  %v3082_v59 = vmul.f32 1.442695, %v3005_v37  ;;  %v8052_v25 = vld [vmem:[#allocation47_spill] sm:$0xff] }
 0x67f   : > { %v3006_v7 = vsub.f32 %v6825_v60, %v2919_v10  ;;  %v3007_v27 = vsub.f32 %v6827_v21, %v2919_v10  ;;  %v7193_v17 = vpop.eup %4641  ;;  %4659 = vpow2.f32 %v3172_v56  ;;  %v2988_v20 = vpop.xlane.xlu0 %2987 }
 0x680   : > { %v7195_v53 = vpop.eup %4643  ;;  %4661 = vpow2.f32 %v3174_v39  ;;  %3194 = vadd.xlane.f32.xlu1 %v3193_v11  ;;  %v3262_v60 = vadd.f32 %v7193_v17, %v7187_v0  ;;  %v3052_v21 = vsub.f32 %v6987_v40, %v2988_v20  ;;  %v3053_v58 = vsub.f32 %v6992_v51, %v2988_v20  ;;  %v8053_v39 = vld [vmem:[#allocation48_spill] sm:$0xff] }
 0x681   : > { %v3084_v29 = vmul.f32 1.442695, %v3006_v7  ;;  %v3086_v32 = vmul.f32 1.442695, %v3007_v27  ;;  %v7199_v3 = vpop.eup %4645  ;;  %4663 = vpow2.f32 %v3080_v49 }
 0x682   : > { %v2991_v48 = vpop.xlane.xlu1 %2990  ;;  %v7203_v38 = vpop.eup %4647  ;;  %4665 = vpow2.f32 %v3082_v59  ;;  %3263 = vadd.xlane.f32.xlu0 %v3262_v60  ;;  %v3265_v6 = vadd.f32 %v7199_v3, %v7195_v53  ;;  %v3176_v37 = vmul.f32 1.442695, %v3052_v21  ;;  %v3178_v10 = vmul.f32 1.442695, %v3053_v58 }
 0x683   : > { %v3054_v56 = vsub.f32 %v8052_v25, %v2991_v48  ;;  %v3055_v47 = vsub.f32 %v8053_v39, %v2991_v48  ;;  %v7209_v34 = vpop.eup %4649  ;;  %4667 = vpow2.f32 %v3084_v29 }
 0x684   : > { %4669 = vpow2.f32 %v3086_v32  ;;  %3266 = vadd.xlane.f32.xlu1 %v3265_v6  ;;  %v3196_v27 = vadd.f32 %v7209_v34, %v7203_v38 }
 0x685   : > { %v7211_v40 = vpop.eup %4651  ;;  %v3180_v51 = vmul.f32 1.442695, %v3054_v56  ;;  %v3182_v7 = vmul.f32 1.442695, %v3055_v47  ;;  %4671 = vpow2.f32 %v3176_v37 }
 0x686   : > { %v7215_v11 = vpop.eup %4653  ;;  %4673 = vpow2.f32 %v3178_v10  ;;  %v3210_v49 = vpop.xlane.xlu0 %3209  ;;  %3197 = vadd.xlane.f32.xlu0 %v3196_v27 }
 0x687   : > { %v3199_v59 = vadd.f32 %v7215_v11, %v7211_v40  ;;  %v7219_v29 = vpop.eup %4655  ;;  %4675 = vpow2.f32 %v3180_v51 }
 0x688   : > { %v7221_v20 = vpop.eup %4657  ;;  %4677 = vpow2.f32 %v3182_v7 }
 0x689   : > { %v3213_v32 = vpop.xlane.xlu1 %3212  ;;  %3200 = vadd.xlane.f32.xlu1 %v3199_v59  ;;  %v7223_v60 = vpop.eup %4659  ;;  %4679 = vrcp.f32 %v3210_v49  ;;  %v3268_v21 = vadd.f32 %v7221_v20, %v7219_v29 }
 0x68a   : > { %v7227_v58 = vpop.eup %4661  ;;  %4681 = vrcp.f32 %v3213_v32 }
 0x68b   : > { %v7229_v48 = vpop.eup %4663  ;;  %3269 = vadd.xlane.f32.xlu0 %v3268_v21  ;;  %v3271_v25 = vadd.f32 %v7227_v58, %v7223_v60 }
 0x68c   : > { %8054 = vst [vmem:[#allocation69_spill] sm:$0xff] %v7229_v48  ;;  %v7233_v56 = vpop.eup %4665 }
 0x68d   : > { %8055 = vst [vmem:[#allocation53_spill] sm:$0xff] %v7233_v56  ;;  %v7235_v39 = vpop.eup %4667  ;;  %3272 = vadd.xlane.f32.xlu1 %v3271_v25  ;;  %v3202_v6 = vadd.f32 %v7233_v56, %v7229_v48 }
 0x68e   : > { %8056 = vst [vmem:[#allocation72_spill] sm:$0xff] %v7235_v39  ;;  %v3216_v47 = vpop.xlane.xlu0 %3215  ;;  %v7239_v37 = vpop.eup %4669 }
 0x68f   : > { %8057 = vst [vmem:[#allocation54_spill] sm:$0xff] %v7239_v37  ;;  %v7241_v10 = vpop.eup %4671  ;;  %4683 = vrcp.f32 %v3216_v47  ;;  %3203 = vadd.xlane.f32.xlu0 %v3202_v6  ;;  %v3205_v51 = vadd.f32 %v7239_v37, %v7235_v39 }
 0x690   : > { %8058 = vst [vmem:[#allocation55_spill] sm:$0xff] %v7241_v10  ;;  %v7245_v7 = vpop.eup %4673 }
 0x691   : > { %8059 = vst [vmem:[#allocation105_spill] sm:$0xff] %v7245_v7  ;;  %v3219_v27 = vpop.xlane.xlu1 %3218  ;;  %v7247_v49 = vpop.eup %4675  ;;  %3206 = vadd.xlane.f32.xlu1 %v3205_v51  ;;  %v3274_v59 = vadd.f32 %v7245_v7, %v7241_v10 }
 0x692   : > { %8060 = vst [vmem:[#allocation106_spill] sm:$0xff] %v7247_v49  ;;  %4685 = vrcp.f32 %v3219_v27  ;;  %v7251_v32 = vpop.eup %4677 }
 0x693   : > { %v4680_v21 = vpop.eup %4679  ;;  %3275 = vadd.xlane.f32.xlu0 %v3274_v59  ;;  %v3277_v25 = vadd.f32 %v7251_v32, %v7247_v49 }
 0x694   : > { %v4682_v47 = vpop.eup %4681  ;;  %v3328_v6 = vmul.f32 %v4680_v21, %v7007_v57  ;;  %v3329_v27 = vmul.f32 %v4680_v21, %v7009_v31 }
 0x695   : > { %v3330_v39 = vmul.f32 %v4682_v47, %v7011_v30  ;;  %3278 = vadd.xlane.f32.xlu1 %v3277_v25  ;;  %v3331_v51 = vmul.f32 %v4682_v47, %v7017_v52 }
 0x696   : > { %v3222_v48 = vpop.xlane.xlu0 %3221 }
 0x697   : > { %4687 = vrcp.f32 %v3222_v48  ;;  %v3385_v10 = vpack.c.bf16 %v3331_v51, %v3329_v27  ;;  %v3384_v7 = vpack.c.bf16 %v3330_v39, %v3328_v6 }
 0x699   : > { %v3225_v37 = vpop.xlane.xlu1 %3224  ;;  %v4684_v56 = vpop.eup %4683  ;;  %3488 = vmatprep.mubr.bf16.mxu1 %v3385_v10 }
 0x69a   : > { %4689 = vrcp.f32 %v3225_v37  ;;  %3489 = vmatmul.mubr.bf16.vlgmr.msra.gmra.mrb[160].mxu1 %v3384_v7  ;;  %v3333_v49 = vmul.f32 %v4684_v56, %v7025_v62  ;;  %v3332_v30 = vmul.f32 %v4684_v56, %v7023_v9 }
 0x69c   : > { %v4686_v59 = vpop.eup %4685 }
 0x69d   : > { %v3335_v57 = vmul.f32 %v4686_v59, %v7033_v33  ;;  %v3334_v25 = vmul.f32 %v4686_v59, %v7027_v63 }
 0x69e   : > { %v3228_v31 = vpop.xlane.xlu0 %3227 }
 0x69f   : > { %v3387_v21 = vpack.c.bf16 %v3335_v57, %v3333_v49  ;;  %v3386_v52 = vpack.c.bf16 %v3334_v25, %v3332_v30  ;;  %4691 = vrcp.f32 %v3228_v31 }
 0x6a1   : > { %3496 = vmatprep.mubr.bf16.mxu1 %v3387_v21  ;;  %v3231_v48 = vpop.xlane.xlu1 %3230  ;;  %v4688_v39 = vpop.eup %4687 }
 0x6a2   : > { %4693 = vrcp.f32 %v3231_v48  ;;  %3497 = vmatmul.mubr.bf16.gmra.mrb[164].mxu1 %v3386_v52  ;;  %v3337_v10 = vmul.f32 %v4688_v39, %v7041_v5  ;;  %v3336_v33 = vmul.f32 %v4688_v39, %v7039_v54 }
 0x6a4   : > { %v4690_v37 = vpop.eup %4689 }
 0x6a5   : > { %v3339_v62 = vmul.f32 %v4690_v37, %v7049_v16  ;;  %v3338_v9 = vmul.f32 %v4690_v37, %v7043_v19 }
 0x6a6   : > { %v3234_v56 = vpop.xlane.xlu0 %3233 }
 0x6a7   : > { %v3389_v63 = vpack.c.bf16 %v3339_v62, %v3337_v10  ;;  %v3388_v7 = vpack.c.bf16 %v3338_v9, %v3336_v33  ;;  %4695 = vrcp.f32 %v3234_v56  ;;  %v8061_v62 = vld [vmem:[#allocation49_spill] sm:$0xff] }
 0x6a9   : > { %3504 = vmatprep.mubr.bf16.mxu1 %v3389_v63  ;;  %v3237_v49 = vpop.xlane.xlu1 %3236  ;;  %v4692_v47 = vpop.eup %4691 }
 0x6aa   : > { %4697 = vrcp.f32 %v3237_v49  ;;  %3505 = vmatmul.mubr.bf16.gmra.mrb[168].mxu1 %v3388_v7  ;;  %v3341_v27 = vmul.f32 %v4692_v47, %v7057_v23  ;;  %v3340_v16 = vmul.f32 %v4692_v47, %v7055_v50 }
 0x6ac   : > { %v4694_v6 = vpop.eup %4693 }
 0x6ad   : > { %v3343_v5 = vmul.f32 %v4694_v6, %v7065_v8  ;;  %v3342_v54 = vmul.f32 %v4694_v6, %v7059_v35 }
 0x6ae   : > { %v3240_v51 = vpop.xlane.xlu0 %3239 }
 0x6af   : > { %v3391_v19 = vpack.c.bf16 %v3343_v5, %v3341_v27  ;;  %v3390_v59 = vpack.c.bf16 %v3342_v54, %v3340_v16  ;;  %4699 = vrcp.f32 %v3240_v51 }
 0x6b1   : > { %3512 = vmatprep.mubr.bf16.mxu1 %v3391_v19  ;;  %v3243_v57 = vpop.xlane.xlu1 %3242  ;;  %v4696_v30 = vpop.eup %4695  ;;  %v8062_v19 = vld [vmem:[#allocation51_spill] sm:$0xff] }
 0x6b2   : > { %4701 = vrcp.f32 %v3243_v57  ;;  %3513 = vmatmul.mubr.bf16.gmra.mrb[172].mxu1 %v3390_v59  ;;  %v3345_v31 = vmul.f32 %v4696_v30, %v7073_v43  ;;  %v3344_v8 = vmul.f32 %v4696_v30, %v7071_v14  ;;  %v8063_v57 = vld [vmem:[#allocation64_spill] sm:$0xff] }
 0x6b4   : > { %v4698_v25 = vpop.eup %4697 }
 0x6b5   : > { %v3347_v23 = vmul.f32 %v4698_v25, %v7081_v13  ;;  %v3346_v50 = vmul.f32 %v4698_v25, %v7075_v36  ;;  %v8064_v25 = vld [vmem:[#allocation50_spill] sm:$0xff] }
 0x6b6   : > { %v3246_v21 = vpop.xlane.xlu0 %3245 }
 0x6b7   : > { %4703 = vrcp.f32 %v3246_v21  ;;  %v3393_v35 = vpack.c.bf16 %v3347_v23, %v3345_v31  ;;  %v3392_v52 = vpack.c.bf16 %v3346_v50, %v3344_v8  ;;  %v8065_v8 = vld [vmem:[#allocation66_spill] sm:$0xff]  ;;  %v8066_v21 = vld [vmem:[#allocation67_spill] sm:$0xff] }
 0x6b8   : > { %v3249_v48 = vpop.xlane.xlu1 %3248 }
 0x6b9   : > { %3520 = vmatprep.mubr.bf16.mxu1 %v3393_v35  ;;  %4705 = vrcp.f32 %v3249_v48  ;;  %v4700_v39 = vpop.eup %4699 }
 0x6ba   : > { %3521 = vmatmul.mubr.bf16.gmra.mrb[176].mxu1 %v3392_v52  ;;  %v3349_v10 = vmul.f32 %v4700_v39, %v7089_v46  ;;  %v3348_v13 = vmul.f32 %v4700_v39, %v8061_v62  ;;  %v8067_v52 = vld [vmem:[#allocation52_spill] sm:$0xff] }
 0x6bc   : > { %v4702_v37 = vpop.eup %4701 }
 0x6bd   : > { %v3351_v43 = vmul.f32 %v4702_v37, %v7097_v28  ;;  %v3350_v14 = vmul.f32 %v4702_v37, %v7091_v26 }
 0x6be   : > { %v3252_v33 = vpop.xlane.xlu0 %3251 }
 0x6bf   : > { %4707 = vrcp.f32 %v3252_v33  ;;  %v3395_v36 = vpack.c.bf16 %v3351_v43, %v3349_v10  ;;  %v3394_v9 = vpack.c.bf16 %v3350_v14, %v3348_v13 }
 0x6c0   : > { %v3255_v56 = vpop.xlane.xlu1 %3254 }
 0x6c1   : > { %v4704_v63 = vpop.eup %4703  ;;  %3528 = vmatprep.mubr.bf16.mxu1 %v3395_v36  ;;  %4709 = vrcp.f32 %v3255_v56 }
 0x6c2   : > { %v3186_v7 = vpop.xlane.xlu0 %3185  ;;  %3529 = vmatmul.mubr.bf16.gmra.mrb[180].mxu1 %v3394_v9  ;;  %v3353_v46 = vmul.f32 %v4704_v63, %v7109_v2  ;;  %v3352_v26 = vmul.f32 %v4704_v63, %v7105_v18 }
 0x6c3   : > { %v4706_v49 = vpop.eup %4705  ;;  %4711 = vrcp.f32 %v3186_v7 }
 0x6c4   : > { %v3189_v47 = vpop.xlane.xlu1 %3188  ;;  %v3355_v28 = vmul.f32 %v4706_v49, %v7115_v1  ;;  %v3354_v6 = vmul.f32 %v4706_v49, %v7111_v12 }
 0x6c5   : > { %4713 = vrcp.f32 %v3189_v47 }
 0x6c6   : > { %v3397_v27 = vpack.c.bf16 %v3355_v28, %v3353_v46  ;;  %v3396_v5 = vpack.c.bf16 %v3354_v6, %v3352_v26 }
 0x6c8   : > { %3536 = vmatprep.mubr.bf16.mxu1 %v3397_v27 }
 0x6c9   : > { %v4708_v16 = vpop.eup %4707 }
 0x6ca   : > { %3537 = vmatmul.mubr.bf16.gmra.mrb[184].mxu1 %v3396_v5  ;;  %v3357_v51 = vmul.f32 %v4708_v16, %v7121_v15  ;;  %v3356_v1 = vmul.f32 %v4708_v16, %v8064_v25 }
 0x6cb   : > { %v4710_v54 = vpop.eup %4709 }
 0x6cc   : > { %v3359_v59 = vmul.f32 %v4710_v54, %v8062_v19  ;;  %v3358_v30 = vmul.f32 %v4710_v54, %v8063_v57 }
 0x6cd   : > { %v4712_v2 = vpop.eup %4711 }
 0x6ce   : > { %v3399_v31 = vpack.c.bf16 %v3359_v59, %v3357_v51  ;;  %v3398_v23 = vpack.c.bf16 %v3358_v30, %v3356_v1  ;;  %v3312_v18 = vmul.f32 %v4712_v2, %v8065_v8  ;;  %v3313_v35 = vmul.f32 %v4712_v2, %v8066_v21 }
 0x6cf   : > { %v4714_v12 = vpop.eup %4713 }
 0x6d0   : > { %v3314_v50 = vmul.f32 %v4714_v12, %v7135_v24  ;;  %3544 = vmatprep.mubr.bf16.mxu1 %v3399_v31  ;;  %v3315_v48 = vmul.f32 %v4714_v12, %v8067_v52 }
 0x6d2   : > { %v3377_v15 = vpack.c.bf16 %v3315_v48, %v3313_v35  ;;  %v3376_v39 = vpack.c.bf16 %v3314_v50, %v3312_v18  ;;  %3545 = vmatmul.mubr.bf16.gmra.mrb[188].mxu1 %v3398_v23  ;;  %v8068_v48 = vld [vmem:[#allocation53_spill] sm:$0xff] }
 0x6d4   : > { %3456 = vmatprep.mubr.bf16.mxu0 %v3377_v15 }
 0x6d5   : > { %3457 = vmatmul.mubr.bf16.vlgmr.msra.gmra.mrb[192].mxu0 %v3376_v39  ;;  %v8069_v39 = vld [vmem:[#allocation54_spill] sm:$0xff] }
 0x707   : > { %v3258_v37 = vpop.xlane.xlu0 %3257 }
 0x708   : > { %4715 = vrcp.f32 %v3258_v37 }
 0x709   : > { %v3261_v10 = vpop.xlane.xlu1 %3260 }
 0x70a   : > { %4717 = vrcp.f32 %v3261_v10  ;;  %v8070_v10 = vld [vmem:[#allocation69_spill] sm:$0xff] }
 0x70b   : > { %v3192_v43 = vpop.xlane.xlu0 %3191 }
 0x70c   : > { %4719 = vrcp.f32 %v3192_v43 }
 0x70d   : > { %v3195_v62 = vpop.xlane.xlu1 %3194 }
 0x70e   : > { %4721 = vrcp.f32 %v3195_v62  ;;  %v8071_v62 = vld [vmem:[#allocation72_spill] sm:$0xff] }
 0x70f   : > { %v3264_v13 = vpop.xlane.xlu0 %3263 }
 0x710   : > { %4723 = vrcp.f32 %v3264_v13 }
 0x711   : > { %v3267_v24 = vpop.xlane.xlu1 %3266 }
 0x712   : > { %v4716_v14 = vpop.eup %4715  ;;  %4725 = vrcp.f32 %v3267_v24 }
 0x713   : > { %v3198_v33 = vpop.xlane.xlu0 %3197  ;;  %v3361_v56 = vmul.f32 %v4716_v14, %v7161_v45  ;;  %v3360_v7 = vmul.f32 %v4716_v14, %v7157_v42 }
 0x714   : > { %v4718_v36 = vpop.eup %4717  ;;  %4727 = vrcp.f32 %v3198_v33 }
 0x715   : > { %v3363_v63 = vmul.f32 %v4718_v36, %v7167_v4  ;;  %v3362_v49 = vmul.f32 %v4718_v36, %v7163_v41  ;;  %v8073_v36 = vld [vmem:[#allocation55_spill] sm:$0xff] }
 0x716   : > { %v3201_v9 = vpop.xlane.xlu1 %3200  ;;  %v4720_v47 = vpop.eup %4719 }
 0x717   : > { %4729 = vrcp.f32 %v3201_v9  ;;  %v3401_v46 = vpack.c.bf16 %v3363_v63, %v3361_v56  ;;  %v3400_v28 = vpack.c.bf16 %v3362_v49, %v3360_v7  ;;  %v3317_v27 = vmul.f32 %v4720_v47, %v7177_v55  ;;  %v8074_v56 = vld [vmem:[#allocation106_spill] sm:$0xff] }
 0x718   : > { %v4722_v6 = vpop.eup %4721  ;;  %v3270_v26 = vpop.xlane.xlu0 %3269  ;;  %v3316_v45 = vmul.f32 %v4720_v47, %v7171_v22 }
 0x719   : > { %4731 = vrcp.f32 %v3270_v26  ;;  %3552 = vmatprep.mubr.bf16.mxu1 %v3401_v46  ;;  %v3319_v5 = vmul.f32 %v4722_v6, %v7183_v61  ;;  %v3318_v4 = vmul.f32 %v4722_v6, %v7179_v44 }
 0x71a   : > { %v4724_v16 = vpop.eup %4723  ;;  %v3273_v42 = vpop.xlane.xlu1 %3272  ;;  %3553 = vmatmul.mubr.bf16.gmra.mrb[192].mxu1 %v3400_v28  ;;  %v7319_v28 = vstv %s3585_s9 }
 0x71b   : > { %4733 = vrcp.f32 %v3273_v42  ;;  %v3379_v41 = vpack.c.bf16 %v3319_v5, %v3317_v27  ;;  %v3378_v54 = vpack.c.bf16 %v3318_v4, %v3316_v45  ;;  %v3365_v59 = vmul.f32 %v4724_v16, %v7193_v17  ;;  %v4743_v45 = vld [vmem:[%s4887_s27 + $0x40] sm:$0xff]  ;;  %v4744_v42 = vld [vmem:[%s4887_s27 + $0x48] sm:$0xff] }
 0x71c   : > { %v4726_v51 = vpop.eup %4725  ;;  %v3204_v19 = vpop.xlane.xlu0 %3203  ;;  %v3364_v61 = vmul.f32 %v4724_v16, %v7187_v0 }
 0x71d   : > { %4735 = vrcp.f32 %v3204_v19  ;;  %3464 = vmatprep.mubr.bf16.mxu0 %v3379_v41  ;;  %v3367_v55 = vmul.f32 %v4726_v51, %v7199_v3  ;;  %v3366_v22 = vmul.f32 %v4726_v51, %v7195_v53 }
 0x71e   : > { %v4728_v57 = vpop.eup %4727  ;;  %v3207_v44 = vpop.xlane.xlu1 %3206  ;;  %3465 = vmatmul.mubr.bf16.gmra.mrb[196].mxu0 %v3378_v54 }
 0x71f   : > { %4737 = vrcp.f32 %v3207_v44  ;;  %v3403_v30 = vpack.c.bf16 %v3367_v55, %v3365_v59  ;;  %v3402_v2 = vpack.c.bf16 %v3366_v22, %v3364_v61  ;;  %v3321_v31 = vmul.f32 %v4728_v57, %v7209_v34 }
 0x720   : > { %v3276_v1 = vpop.xlane.xlu0 %3275  ;;  %v3320_v3 = vmul.f32 %v4728_v57, %v7203_v38  ;;  %v4745_v57 = vld [vmem:[%s4887_s27 + $0x50] sm:$0xff] }
 0x721   : > { %v4730_v25 = vpop.eup %4729  ;;  %4739 = vrcp.f32 %v3276_v1  ;;  %3560 = vmatprep.mubr.bf16.mxu1 %v3403_v30 }
 0x722   : > { %v3323_v17 = vmul.f32 %v4730_v25, %v7215_v11  ;;  %v3322_v0 = vmul.f32 %v4730_v25, %v7211_v40  ;;  %v3279_v12 = vpop.xlane.xlu1 %3278  ;;  %3561 = vmatmul.mubr.bf16.gmra.mrb[196].mxu1 %v3402_v2  ;;  %v4746_v2 = vld [vmem:[%s4887_s27 + $0x58] sm:$0xff] }
 0x723   : > { %v4732_v53 = vpop.eup %4731  ;;  %4741 = vrcp.f32 %v3279_v12 }
 0x724   : > { %v3381_v23 = vpack.c.bf16 %v3323_v17, %v3321_v31  ;;  %v3380_v8 = vpack.c.bf16 %v3322_v0, %v3320_v3  ;;  %v3369_v50 = vmul.f32 %v4732_v53, %v7221_v20  ;;  %v3368_v21 = vmul.f32 %v4732_v53, %v7219_v29 }
 0x725   : > { %v4734_v18 = vpop.eup %4733 }
 0x726   : > { %3472 = vmatprep.mubr.bf16.mxu0 %v3381_v23  ;;  %v3371_v34 = vmul.f32 %v4734_v18, %v7227_v58  ;;  %v3370_v11 = vmul.f32 %v4734_v18, %v7223_v60  ;;  %v8072_v60 = vld [vmem:[#allocation105_spill] sm:$0xff]  ;;  %v4747_v23 = vld [vmem:[%s4887_s27 + $0x60] sm:$0xff] }
 0x727   : > { %3473 = vmatmul.mubr.bf16.gmra.mrb[200].mxu0 %v3380_v8  ;;  %v4736_v38 = vpop.eup %4735 }
 0x728   : > { %v3405_v35 = vpack.c.bf16 %v3371_v34, %v3369_v50  ;;  %v3404_v40 = vpack.c.bf16 %v3370_v11, %v3368_v21  ;;  %v3325_v15 = vmul.f32 %v4736_v38, %v8068_v48  ;;  %v3324_v43 = vmul.f32 %v4736_v38, %v8070_v10  ;;  %v4748_v50 = vld [vmem:[%s4887_s27 + $0x68] sm:$0xff]  ;;  %v4750_v10 = vld [vmem:[%s4887_s27 + $0x78] sm:$0xff] }
 0x729   : > { %v4738_v52 = vpop.eup %4737 }
 0x72a   : > { %3568 = vmatprep.mubr.bf16.mxu1 %v3405_v35  ;;  %v3327_v37 = vmul.f32 %v4738_v52, %v8069_v39  ;;  %v3326_v13 = vmul.f32 %v4738_v52, %v8071_v62 }
 0x72b   : > { %v4740_v20 = vpop.eup %4739  ;;  %3569 = vmatmul.mubr.bf16.gmra.mrb[200].mxu1 %v3404_v40 }
 0x72c   : > { %v3383_v58 = vpack.c.bf16 %v3327_v37, %v3325_v15  ;;  %v3382_v24 = vpack.c.bf16 %v3326_v13, %v3324_v43  ;;  %v3373_v14 = vmul.f32 %v4740_v20, %v8072_v60  ;;  %v3372_v9 = vmul.f32 %v4740_v20, %v8073_v36  ;;  %v4749_v15 = vld [vmem:[%s4887_s27 + $0x70] sm:$0xff] }
 0x72d   : > { %v4742_v29 = vpop.eup %4741 }
 0x72e   : > { %3480 = vmatprep.mubr.bf16.mxu0 %v3383_v58  ;;  %v3375_v33 = vmul.f32 %v4742_v29, %v7251_v32  ;;  %v3374_v63 = vmul.f32 %v4742_v29, %v8074_v56 }
 0x72f   : > { %3481 = vmatmul.mubr.bf16.gmra.mrb[204].mxu0 %v3382_v24 }
 0x730   : > { %v3407_v7 = vpack.c.bf16 %v3375_v33, %v3373_v14  ;;  %v3406_v49 = vpack.c.bf16 %v3374_v63, %v3372_v9  ;;  %v4751_v14 = vld [vmem:[%s4887_s27 + $0x80] sm:$0xff]  ;;  %v4752_v9 = vld [vmem:[%s4887_s27 + $0x88] sm:$0xff] }
 0x732   : > { %3576 = vmatprep.mubr.bf16.mxu1 %v3407_v7 }
 0x733   : > { %3577 = vmatmul.mubr.bf16.gmra.mrb[204].mxu1 %v3406_v49 }
 0x76d   : > { %v3966_v47 = vpop.f32.mrb[160].mxu1 }
 0x76e   : > { %v3967_v46 = vpop.f32.mrb[161].mxu1 }
 0x76f   : > { %v3968_v6 = vadd.f32 %v3967_v46, %v3966_v47  ;;  %v3969_v26 = vpop.f32.mrb[162].mxu1 }
 0x770   : > { %v3970_v32 = vpop.f32.mrb[163].mxu1 }
 0x771   : > { %v3595_v27 = vmul.f32 %v3968_v6, %v7319_v28  ;;  %v3971_v5 = vadd.f32 %v3970_v32, %v3969_v26  ;;  %v4753_v32 = vld [vmem:[%s4887_s27 + $0x90] sm:$0xff] }
 0x773   : > { %v3627_v4 = vadd.f32 %v4743_v45, %v3595_v27  ;;  %v3596_v16 = vmul.f32 %v3971_v5, %v7319_v28  ;;  %v4754_v45 = vld [vmem:[%s4887_s27 + $0x98] sm:$0xff] }
 0x775   : > { %3659 = vst [vmem:[%s7326_s12 + $0x40] sm:$0xff] %v3627_v4  ;;  %v3628_v41 = vadd.f32 %v4744_v42, %v3596_v16  ;;  %v3972_v54 = vpop.f32.mrb[164].mxu1 }
 0x776   : > { %v3973_v51 = vpop.f32.mrb[165].mxu1 }
 0x777   : > { %3660 = vst [vmem:[%s7326_s12 + $0x48] sm:$0xff] %v3628_v41  ;;  %v3974_v19 = vadd.f32 %v3973_v51, %v3972_v54  ;;  %v3975_v59 = vpop.f32.mrb[166].mxu1 }
 0x778   : > { %v3976_v55 = vpop.f32.mrb[167].mxu1 }
 0x779   : > { %v3597_v61 = vmul.f32 %v3974_v19, %v7319_v28  ;;  %v3977_v22 = vadd.f32 %v3976_v55, %v3975_v59  ;;  %v4755_v55 = vld [vmem:[%s4887_s27 + $0xa0] sm:$0xff] }
 0x77b   : > { %v3629_v44 = vadd.f32 %v4745_v57, %v3597_v61  ;;  %v3598_v30 = vmul.f32 %v3977_v22, %v7319_v28  ;;  %v4756_v57 = vld [vmem:[%s4887_s27 + $0xa8] sm:$0xff] }
 0x77d   : > { %3661 = vst [vmem:[%s7326_s12 + $0x50] sm:$0xff] %v3629_v44  ;;  %v3630_v25 = vadd.f32 %v4746_v2, %v3598_v30  ;;  %v3978_v1 = vpop.f32.mrb[168].mxu1 }
 0x77e   : > { %v3979_v31 = vpop.f32.mrb[169].mxu1 }
 0x77f   : > { %3662 = vst [vmem:[%s7326_s12 + $0x58] sm:$0xff] %v3630_v25  ;;  %v3980_v17 = vadd.f32 %v3979_v31, %v3978_v1  ;;  %v3981_v3 = vpop.f32.mrb[170].mxu1 }
 0x780   : > { %v3982_v0 = vpop.f32.mrb[171].mxu1 }
 0x781   : > { %v3599_v12 = vmul.f32 %v3980_v17, %v7319_v28  ;;  %v3983_v53 = vadd.f32 %v3982_v0, %v3981_v3 }
 0x783   : > { %v3631_v8 = vadd.f32 %v4747_v23, %v3599_v12  ;;  %v3600_v18 = vmul.f32 %v3983_v53, %v7319_v28 }
 0x785   : > { %3663 = vst [vmem:[%s7326_s12 + $0x60] sm:$0xff] %v3631_v8  ;;  %v3632_v34 = vadd.f32 %v4748_v50, %v3600_v18  ;;  %v3984_v21 = vpop.f32.mrb[172].mxu1  ;;  %v4757_v18 = vld [vmem:[%s4887_s27 + $0xb0] sm:$0xff] }
 0x786   : > { %v3985_v11 = vpop.f32.mrb[173].mxu1 }
 0x787   : > { %3664 = vst [vmem:[%s7326_s12 + $0x68] sm:$0xff] %v3632_v34  ;;  %v3986_v38 = vadd.f32 %v3985_v11, %v3984_v21  ;;  %v3987_v35 = vpop.f32.mrb[174].mxu1 }
 0x788   : > { %v3988_v40 = vpop.f32.mrb[175].mxu1 }
 0x789   : > { %v3601_v52 = vmul.f32 %v3986_v38, %v7319_v28  ;;  %v3989_v48 = vadd.f32 %v3988_v40, %v3987_v35  ;;  %v4758_v38 = vld [vmem:[%s4887_s27 + $0xb8] sm:$0xff]  ;;  %v4759_v40 = vld [vmem:[%s4887_s27] sm:$0xff] }
 0x78b   : > { %v3633_v39 = vadd.f32 %v4749_v15, %v3601_v52  ;;  %v3602_v37 = vmul.f32 %v3989_v48, %v7319_v28  ;;  %v4760_v15 = vld [vmem:[%s4887_s27 + $0x8] sm:$0xff] }
 0x78d   : > { %3665 = vst [vmem:[%s7326_s12 + $0x70] sm:$0xff] %v3633_v39  ;;  %v3634_v43 = vadd.f32 %v4750_v10, %v3602_v37  ;;  %v3990_v62 = vpop.f32.mrb[176].mxu1 }
 0x78e   : > { %v3991_v13 = vpop.f32.mrb[177].mxu1 }
 0x78f   : > { %3666 = vst [vmem:[%s7326_s12 + $0x78] sm:$0xff] %v3634_v43  ;;  %v3992_v20 = vadd.f32 %v3991_v13, %v3990_v62  ;;  %v3993_v58 = vpop.f32.mrb[178].mxu1 }
 0x790   : > { %v3994_v24 = vpop.f32.mrb[179].mxu1 }
 0x791   : > { %v3603_v29 = vmul.f32 %v3992_v20, %v7319_v28  ;;  %v3995_v60 = vadd.f32 %v3994_v24, %v3993_v58 }
 0x793   : > { %v3635_v33 = vadd.f32 %v4751_v14, %v3603_v29  ;;  %v3604_v36 = vmul.f32 %v3995_v60, %v7319_v28  ;;  %v4761_v60 = vld [vmem:[%s4887_s27 + $0xc0] sm:$0xff] }
 0x795   : > { %3667 = vst [vmem:[%s7326_s12 + $0x80] sm:$0xff] %v3635_v33  ;;  %v3636_v56 = vadd.f32 %v4752_v9, %v3604_v36  ;;  %v3996_v63 = vpop.f32.mrb[180].mxu1 }
 0x796   : > { %v3997_v7 = vpop.f32.mrb[181].mxu1 }
 0x797   : > { %3668 = vst [vmem:[%s7326_s12 + $0x88] sm:$0xff] %v3636_v56  ;;  %v3998_v49 = vadd.f32 %v3997_v7, %v3996_v63  ;;  %v3999_v47 = vpop.f32.mrb[182].mxu1  ;;  %v4762_v63 = vld [vmem:[%s4887_s27 + $0xc8] sm:$0xff] }
 0x798   : > { %v4000_v46 = vpop.f32.mrb[183].mxu1 }
 0x799   : > { %v3605_v6 = vmul.f32 %v3998_v49, %v7319_v28  ;;  %v4001_v26 = vadd.f32 %v4000_v46, %v3999_v47 }
 0x79b   : > { %v3637_v27 = vadd.f32 %v4753_v32, %v3605_v6  ;;  %v3606_v5 = vmul.f32 %v4001_v26, %v7319_v28  ;;  %v4763_v26 = vld [vmem:[%s4887_s27 + $0x10] sm:$0xff] }
 0x79d   : > { %3669 = vst [vmem:[%s7326_s12 + $0x90] sm:$0xff] %v3637_v27  ;;  %v3638_v4 = vadd.f32 %v4754_v45, %v3606_v5  ;;  %v4002_v16 = vpop.f32.mrb[184].mxu1 }
 0x79e   : > { %v4003_v42 = vpop.f32.mrb[185].mxu1 }
 0x79f   : > { %3670 = vst [vmem:[%s7326_s12 + $0x98] sm:$0xff] %v3638_v4  ;;  %v4004_v41 = vadd.f32 %v4003_v42, %v4002_v16  ;;  %v4005_v54 = vpop.f32.mrb[186].mxu1  ;;  %v4764_v16 = vld [vmem:[%s4887_s27 + $0x18] sm:$0xff] }
 0x7a0   : > { %v4006_v51 = vpop.f32.mrb[187].mxu1 }
 0x7a1   : > { %v3607_v19 = vmul.f32 %v4004_v41, %v7319_v28  ;;  %v4007_v59 = vadd.f32 %v4006_v51, %v4005_v54 }
 0x7a3   : > { %v3639_v61 = vadd.f32 %v4755_v55, %v3607_v19  ;;  %v3608_v22 = vmul.f32 %v4007_v59, %v7319_v28  ;;  %v4765_v59 = vld [vmem:[%s4887_s27 + $0xd0] sm:$0xff] }
 0x7a5   : > { %3671 = vst [vmem:[%s7326_s12 + $0xa0] sm:$0xff] %v3639_v61  ;;  %v3640_v44 = vadd.f32 %v4756_v57, %v3608_v22  ;;  %v4008_v30 = vpop.f32.mrb[188].mxu1 }
 0x7a6   : > { %v4009_v2 = vpop.f32.mrb[189].mxu1 }
 0x7a7   : > { %3672 = vst [vmem:[%s7326_s12 + $0xa8] sm:$0xff] %v3640_v44  ;;  %v4010_v25 = vadd.f32 %v4009_v2, %v4008_v30  ;;  %v4011_v1 = vpop.f32.mrb[190].mxu1  ;;  %v4766_v30 = vld [vmem:[%s4887_s27 + $0xd8] sm:$0xff] }
 0x7a8   : > { %v3942_v31 = vpop.f32.mrb[192].mxu0  ;;  %v4012_v17 = vpop.f32.mrb[191].mxu1 }
 0x7a9   : > { %v3943_v3 = vpop.f32.mrb[193].mxu0  ;;  %v3609_v0 = vmul.f32 %v4010_v25, %v7319_v28  ;;  %v4013_v12 = vadd.f32 %v4012_v17, %v4011_v1  ;;  %v4767_v17 = vld [vmem:[%s4887_s27 + $0x20] sm:$0xff] }
 0x7aa   : > { %v3944_v53 = vadd.f32 %v3943_v3, %v3942_v31  ;;  %v3945_v23 = vpop.f32.mrb[194].mxu0 }
 0x7ab   : > { %v3946_v8 = vpop.f32.mrb[195].mxu0  ;;  %v3641_v50 = vadd.f32 %v4757_v18, %v3609_v0  ;;  %v3610_v34 = vmul.f32 %v4013_v12, %v7319_v28 }
 0x7ac   : > { %v3587_v21 = vmul.f32 %v3944_v53, %v7319_v28  ;;  %v3947_v11 = vadd.f32 %v3946_v8, %v3945_v23  ;;  %v4768_v8 = vld [vmem:[%s4887_s27 + $0x28] sm:$0xff] }
 0x7ad   : > { %3673 = vst [vmem:[%s7326_s12 + $0xb0] sm:$0xff] %v3641_v50  ;;  %v3642_v35 = vadd.f32 %v4758_v38, %v3610_v34 }
 0x7ae   : > { %v3619_v52 = vadd.f32 %v4759_v40, %v3587_v21  ;;  %v3588_v48 = vmul.f32 %v3947_v11, %v7319_v28 }
 0x7af   : > { %3674 = vst [vmem:[%s7326_s12 + $0xb8] sm:$0xff] %v3642_v35  ;;  %v4769_v35 = vld [vmem:[%s4887_s27 + $0xe0] sm:$0xff] }
 0x7b0   : > { %3651 = vst [vmem:[%s7326_s12] sm:$0xff] %v3619_v52  ;;  %v3620_v39 = vadd.f32 %v4760_v15, %v3588_v48 }
 0x7b2   : > { %3652 = vst [vmem:[%s7326_s12 + $0x8] sm:$0xff] %v3620_v39 }
 0x7ed   : > { %v4014_v37 = vpop.f32.mrb[192].mxu1 }
 0x7ee   : > { %v4015_v10 = vpop.f32.mrb[193].mxu1 }
 0x7ef   : > { %v4016_v43 = vadd.f32 %v4015_v10, %v4014_v37  ;;  %v4017_v62 = vpop.f32.mrb[194].mxu1  ;;  %v4770_v37 = vld [vmem:[%s4887_s27 + $0xe8] sm:$0xff] }
 0x7f0   : > { %v4018_v13 = vpop.f32.mrb[195].mxu1 }
 0x7f1   : > { %v3611_v20 = vmul.f32 %v4016_v43, %v7319_v28  ;;  %v4019_v58 = vadd.f32 %v4018_v13, %v4017_v62  ;;  %v3948_v24 = vpop.f32.mrb[196].mxu0 }
 0x7f2   : > { %v3949_v29 = vpop.f32.mrb[197].mxu0 }
 0x7f3   : > { %v3643_v14 = vadd.f32 %v4761_v60, %v3611_v20  ;;  %v3612_v33 = vmul.f32 %v4019_v58, %v7319_v28  ;;  %v3950_v36 = vadd.f32 %v3949_v29, %v3948_v24  ;;  %v3951_v9 = vpop.f32.mrb[198].mxu0  ;;  %v4771_v58 = vld [vmem:[%s4887_s27 + $0x30] sm:$0xff] }
 0x7f4   : > { %v3952_v56 = vpop.f32.mrb[199].mxu0 }
 0x7f5   : > { %3675 = vst [vmem:[%s7326_s12 + $0xc0] sm:$0xff] %v3643_v14  ;;  %v3644_v7 = vadd.f32 %v4762_v63, %v3612_v33  ;;  %v3589_v49 = vmul.f32 %v3950_v36, %v7319_v28  ;;  %v3953_v47 = vadd.f32 %v3952_v56, %v3951_v9  ;;  %v4020_v46 = vpop.f32.mrb[196].mxu1  ;;  %v4772_v36 = vld [vmem:[%s4887_s27 + $0x38] sm:$0xff] }
 0x7f6   : > { %v4021_v6 = vpop.f32.mrb[197].mxu1 }
 0x7f7   : > { %3676 = vst [vmem:[%s7326_s12 + $0xc8] sm:$0xff] %v3644_v7  ;;  %v3621_v32 = vadd.f32 %v4763_v26, %v3589_v49  ;;  %v3590_v27 = vmul.f32 %v3953_v47, %v7319_v28  ;;  %v4022_v5 = vadd.f32 %v4021_v6, %v4020_v46  ;;  %v4023_v45 = vpop.f32.mrb[198].mxu1  ;;  %v4773_v7 = vld [vmem:[%s4887_s27 + $0xf0] sm:$0xff]  ;;  %v4774_v46 = vld [vmem:[%s4887_s27 + $0xf8] sm:$0xff] }
 0x7f8   : > { %v4024_v4 = vpop.f32.mrb[199].mxu1 }
 0x7f9   : > { %3653 = vst [vmem:[%s7326_s12 + $0x10] sm:$0xff] %v3621_v32  ;;  %v3622_v42 = vadd.f32 %v4764_v16, %v3590_v27  ;;  %v3613_v41 = vmul.f32 %v4022_v5, %v7319_v28  ;;  %v4025_v54 = vadd.f32 %v4024_v4, %v4023_v45 }
 0x7fa   : > { %v3954_v51 = vpop.f32.mrb[200].mxu0 }
 0x7fb   : > { %v3955_v19 = vpop.f32.mrb[201].mxu0  ;;  %3654 = vst [vmem:[%s7326_s12 + $0x18] sm:$0xff] %v3622_v42  ;;  %v3645_v55 = vadd.f32 %v4765_v59, %v3613_v41  ;;  %v3614_v61 = vmul.f32 %v4025_v54, %v7319_v28 }
 0x7fc   : > { %v3956_v22 = vadd.f32 %v3955_v19, %v3954_v51  ;;  %v3957_v57 = vpop.f32.mrb[202].mxu0 }
 0x7fd   : > { %v3958_v44 = vpop.f32.mrb[203].mxu0  ;;  %3677 = vst [vmem:[%s7326_s12 + $0xd0] sm:$0xff] %v3645_v55  ;;  %v3646_v2 = vadd.f32 %v4766_v30, %v3614_v61 }
 0x7fe   : > { %v3591_v25 = vmul.f32 %v3956_v22, %v7319_v28  ;;  %v3959_v1 = vadd.f32 %v3958_v44, %v3957_v57  ;;  %v4026_v31 = vpop.f32.mrb[200].mxu1 }
 0x7ff   : > { %3678 = vst [vmem:[%s7326_s12 + $0xd8] sm:$0xff] %v3646_v2  ;;  %v4027_v12 = vpop.f32.mrb[201].mxu1 }
 0x800   : > { %v3623_v3 = vadd.f32 %v4767_v17, %v3591_v25  ;;  %v3592_v0 = vmul.f32 %v3959_v1, %v7319_v28  ;;  %v4028_v53 = vadd.f32 %v4027_v12, %v4026_v31  ;;  %v4029_v23 = vpop.f32.mrb[202].mxu1 }
 0x801   : > { %v4030_v50 = vpop.f32.mrb[203].mxu1 }
 0x802   : > { %3655 = vst [vmem:[%s7326_s12 + $0x20] sm:$0xff] %v3623_v3  ;;  %v3624_v18 = vadd.f32 %v4768_v8, %v3592_v0  ;;  %v3615_v34 = vmul.f32 %v4028_v53, %v7319_v28  ;;  %v4031_v21 = vadd.f32 %v4030_v50, %v4029_v23  ;;  %v3960_v11 = vpop.f32.mrb[204].mxu0 }
 0x803   : > { %v3961_v38 = vpop.f32.mrb[205].mxu0 }
 0x804   : > { %3656 = vst [vmem:[%s7326_s12 + $0x28] sm:$0xff] %v3624_v18  ;;  %v3647_v40 = vadd.f32 %v4769_v35, %v3615_v34  ;;  %v3616_v52 = vmul.f32 %v4031_v21, %v7319_v28  ;;  %v3962_v48 = vadd.f32 %v3961_v38, %v3960_v11  ;;  %v3963_v15 = vpop.f32.mrb[206].mxu0 }
 0x805   : > { %v3964_v39 = vpop.f32.mrb[207].mxu0 }
 0x806   : > { %3679 = vst [vmem:[%s7326_s12 + $0xe0] sm:$0xff] %v3647_v40  ;;  %v3648_v10 = vadd.f32 %v4770_v37, %v3616_v52  ;;  %v3593_v43 = vmul.f32 %v3962_v48, %v7319_v28  ;;  %v3965_v62 = vadd.f32 %v3964_v39, %v3963_v15  ;;  %v4032_v13 = vpop.f32.mrb[204].mxu1 }
 0x807   : > { %v4033_v20 = vpop.f32.mrb[205].mxu1 }
 0x808   : > { %3680 = vst [vmem:[%s7326_s12 + $0xe8] sm:$0xff] %v3648_v10  ;;  %v3625_v24 = vadd.f32 %v4771_v58, %v3593_v43  ;;  %v3594_v29 = vmul.f32 %v3965_v62, %v7319_v28  ;;  %v4034_v60 = vadd.f32 %v4033_v20, %v4032_v13  ;;  %v4035_v14 = vpop.f32.mrb[206].mxu1 }
 0x809   : > { %v4036_v33 = vpop.f32.mrb[207].mxu1 }
 0x80a   : > { %3657 = vst [vmem:[%s7326_s12 + $0x30] sm:$0xff] %v3625_v24  ;;  %v3626_v9 = vadd.f32 %v4772_v36, %v3594_v29  ;;  %v3617_v56 = vmul.f32 %v4034_v60, %v7319_v28  ;;  %v4037_v63 = vadd.f32 %v4036_v33, %v4035_v14 }
 0x80c   : > { %3658 = vst [vmem:[%s7326_s12 + $0x38] sm:$0xff] %v3626_v9  ;;  %v3649_v49 = vadd.f32 %v4773_v7, %v3617_v56  ;;  %v3618_v47 = vmul.f32 %v4037_v63, %v7319_v28 }
 0x80e   : > { %3681 = vst [vmem:[%s7326_s12 + $0xf0] sm:$0xff] %v3649_v49  ;;  %v3650_v6 = vadd.f32 %v4774_v46, %v3618_v47 }
 0x810   : > { %3682 = vst [vmem:[%s7326_s12 + $0xf8] sm:$0xff] %v3650_v6 }
 0x811 PF: > { %s18_s26 = sadd.s32 1, %s4781_s26  }
 0x812   : > { %p15_p4 = scmp.ge.s32.totalorder %s18_s26, 4  }
 0x814   :  { %17 = sbr.rel (!%p15_p4) target bundleno = 2 (0x2), region = 81 }

</bundles_post_ra>
